<compile_context>
chip_gen: v5e
topology: v5e:2x2
jax: 0.10.0
libtpu: 0.0.40
codegen_flags: <defaults>
</compile_context>

<pallas_src>
import numpy as np
import jax
import jax.numpy as jnp
from jax import lax
from jax.experimental import pallas as pl
from jax.experimental.pallas import tpu as pltpu


# ----------------------------------------------------------------------------
# Rays (pure numpy, identical to the reference helpers)
# ----------------------------------------------------------------------------
def generate_rays(h_pano=16, w_pano=32):
    angles = np.array(np.meshgrid(np.linspace(0, 2 * np.pi, w_pano),
                                  np.linspace(0, np.pi, h_pano)))
    phi, theta = angles[0], angles[1]
    x = np.sin(theta) * np.cos(phi)
    y = np.sin(theta) * np.sin(phi)
    z = np.cos(theta)
    rays = np.stack((y, x, z), 0)
    c, s = np.cos(np.pi), np.sin(np.pi)
    rotation = np.array([[c, -s, 0], [s, c, 0], [0, 0, 1]])
    points = rotation @ rays.reshape((3, -1))
    return points.reshape(rays.shape)


def rotate_rays(rays, bearing):
    c, s = np.cos(bearing), np.sin(bearing)
    rotation = np.array([[c, -s, 0], [s, c, 0], [0, 0, 1]])
    points = rotation @ rays.reshape((3, -1))
    rays_rot = points.reshape(rays.shape)
    crop_h = int(np.round(rays.shape[2] / 3.9)) + 1
    offset = int(np.round(rays.shape[1] / 4.5))
    return rays_rot[:, offset:offset + crop_h - 1, :]


def binned_rays(h_pano=16, w_pano=32):
    rays = generate_rays(h_pano, w_pano)
    return np.stack([rotate_rays(rays, a * np.pi / 180.0) for a in range(361)])


# ----------------------------------------------------------------------------
# Geometry helpers (grid_helper equivalent, plain JAX glue)
# ----------------------------------------------------------------------------
def haversine_distance(lat, lon, base_lat, base_lon):
    lat_r, lon_r = jnp.radians(lat), jnp.radians(lon)
    blat_r, blon_r = jnp.radians(base_lat), jnp.radians(base_lon)
    dlon = lon_r - blon_r
    dlat = lat_r - blat_r
    a = jnp.sin(dlat / 2) ** 2 + jnp.cos(blat_r) * jnp.cos(lat_r) * jnp.sin(dlon / 2) ** 2
    return 2.0 * jnp.arcsin(jnp.sqrt(a)) * (6367.0 * 1000.0)


def compass_bearing(lat, lon, base_lat, base_lon):
    lat_r, lon_r = jnp.radians(lat), jnp.radians(lon)
    blat_r, blon_r = jnp.radians(base_lat), jnp.radians(base_lon)
    dlon = blon_r - lon_r
    x = jnp.sin(dlon) * jnp.cos(blat_r)
    y = jnp.cos(lat_r) * jnp.sin(blat_r) - jnp.sin(lat_r) * jnp.cos(blat_r) * jnp.cos(dlon)
    b = jnp.degrees(jnp.arctan2(x, y))
    return jnp.radians((b + 360.0) % 360.0)


# ----------------------------------------------------------------------------
# Parameter glue: circular conv -> circulant matrix (encodes 'circular' padding)
# ----------------------------------------------------------------------------
def circ_conv_matrix(w, H, W):
    """w: (1, Cin, k, k)  ->  K: (Cin*H*W, H*W) with circular wrap on H and W."""
    _, cin, k, _ = w.shape
    p = (k - 1) // 2
    K = np.zeros((cin * H * W, H * W), dtype=np.float32)
    yo, xo = np.meshgrid(np.arange(H), np.arange(W), indexing="ij")
    out_idx = (yo * W + xo).reshape(-1)
    for c in range(cin):
        for ky in range(k):
            for kx in range(k):
                yi = (yo + ky - p) % H
                xi = (xo + kx - p) % W
                in_idx = c * H * W + (yi * W + xi).reshape(-1)
                K[in_idx, out_idx] += float(w[0, c, ky, kx])
    return K


# ----------------------------------------------------------------------------
# Pallas kernel: fused GeoAttention conv + chunked softmax + aggregation
# ----------------------------------------------------------------------------
def geo_attention_kernel(lhs_ref, k_ref, d_ref, pano_ref, feats_ref, w_ref, g_ref):
    # lhs_ref:   (1, P*NL, 3*HW) bf16  p-major orientation rays
    # k_ref:     (3*HW, HW)      bf16  folded circulant conv (orientation rows)
    # d_ref:     (1, P, NL, 1)   f32   distance term (already scaled by the
    #                                  folded distance-channel column sum)
    # pano_ref:  (1, P, HW)      f32   pano(max,mean) @ K_pano, per neighbor
    # feats_ref: (1, P, F, HW)   bf16  neighbor features, lane-dense (HW last)
    # w_ref:     (1, P, NL, HW)  bf16  attention weights out
    # g_ref:     (1, NL, F)      f32   aggregated grid features out
    _, P, NL, HW = w_ref.shape
    CS = 16 if NL % 16 == 0 else (8 if NL % 8 == 0 else NL)

    # Fused conv stack: one MXU matmul covering all (neighbor, location) rows.
    logits = jnp.dot(lhs_ref[0], k_ref[...],
                     preferred_element_type=jnp.float32)            # (P*NL, HW)
    logits = logits.reshape(P, NL, HW)

    feats = feats_ref[0]                                            # (P, F, HW)
    pano = pano_ref[0]                                              # (P, HW)

    # Chunk softmax + store + aggregation over grid locations so only a
    # (P, CS, HW) slab is live at a time (bounded vregs, overlapped stores).
    for c in range(NL // CS):
        c0 = c * CS
        lg = (logits[:, c0:c0 + CS, :]
              + d_ref[0, :, c0:c0 + CS, :]                          # (P, CS, 1)
              + pano[:, None, :])                                   # (P, 1, HW)

        # Stable softmax over (neighbor, h, w) per grid location, in f32.
        m = jnp.max(jnp.max(lg, axis=0), axis=-1, keepdims=True)    # (CS, 1)
        e = jnp.exp(lg - m[None, :, :])                             # (P, CS, HW)
        denom = jnp.sum(jnp.sum(e, axis=0), axis=-1, keepdims=True)  # (CS, 1)
        w = e * pl.reciprocal(denom, approx=False)[None, :, :]
        w_ref[0, :, c0:c0 + CS, :] = w.astype(w_ref.dtype)          # bf16 store

        # Aggregation: batched MXU contraction over HW, then reduce neighbors.
        gp = lax.dot_general(w.astype(feats.dtype), feats,
                             dimension_numbers=(((2,), (2,)), ((0,), (0,))),
                             preferred_element_type=jnp.float32)    # (P, CS, F)
        g_ref[0, c0:c0 + CS, :] = jnp.sum(gp, axis=0)


# ----------------------------------------------------------------------------
# Grid2d forward wrapper
# ----------------------------------------------------------------------------
def grid2d_forward(bbox, near_locs, near_feats, rays, K_orient, K_pano,
                   kd_scalar, grid_size=8):
    B, P, F, H, W = near_feats.shape
    NL = grid_size * grid_size
    HW = H * W
    CIN = 3 * HW
    rays_flat = rays.reshape(rays.shape[0], CIN)                    # (361, 3*HW)

    def prep(bbox_b, locs_b, feats_b):
        # grid_helper (haversine / bearing) + rays gather — plain JAX glue.
        ip = jnp.linspace(bbox_b[2], bbox_b[0], grid_size)   # max_lat -> min_lat
        jp = jnp.linspace(bbox_b[1], bbox_b[3], grid_size)   # min_lon -> max_lon
        II, JJ = jnp.meshgrid(ip, jp, indexing="ij")
        pix_lat = II.reshape(-1, 1)                          # (NL, 1)
        pix_lon = JJ.reshape(-1, 1)
        lat = locs_b[:, 0][None, :]                          # (1, P)
        lon = locs_b[:, 1][None, :]
        D = haversine_distance(lat, lon, pix_lat, pix_lon) / 100.0   # (NL, P)
        theta = compass_bearing(lat, lon, pix_lat, pix_lon)          # (NL, P)
        idx = jnp.clip(jnp.round(jnp.degrees(theta)).astype(jnp.int32), 0, 360)
        idx_pm = idx.T.reshape(-1)                           # (P*NL,) p-major
        lhs = rays_flat[idx_pm].astype(jnp.bfloat16)         # (P*NL, 3*HW)
        # Distance channel is spatially constant and circular padding makes its
        # folded column sum a single scalar -> f32 rank-1 update in the kernel.
        d_eff = (D.T * kd_scalar)[:, :, None].astype(jnp.float32)   # (P, NL, 1)
        pano_max = jnp.max(feats_b, axis=1)                  # (P, H, W)
        pano_mean = jnp.mean(feats_b, axis=1)
        pano = jnp.stack([pano_max, pano_mean], axis=1).reshape(P, 2 * HW)
        p_part = jnp.dot(pano, K_pano).astype(jnp.float32)   # (P, HW)
        feats_flat = feats_b.reshape(P, F, HW).astype(jnp.bfloat16)  # lane-dense
        return lhs, d_eff, p_part, feats_flat

    lhs_all, d_all, p_part_all, feats_all = jax.vmap(prep)(bbox, near_locs, near_feats)

    flops = 2 * B * (P * NL * CIN * HW + P * NL * HW * F)
    bytes_accessed = (lhs_all.size * 2 + K_orient.size * 2 + d_all.size * 4
                      + p_part_all.size * 4 + feats_all.size * 2
                      + B * P * NL * HW * 2 + B * NL * F * 4)

    w3, g = pl.pallas_call(
        geo_attention_kernel,
        out_shape=(jax.ShapeDtypeStruct((B, P, NL, HW), jnp.bfloat16),
                   jax.ShapeDtypeStruct((B, NL, F), jnp.float32)),
        grid=(B,),
        in_specs=[
            pl.BlockSpec((1, P * NL, CIN), lambda b: (b, 0, 0)),
            pl.BlockSpec((CIN, HW), lambda b: (0, 0)),
            pl.BlockSpec((1, P, NL, 1), lambda b: (b, 0, 0, 0)),
            pl.BlockSpec((1, P, HW), lambda b: (b, 0, 0)),
            pl.BlockSpec((1, P, F, HW), lambda b: (b, 0, 0, 0)),
        ],
        out_specs=(
            pl.BlockSpec((1, P, NL, HW), lambda b: (b, 0, 0, 0)),
            pl.BlockSpec((1, NL, F), lambda b: (b, 0, 0)),
        ),
        compiler_params=pltpu.CompilerParams(
            dimension_semantics=("parallel",)),
        cost_estimate=pl.CostEstimate(
            flops=int(flops),
            transcendentals=int(B * P * NL * HW),
            bytes_accessed=int(bytes_accessed)),
    )(lhs_all, K_orient, d_all, p_part_all, feats_all)

    grid_feats = g.reshape(B, grid_size, grid_size, F)
    # Layout plumbing to the reference (B, g, g, P, H, W) order; done on the
    # bf16 weights (half the traffic), cast back to f32 for API parity.
    attention = jnp.transpose(w3, (0, 2, 1, 3)).reshape(
        B, grid_size, grid_size, P, H, W).astype(jnp.float32)
    return grid_feats, attention


# ----------------------------------------------------------------------------
if __name__ == "__main__":
    # Small shapes: batch=2, neighbors=4, features=16, grid_size=8, pano 8x32
    B, P, F = 2, 4, 16
    grid_size = 8

    rays_np = binned_rays()               # (361, 3, 8, 32)
    H, W = rays_np.shape[2], rays_np.shape[3]
    HW = H * W
    rays = jnp.asarray(rays_np, dtype=jnp.float32)

    # --- deterministic GeoAttention parameters (input_size = 1+3+2 = 6) ------
    rng = np.random.RandomState(0)

    def conv_init(cin, k):
        bound = 1.0 / np.sqrt(cin * k * k)
        w = rng.uniform(-bound, bound, (1, cin, k, k)).astype(np.float32)
        b = rng.uniform(-bound, bound, (1,)).astype(np.float32)
        return w, b

    w1, b1 = conv_init(6, 3)
    w2, b2 = conv_init(6, 5)
    w3_, b3 = conv_init(6, 7)
    wf, bf = conv_init(3, 1)              # finalconv (1x1, 3 -> 1)

    # Fold conv1/2/3 (circular padding) + 1x1 finalconv into one circulant matrix
    K1 = circ_conv_matrix(w1, H, W)
    K2 = circ_conv_matrix(w2, H, W)
    K3 = circ_conv_matrix(w3_, H, W)
    fw = wf.reshape(3)
    K_eff = (fw[0] * K1 + fw[1] * K2 + fw[2] * K3).astype(np.float32)
    # Fused bias (bf + fw·[b1,b2,b3]) is constant over the softmax axes -> dropped.

    # Channel order in the fused input: [distance(1), orientation(3), pano(2)].
    K_orient = jnp.asarray(K_eff[HW:4 * HW], dtype=jnp.bfloat16)   # (3*HW, HW)
    K_pano = jnp.asarray(K_eff[4 * HW:6 * HW], dtype=jnp.float32)  # (2*HW, HW)
    # Circular padding -> distance-channel column sums are all the same scalar;
    # fold it into D in the wrapper (kept in f32, no bf16 column-sum row).
    kd_scalar = float(K_eff[:HW].sum(axis=0).mean())

    # --- deterministic inputs -------------------------------------------------
    key = jax.random.PRNGKey(0)
    kb, kl, kf = jax.random.split(key, 3)
    base = jax.random.uniform(kb, (B, 2), minval=-0.5, maxval=0.5)
    lat0 = 37.0 + base[:, 0] * 0.01
    lon0 = -122.0 + base[:, 1] * 0.01
    bbox = jnp.stack([lat0, lon0, lat0 + 0.01, lon0 + 0.01], axis=1)   # (B, 4)
    u = jax.random.uniform(kl, (B, P, 2))
    near_locs = jnp.stack([lat0[:, None] + 0.01 * u[..., 0],
                           lon0[:, None] + 0.01 * u[..., 1]], axis=-1)  # (B, P, 2)
    near_feats = jax.random.normal(kf, (B, P, F, H, W), dtype=jnp.float32)
    # overhead_feat is None (GeoAttention default overhead=False), so unused.

    grid_out, attn = grid2d_forward(bbox, near_locs, near_feats, rays,
                                    K_orient, K_pano, kd_scalar,
                                    grid_size=grid_size)
    jax.block_until_ready((grid_out, attn))
    assert grid_out.shape == (B, grid_size, grid_size, F)
    assert attn.shape == (B, grid_size, grid_size, P, H, W)
    # Softmax sanity: attention over (P,H,W) normalizes to ~1 per grid location.
    s = np.asarray(attn).reshape(B, grid_size * grid_size, -1).sum(-1)
    assert np.max(np.abs(s - 1.0)) < 5e-2
    print("KERNEL_OK")
</pallas_src>

<mosaic_0001>
module attributes {stable_mosaic.version = 11 : i64} {
  func.func @geo_attention_kernel(%arg0: i32, %arg1: memref<1x256x768xbf16, #tpu.memory_space<vmem>>, %arg2: memref<768x256xbf16, #tpu.memory_space<vmem>>, %arg3: memref<1x4x64x1xf32, #tpu.memory_space<vmem>>, %arg4: memref<1x4x256xf32, #tpu.memory_space<vmem>>, %arg5: memref<1x4x16x256xbf16, #tpu.memory_space<vmem>>, %arg6: memref<1x4x64x256xbf16, #tpu.memory_space<vmem>>, %arg7: memref<1x64x16xf32, #tpu.memory_space<vmem>>) attributes {dimension_semantics = [#tpu.dimension_semantics<parallel>], iteration_bounds = array<i64: 2>, scalar_prefetch = 0 : i64, scratch_operands = 0 : i64, tpu.core_type = #tpu.core_type<tc>, window_params = [{transform_indices = @transform_0, window_bounds = array<i64: 1, 256, 768>}, {pipeline_mode = #tpu.pipeline_mode<synchronous>, transform_indices = @transform_1, window_bounds = array<i64: 768, 256>}, {transform_indices = @transform_2, window_bounds = array<i64: 1, 4, 64, 1>}, {transform_indices = @transform_3, window_bounds = array<i64: 1, 4, 256>}, {transform_indices = @transform_4, window_bounds = array<i64: 1, 4, 16, 256>}, {transform_indices = @transform_5, window_bounds = array<i64: 1, 4, 64, 256>}, {transform_indices = @transform_6, window_bounds = array<i64: 1, 64, 16>}]} {
    %c0 = arith.constant 0 : index
    %c0_0 = arith.constant 0 : index
    %c0_1 = arith.constant 0 : index
    %0 = vector.load %arg1[%c0, %c0_0, %c0_1] : memref<1x256x768xbf16, #tpu.memory_space<vmem>>, vector<1x256x768xbf16>
    %1 = vector.shape_cast %0 : vector<1x256x768xbf16> to vector<256x768xbf16>
    %c0_2 = arith.constant 0 : index
    %c0_3 = arith.constant 0 : index
    %2 = vector.load %arg2[%c0_2, %c0_3] : memref<768x256xbf16, #tpu.memory_space<vmem>>, vector<768x256xbf16>
    %cst = arith.constant dense<0.000000e+00> : vector<256x256xf32>
    %3 = tpu.matmul %1, %2, %cst {dimension_numbers = #tpu.dot_dimension_numbers<[1], [0], [0], [1], [0, 0, 1, 1], [], []>} : vector<256x768xbf16>, vector<768x256xbf16>, vector<256x256xf32> -> vector<256x256xf32>
    %4 = vector.shape_cast %3 : vector<256x256xf32> to vector<4x64x256xf32>
    %c0_4 = arith.constant 0 : index
    %c0_5 = arith.constant 0 : index
    %c0_6 = arith.constant 0 : index
    %c0_7 = arith.constant 0 : index
    %5 = vector.load %arg5[%c0_4, %c0_5, %c0_6, %c0_7] : memref<1x4x16x256xbf16, #tpu.memory_space<vmem>>, vector<1x4x16x256xbf16>
    %6 = vector.shape_cast %5 : vector<1x4x16x256xbf16> to vector<4x16x256xbf16>
    %c0_8 = arith.constant 0 : index
    %c0_9 = arith.constant 0 : index
    %c0_10 = arith.constant 0 : index
    %7 = vector.load %arg4[%c0_8, %c0_9, %c0_10] : memref<1x4x256xf32, #tpu.memory_space<vmem>>, vector<1x4x256xf32>
    %8 = vector.shape_cast %7 : vector<1x4x256xf32> to vector<4x256xf32>
    %9 = vector.extract_strided_slice %4 {offsets = [0, 0, 0], sizes = [4, 16, 256], strides = [1, 1, 1]} : vector<4x64x256xf32> to vector<4x16x256xf32>
    %c0_11 = arith.constant 0 : index
    %c0_12 = arith.constant 0 : index
    %c0_13 = arith.constant 0 : index
    %c0_14 = arith.constant 0 : index
    %10 = vector.load %arg3[%c0_11, %c0_12, %c0_13, %c0_14] : memref<1x4x64x1xf32, #tpu.memory_space<vmem>>, vector<1x4x16x1xf32>
    %11 = vector.shape_cast %10 : vector<1x4x16x1xf32> to vector<4x16x1xf32>
    %12 = vector.broadcast %11 : vector<4x16x1xf32> to vector<4x16x256xf32>
    %13 = arith.addf %9, %12 : vector<4x16x256xf32>
    %14 = vector.shape_cast %8 : vector<4x256xf32> to vector<4x1x256xf32>
    %15 = vector.broadcast %14 : vector<4x1x256xf32> to vector<4x16x256xf32>
    %16 = arith.addf %13, %15 : vector<4x16x256xf32>
    %cst_15 = arith.constant dense<0xFF800000> : vector<16x256xf32>
    %17 = vector.multi_reduction <maximumf>, %16, %cst_15 [0] : vector<4x16x256xf32> to vector<16x256xf32>
    %cst_16 = arith.constant dense<0xFF800000> : vector<16xf32>
    %18 = vector.multi_reduction <maximumf>, %17, %cst_16 [1] : vector<16x256xf32> to vector<16xf32>
    %19 = vector.shape_cast %18 : vector<16xf32> to vector<16x1xf32>
    %20 = vector.shape_cast %19 : vector<16x1xf32> to vector<1x16x1xf32>
    %21 = vector.broadcast %20 : vector<1x16x1xf32> to vector<4x16x256xf32>
    %22 = arith.subf %16, %21 : vector<4x16x256xf32>
    %23 = math.exp %22 : vector<4x16x256xf32>
    %cst_17 = arith.constant dense<0.000000e+00> : vector<16x256xf32>
    %24 = vector.multi_reduction <add>, %23, %cst_17 [0] : vector<4x16x256xf32> to vector<16x256xf32>
    %cst_18 = arith.constant dense<0.000000e+00> : vector<16xf32>
    %25 = vector.multi_reduction <add>, %24, %cst_18 [1] : vector<16x256xf32> to vector<16xf32>
    %26 = vector.shape_cast %25 : vector<16xf32> to vector<16x1xf32>
    %27 = tpu.reciprocal %26 : vector<16x1xf32> -> vector<16x1xf32>
    %28 = vector.shape_cast %27 : vector<16x1xf32> to vector<1x16x1xf32>
    %29 = vector.broadcast %28 : vector<1x16x1xf32> to vector<4x16x256xf32>
    %30 = arith.mulf %23, %29 : vector<4x16x256xf32>
    %31 = arith.truncf %30 : vector<4x16x256xf32> to vector<4x16x256xbf16>
    %c0_19 = arith.constant 0 : index
    %c0_20 = arith.constant 0 : index
    %c0_21 = arith.constant 0 : index
    %c0_22 = arith.constant 0 : index
    %32 = vector.load %arg6[%c0_19, %c0_20, %c0_21, %c0_22] : memref<1x4x64x256xbf16, #tpu.memory_space<vmem>>, vector<1x4x16x256xbf16>
    %33 = vector.shape_cast %32 : vector<1x4x16x256xbf16> to vector<4x16x256xbf16>
    %34 = vector.shape_cast %31 : vector<4x16x256xbf16> to vector<1x4x16x256xbf16>
    tpu.vector_store %arg6[%c0_19, %c0_20, %c0_21, %c0_22], %34 {strides = array<i32>} : memref<1x4x64x256xbf16, #tpu.memory_space<vmem>>, vector<1x4x16x256xbf16>,
    %35 = arith.truncf %30 : vector<4x16x256xf32> to vector<4x16x256xbf16>
    %cst_23 = arith.constant dense<0.000000e+00> : vector<4x16x16xf32>
    %36 = tpu.matmul %35, %6, %cst_23 {dimension_numbers = #tpu.dot_dimension_numbers<[2], [2], [1], [1], [0, 0, 0, 1, 1, 1], [0], [0]>} : vector<4x16x256xbf16>, vector<4x16x256xbf16>, vector<4x16x16xf32> -> vector<4x16x16xf32>
    %cst_24 = arith.constant dense<0.000000e+00> : vector<16x16xf32>
    %37 = vector.multi_reduction <add>, %36, %cst_24 [0] : vector<4x16x16xf32> to vector<16x16xf32>
    %c0_25 = arith.constant 0 : index
    %c0_26 = arith.constant 0 : index
    %c0_27 = arith.constant 0 : index
    %38 = vector.load %arg7[%c0_25, %c0_26, %c0_27] : memref<1x64x16xf32, #tpu.memory_space<vmem>>, vector<1x16x16xf32>
    %39 = vector.shape_cast %38 : vector<1x16x16xf32> to vector<16x16xf32>
    %40 = vector.shape_cast %37 : vector<16x16xf32> to vector<1x16x16xf32>
    tpu.vector_store %arg7[%c0_25, %c0_26, %c0_27], %40 {strides = array<i32>} : memref<1x64x16xf32, #tpu.memory_space<vmem>>, vector<1x16x16xf32>,
    %41 = vector.extract_strided_slice %4 {offsets = [0, 16, 0], sizes = [4, 16, 256], strides = [1, 1, 1]} : vector<4x64x256xf32> to vector<4x16x256xf32>
    %c0_28 = arith.constant 0 : index
    %c0_29 = arith.constant 0 : index
    %c16 = arith.constant 16 : index
    %c0_30 = arith.constant 0 : index
    %42 = vector.load %arg3[%c0_28, %c0_29, %c16, %c0_30] : memref<1x4x64x1xf32, #tpu.memory_space<vmem>>, vector<1x4x16x1xf32>
    %43 = vector.shape_cast %42 : vector<1x4x16x1xf32> to vector<4x16x1xf32>
    %44 = vector.broadcast %43 : vector<4x16x1xf32> to vector<4x16x256xf32>
    %45 = arith.addf %41, %44 : vector<4x16x256xf32>
    %46 = vector.shape_cast %8 : vector<4x256xf32> to vector<4x1x256xf32>
    %47 = vector.broadcast %46 : vector<4x1x256xf32> to vector<4x16x256xf32>
    %48 = arith.addf %45, %47 : vector<4x16x256xf32>
    %cst_31 = arith.constant dense<0xFF800000> : vector<16x256xf32>
    %49 = vector.multi_reduction <maximumf>, %48, %cst_31 [0] : vector<4x16x256xf32> to vector<16x256xf32>
    %cst_32 = arith.constant dense<0xFF800000> : vector<16xf32>
    %50 = vector.multi_reduction <maximumf>, %49, %cst_32 [1] : vector<16x256xf32> to vector<16xf32>
    %51 = vector.shape_cast %50 : vector<16xf32> to vector<16x1xf32>
    %52 = vector.shape_cast %51 : vector<16x1xf32> to vector<1x16x1xf32>
    %53 = vector.broadcast %52 : vector<1x16x1xf32> to vector<4x16x256xf32>
    %54 = arith.subf %48, %53 : vector<4x16x256xf32>
    %55 = math.exp %54 : vector<4x16x256xf32>
    %cst_33 = arith.constant dense<0.000000e+00> : vector<16x256xf32>
    %56 = vector.multi_reduction <add>, %55, %cst_33 [0] : vector<4x16x256xf32> to vector<16x256xf32>
    %cst_34 = arith.constant dense<0.000000e+00> : vector<16xf32>
    %57 = vector.multi_reduction <add>, %56, %cst_34 [1] : vector<16x256xf32> to vector<16xf32>
    %58 = vector.shape_cast %57 : vector<16xf32> to vector<16x1xf32>
    %59 = tpu.reciprocal %58 : vector<16x1xf32> -> vector<16x1xf32>
    %60 = vector.shape_cast %59 : vector<16x1xf32> to vector<1x16x1xf32>
    %61 = vector.broadcast %60 : vector<1x16x1xf32> to vector<4x16x256xf32>
    %62 = arith.mulf %55, %61 : vector<4x16x256xf32>
    %63 = arith.truncf %62 : vector<4x16x256xf32> to vector<4x16x256xbf16>
    %c0_35 = arith.constant 0 : index
    %c0_36 = arith.constant 0 : index
    %c16_37 = arith.constant 16 : index
    %c0_38 = arith.constant 0 : index
    %64 = vector.load %arg6[%c0_35, %c0_36, %c16_37, %c0_38] : memref<1x4x64x256xbf16, #tpu.memory_space<vmem>>, vector<1x4x16x256xbf16>
    %65 = vector.shape_cast %64 : vector<1x4x16x256xbf16> to vector<4x16x256xbf16>
    %66 = vector.shape_cast %63 : vector<4x16x256xbf16> to vector<1x4x16x256xbf16>
    tpu.vector_store %arg6[%c0_35, %c0_36, %c16_37, %c0_38], %66 {strides = array<i32>} : memref<1x4x64x256xbf16, #tpu.memory_space<vmem>>, vector<1x4x16x256xbf16>,
    %67 = arith.truncf %62 : vector<4x16x256xf32> to vector<4x16x256xbf16>
    %cst_39 = arith.constant dense<0.000000e+00> : vector<4x16x16xf32>
    %68 = tpu.matmul %67, %6, %cst_39 {dimension_numbers = #tpu.dot_dimension_numbers<[2], [2], [1], [1], [0, 0, 0, 1, 1, 1], [0], [0]>} : vector<4x16x256xbf16>, vector<4x16x256xbf16>, vector<4x16x16xf32> -> vector<4x16x16xf32>
    %cst_40 = arith.constant dense<0.000000e+00> : vector<16x16xf32>
    %69 = vector.multi_reduction <add>, %68, %cst_40 [0] : vector<4x16x16xf32> to vector<16x16xf32>
    %c0_41 = arith.constant 0 : index
    %c16_42 = arith.constant 16 : index
    %c0_43 = arith.constant 0 : index
    %70 = vector.load %arg7[%c0_41, %c16_42, %c0_43] : memref<1x64x16xf32, #tpu.memory_space<vmem>>, vector<1x16x16xf32>
    %71 = vector.shape_cast %70 : vector<1x16x16xf32> to vector<16x16xf32>
    %72 = vector.shape_cast %69 : vector<16x16xf32> to vector<1x16x16xf32>
    tpu.vector_store %arg7[%c0_41, %c16_42, %c0_43], %72 {strides = array<i32>} : memref<1x64x16xf32, #tpu.memory_space<vmem>>, vector<1x16x16xf32>,
    %73 = vector.extract_strided_slice %4 {offsets = [0, 32, 0], sizes = [4, 16, 256], strides = [1, 1, 1]} : vector<4x64x256xf32> to vector<4x16x256xf32>
    %c0_44 = arith.constant 0 : index
    %c0_45 = arith.constant 0 : index
    %c32 = arith.constant 32 : index
    %c0_46 = arith.constant 0 : index
    %74 = vector.load %arg3[%c0_44, %c0_45, %c32, %c0_46] : memref<1x4x64x1xf32, #tpu.memory_space<vmem>>, vector<1x4x16x1xf32>
    %75 = vector.shape_cast %74 : vector<1x4x16x1xf32> to vector<4x16x1xf32>
    %76 = vector.broadcast %75 : vector<4x16x1xf32> to vector<4x16x256xf32>
    %77 = arith.addf %73, %76 : vector<4x16x256xf32>
    %78 = vector.shape_cast %8 : vector<4x256xf32> to vector<4x1x256xf32>
    %79 = vector.broadcast %78 : vector<4x1x256xf32> to vector<4x16x256xf32>
    %80 = arith.addf %77, %79 : vector<4x16x256xf32>
    %cst_47 = arith.constant dense<0xFF800000> : vector<16x256xf32>
    %81 = vector.multi_reduction <maximumf>, %80, %cst_47 [0] : vector<4x16x256xf32> to vector<16x256xf32>
    %cst_48 = arith.constant dense<0xFF800000> : vector<16xf32>
    %82 = vector.multi_reduction <maximumf>, %81, %cst_48 [1] : vector<16x256xf32> to vector<16xf32>
    %83 = vector.shape_cast %82 : vector<16xf32> to vector<16x1xf32>
    %84 = vector.shape_cast %83 : vector<16x1xf32> to vector<1x16x1xf32>
    %85 = vector.broadcast %84 : vector<1x16x1xf32> to vector<4x16x256xf32>
    %86 = arith.subf %80, %85 : vector<4x16x256xf32>
    %87 = math.exp %86 : vector<4x16x256xf32>
    %cst_49 = arith.constant dense<0.000000e+00> : vector<16x256xf32>
    %88 = vector.multi_reduction <add>, %87, %cst_49 [0] : vector<4x16x256xf32> to vector<16x256xf32>
    %cst_50 = arith.constant dense<0.000000e+00> : vector<16xf32>
    %89 = vector.multi_reduction <add>, %88, %cst_50 [1] : vector<16x256xf32> to vector<16xf32>
    %90 = vector.shape_cast %89 : vector<16xf32> to vector<16x1xf32>
    %91 = tpu.reciprocal %90 : vector<16x1xf32> -> vector<16x1xf32>
    %92 = vector.shape_cast %91 : vector<16x1xf32> to vector<1x16x1xf32>
    %93 = vector.broadcast %92 : vector<1x16x1xf32> to vector<4x16x256xf32>
    %94 = arith.mulf %87, %93 : vector<4x16x256xf32>
    %95 = arith.truncf %94 : vector<4x16x256xf32> to vector<4x16x256xbf16>
    %c0_51 = arith.constant 0 : index
    %c0_52 = arith.constant 0 : index
    %c32_53 = arith.constant 32 : index
    %c0_54 = arith.constant 0 : index
    %96 = vector.load %arg6[%c0_51, %c0_52, %c32_53, %c0_54] : memref<1x4x64x256xbf16, #tpu.memory_space<vmem>>, vector<1x4x16x256xbf16>
    %97 = vector.shape_cast %96 : vector<1x4x16x256xbf16> to vector<4x16x256xbf16>
    %98 = vector.shape_cast %95 : vector<4x16x256xbf16> to vector<1x4x16x256xbf16>
    tpu.vector_store %arg6[%c0_51, %c0_52, %c32_53, %c0_54], %98 {strides = array<i32>} : memref<1x4x64x256xbf16, #tpu.memory_space<vmem>>, vector<1x4x16x256xbf16>,
    %99 = arith.truncf %94 : vector<4x16x256xf32> to vector<4x16x256xbf16>
    %cst_55 = arith.constant dense<0.000000e+00> : vector<4x16x16xf32>
    %100 = tpu.matmul %99, %6, %cst_55 {dimension_numbers = #tpu.dot_dimension_numbers<[2], [2], [1], [1], [0, 0, 0, 1, 1, 1], [0], [0]>} : vector<4x16x256xbf16>, vector<4x16x256xbf16>, vector<4x16x16xf32> -> vector<4x16x16xf32>
    %cst_56 = arith.constant dense<0.000000e+00> : vector<16x16xf32>
    %101 = vector.multi_reduction <add>, %100, %cst_56 [0] : vector<4x16x16xf32> to vector<16x16xf32>
    %c0_57 = arith.constant 0 : index
    %c32_58 = arith.constant 32 : index
    %c0_59 = arith.constant 0 : index
    %102 = vector.load %arg7[%c0_57, %c32_58, %c0_59] : memref<1x64x16xf32, #tpu.memory_space<vmem>>, vector<1x16x16xf32>
    %103 = vector.shape_cast %102 : vector<1x16x16xf32> to vector<16x16xf32>
    %104 = vector.shape_cast %101 : vector<16x16xf32> to vector<1x16x16xf32>
    tpu.vector_store %arg7[%c0_57, %c32_58, %c0_59], %104 {strides = array<i32>} : memref<1x64x16xf32, #tpu.memory_space<vmem>>, vector<1x16x16xf32>,
    %105 = vector.extract_strided_slice %4 {offsets = [0, 48, 0], sizes = [4, 16, 256], strides = [1, 1, 1]} : vector<4x64x256xf32> to vector<4x16x256xf32>
    %c0_60 = arith.constant 0 : index
    %c0_61 = arith.constant 0 : index
    %c48 = arith.constant 48 : index
    %c0_62 = arith.constant 0 : index
    %106 = vector.load %arg3[%c0_60, %c0_61, %c48, %c0_62] : memref<1x4x64x1xf32, #tpu.memory_space<vmem>>, vector<1x4x16x1xf32>
    %107 = vector.shape_cast %106 : vector<1x4x16x1xf32> to vector<4x16x1xf32>
    %108 = vector.broadcast %107 : vector<4x16x1xf32> to vector<4x16x256xf32>
    %109 = arith.addf %105, %108 : vector<4x16x256xf32>
    %110 = vector.shape_cast %8 : vector<4x256xf32> to vector<4x1x256xf32>
    %111 = vector.broadcast %110 : vector<4x1x256xf32> to vector<4x16x256xf32>
    %112 = arith.addf %109, %111 : vector<4x16x256xf32>
    %cst_63 = arith.constant dense<0xFF800000> : vector<16x256xf32>
    %113 = vector.multi_reduction <maximumf>, %112, %cst_63 [0] : vector<4x16x256xf32> to vector<16x256xf32>
    %cst_64 = arith.constant dense<0xFF800000> : vector<16xf32>
    %114 = vector.multi_reduction <maximumf>, %113, %cst_64 [1] : vector<16x256xf32> to vector<16xf32>
    %115 = vector.shape_cast %114 : vector<16xf32> to vector<16x1xf32>
    %116 = vector.shape_cast %115 : vector<16x1xf32> to vector<1x16x1xf32>
    %117 = vector.broadcast %116 : vector<1x16x1xf32> to vector<4x16x256xf32>
    %118 = arith.subf %112, %117 : vector<4x16x256xf32>
    %119 = math.exp %118 : vector<4x16x256xf32>
    %cst_65 = arith.constant dense<0.000000e+00> : vector<16x256xf32>
    %120 = vector.multi_reduction <add>, %119, %cst_65 [0] : vector<4x16x256xf32> to vector<16x256xf32>
    %cst_66 = arith.constant dense<0.000000e+00> : vector<16xf32>
    %121 = vector.multi_reduction <add>, %120, %cst_66 [1] : vector<16x256xf32> to vector<16xf32>
    %122 = vector.shape_cast %121 : vector<16xf32> to vector<16x1xf32>
    %123 = tpu.reciprocal %122 : vector<16x1xf32> -> vector<16x1xf32>
    %124 = vector.shape_cast %123 : vector<16x1xf32> to vector<1x16x1xf32>
    %125 = vector.broadcast %124 : vector<1x16x1xf32> to vector<4x16x256xf32>
    %126 = arith.mulf %119, %125 : vector<4x16x256xf32>
    %127 = arith.truncf %126 : vector<4x16x256xf32> to vector<4x16x256xbf16>
    %c0_67 = arith.constant 0 : index
    %c0_68 = arith.constant 0 : index
    %c48_69 = arith.constant 48 : index
    %c0_70 = arith.constant 0 : index
    %128 = vector.load %arg6[%c0_67, %c0_68, %c48_69, %c0_70] : memref<1x4x64x256xbf16, #tpu.memory_space<vmem>>, vector<1x4x16x256xbf16>
    %129 = vector.shape_cast %128 : vector<1x4x16x256xbf16> to vector<4x16x256xbf16>
    %130 = vector.shape_cast %127 : vector<4x16x256xbf16> to vector<1x4x16x256xbf16>
    tpu.vector_store %arg6[%c0_67, %c0_68, %c48_69, %c0_70], %130 {strides = array<i32>} : memref<1x4x64x256xbf16, #tpu.memory_space<vmem>>, vector<1x4x16x256xbf16>,
    %131 = arith.truncf %126 : vector<4x16x256xf32> to vector<4x16x256xbf16>
    %cst_71 = arith.constant dense<0.000000e+00> : vector<4x16x16xf32>
    %132 = tpu.matmul %131, %6, %cst_71 {dimension_numbers = #tpu.dot_dimension_numbers<[2], [2], [1], [1], [0, 0, 0, 1, 1, 1], [0], [0]>} : vector<4x16x256xbf16>, vector<4x16x256xbf16>, vector<4x16x16xf32> -> vector<4x16x16xf32>
    %cst_72 = arith.constant dense<0.000000e+00> : vector<16x16xf32>
    %133 = vector.multi_reduction <add>, %132, %cst_72 [0] : vector<4x16x16xf32> to vector<16x16xf32>
    %c0_73 = arith.constant 0 : index
    %c48_74 = arith.constant 48 : index
    %c0_75 = arith.constant 0 : index
    %134 = vector.load %arg7[%c0_73, %c48_74, %c0_75] : memref<1x64x16xf32, #tpu.memory_space<vmem>>, vector<1x16x16xf32>
    %135 = vector.shape_cast %134 : vector<1x16x16xf32> to vector<16x16xf32>
    %136 = vector.shape_cast %133 : vector<16x16xf32> to vector<1x16x16xf32>
    tpu.vector_store %arg7[%c0_73, %c48_74, %c0_75], %136 {strides = array<i32>} : memref<1x64x16xf32, #tpu.memory_space<vmem>>, vector<1x16x16xf32>,
    return
  }
  func.func @transform_0(%arg0: i32) -> (i32, i32, i32) {
    %c0_i32 = arith.constant 0 : i32
    %c0_i32_0 = arith.constant 0 : i32
    %c0_i32_1 = arith.constant 0 : i32
    return %arg0, %c0_i32, %c0_i32_0 : i32, i32, i32
  }
  func.func @transform_1(%arg0: i32) -> (i32, i32) {
    %c0_i32 = arith.constant 0 : i32
    %c0_i32_0 = arith.constant 0 : i32
    %c0_i32_1 = arith.constant 0 : i32
    return %c0_i32, %c0_i32_0 : i32, i32
  }
  func.func @transform_2(%arg0: i32) -> (i32, i32, i32, i32) {
    %c0_i32 = arith.constant 0 : i32
    %c0_i32_0 = arith.constant 0 : i32
    %c0_i32_1 = arith.constant 0 : i32
    %c0_i32_2 = arith.constant 0 : i32
    return %arg0, %c0_i32, %c0_i32_0, %c0_i32_1 : i32, i32, i32, i32
  }
  func.func @transform_3(%arg0: i32) -> (i32, i32, i32) {
    %c0_i32 = arith.constant 0 : i32
    %c0_i32_0 = arith.constant 0 : i32
    %c0_i32_1 = arith.constant 0 : i32
    return %arg0, %c0_i32, %c0_i32_0 : i32, i32, i32
  }
  func.func @transform_4(%arg0: i32) -> (i32, i32, i32, i32) {
    %c0_i32 = arith.constant 0 : i32
    %c0_i32_0 = arith.constant 0 : i32
    %c0_i32_1 = arith.constant 0 : i32
    %c0_i32_2 = arith.constant 0 : i32
    return %arg0, %c0_i32, %c0_i32_0, %c0_i32_1 : i32, i32, i32, i32
  }
  func.func @transform_5(%arg0: i32) -> (i32, i32, i32, i32) {
    %c0_i32 = arith.constant 0 : i32
    %c0_i32_0 = arith.constant 0 : i32
    %c0_i32_1 = arith.constant 0 : i32
    %c0_i32_2 = arith.constant 0 : i32
    return %arg0, %c0_i32, %c0_i32_0, %c0_i32_1 : i32, i32, i32, i32
  }
  func.func @transform_6(%arg0: i32) -> (i32, i32, i32) {
    %c0_i32 = arith.constant 0 : i32
    %c0_i32_0 = arith.constant 0 : i32
    %c0_i32_1 = arith.constant 0 : i32
    return %arg0, %c0_i32, %c0_i32_0 : i32, i32, i32
  }
}

</mosaic_0001>

<bundles_post_ra>
// kernel: tpu_custom_call.1
= control target key start
LH: loop header
LB: loop body
LE: loop exit
PB: predicated region body
PF: predicated region fallthrough
CT: control target
= control target key end

     0   :  { %s8046_s0 = inlined_call_operand.hbm [shape: bf16[2,256,768], index: 0, kind: input, shape index: {}]   ;;  %s8047_s1 = inlined_call_operand.hbm [shape: bf16[768,256], index: 1, kind: input, shape index: {}]   ;;  %s8048_s2 = inlined_call_operand.vmem [shape: f32[2,4,64,1], index: 2, kind: input, shape index: {}]   ;;  %s8049_s3 = inlined_call_operand.vmem [shape: f32[2,4,256], index: 3, kind: input, shape index: {}]   ;;  %s8050_s4 = inlined_call_operand.vmem [shape: bf16[2,4,16,256], index: 4, kind: input, shape index: {}]   ;;  %s8051_s5 = inlined_call_operand.hbm [shape: bf16[2,4,64,256], index: 5, kind: output, shape index: {0}]   ;;  %s8052_s6 = inlined_call_operand.vmem [shape: f32[2,64,16], index: 6, kind: output, shape index: {1}]  }
   0x1   :  { %8175 = sst [smem:[#allocation101_spill]] %s8047_s1 }
   0x2   :  { %12 = vsyncpa [#allocation3], 0 }
   0x3   :  { %14 = vsyncpa [#allocation3 + $0x1], 0 }
   0x4   :  { %15 = vsyncpa [#allocation6], 0 }
   0x5   :  { %16 = vsyncpa [#allocation4], 0 }
   0x6   :  { %18 = vsyncpa [#allocation4 + $0x1], 0  ;;  %s5814_s21 = smov 0   ;;  %s5816_s22 = smov 0  }
   0x7   :  { %s5818_s23 = smov 0   ;;  %s5820_s24 = smov 0  }
   0x8 LB: > { %s5835_s25 = sadd.s32 4294967295, %s5769_s24   ;;  %s4398_s26 = sadd.s32 4294967294, %s5769_s24   ;;  %s5769_s24 = sphi %s5820_s24, %s8533_s24   ;;  %s5765_s23 = sphi %s5818_s23, %s8532_s23   ;;  %s5761_s22 = sphi %s5816_s22, %s8531_s22   ;;  %s5757_s21 = sphi %s5814_s21, %s8530_s21  }
   0x9   : > { %p44_p0 = scmp.ne.s32.totalorder %s5761_s22, %s5757_s21  ;;  %p45_p1 = scmp.eq.s32.totalorder %s5835_s25, 0 }
   0xa   : > { %p167_p2 = scmp.eq.s32.totalorder %s5835_s25, 1  ;;  %p173_p3 = scmp.eq.s32.totalorder %s4398_s26, 1 }
   0xb   : > { %p5844_p4 = por %p45_p1, %p44_p0  ;;  %p4399_p5 = scmp.ge.s32.totalorder %s5769_s24, 1 }
   0xc   : > { %p5849_p6 = por %p173_p3, %p44_p0  ;;  %p206_p7 = scmp.lt.s32.totalorder %s5769_s24, 3 }
   0xd   : > { %s8178_s1 = sld [smem:[#allocation101_spill]]  ;;  %s5771_s9 = smov [#allocation5]  }
   0xe   : > { %p5857_p8 = pnand %p4399_p5, %p206_p7  ;;  %s219_s10 = sshll.u32 %s5771_s9, 4  ;;  %s220_s10 = int_to_ptr.vmem [resolvable:$true] %s219_s10 }
   0xf   : > { %s5867_s11 = sadd.s32 1, %s5769_s24   ;;  %s5772_s12 = smov 128  }
  0x10   : > { %p5435_p9 = pneg %p5857_p8  ;;  %s5773_s13 = smov 8  }
  0x11   : > { %s28_s14 = ssub.s32 %s5769_s24, %s5867_s11  ;;  %s31_s15 = sadd.s32 1, %s5765_s23 }
  0x12   : > { %p5436_p10 = pnand %p5435_p9, %p45_p1  ;;  %p29_p12 = scmp.eq.s32.totalorder %s28_s14, 0 }
  0x13   : > { %s217_s7 = sshll.u32 %s8178_s1, 4  ;;  %p38_p13 = scmp.ne.s32.totalorder %s5765_s23, %s5761_s22  ;;  %s218_s7 = int_to_ptr.hbm [resolvable:$true] %s217_s7 }
  0x14   : > { %5438 = dma.hbm_to_vmem [thread:$0]  (!%p5436_p10), %s218_s7, 12288, %s220_s10, [#allocation6], %s5772_s12, %s5772_s12, %s5773_s13  }
  0x15   : > { %p39_p0 = scmp.eq.s32.totalorder %s5769_s24, 0  ;;  %p5448_p3 = scmp.lt.s32.totalorder %s5769_s24, 2 }
  0x16   : > { %s5877_s16 = scalar_select %p29_p12, %s5765_s23, %s31_s15  }
  0x17   : > { %p40_p5 = por %p39_p0, %p38_p13  ;;  %p5881_p7 = por %p167_p2, %p38_p13 }
  0x18   : > { %8180 = sst [smem:[#allocation11_spill]] %s5877_s16  ;;  %s233_s18 = sand.u32 1, %s5765_s23  }
  0x19   : > { %s5425_s19 = smul.u32 768, %s5769_s24  ;;  %p5890_p9 = pnand %p5448_p3, %p40_p5 }
  0x1a   : > { %s5424_s20 = smul.u32 768, %s233_s18  ;;  %s234_s13 = scalar_lea.sflag [#allocation3], %s233_s18 }
  0x1b   : > { %s242_s30 = scalar_lea.hbm %s8046_s0, %s5425_s19  ;;  %p5673_p10 = pneg %p5890_p9 }
  0x1c   : > { %s243_s9 = sshll.u32 %s242_s30, 4  ;;  %s237_s10 = scalar_lea.vmem [#allocation2], %s5424_s20  ;;  %s244_s9 = int_to_ptr.hbm [resolvable:$true] %s243_s9 }
  0x1d   : > { %s245_s12 = sshll.u32 %s237_s10, 4  ;;  %s5669_s14 = sshra.s32 %s244_s9, 4  ;;  %s246_s12 = int_to_ptr.vmem [resolvable:$true] %s245_s12  ;;  %s5670_s14 = int_to_ptr.hbm [resolvable:$true] %s5669_s14 }
  0x1e   : > { %s5671_s15 = scalar_lea.hbm %s5670_s14, 768  ;;  %s5676_s29 = scalar_lea.hbm %s8046_s0, 1536 }
  0x1f   : > { %p5672_p2 = scmp.ne.s32.totalorder %s5670_s14, %s5671_s15  ;;  %p5677_p0 = scmp.lt.s32.totalorder %s5670_s14, %s8046_s0 }
  0x20   : > { %p5678_p3 = scmp.lt.s32.totalorder %s5676_s29, %s5671_s15 }
  0x21   : > { %p5674_p12 = pnand %p5673_p10, %p5672_p2 }
  0x22   : > { %p5679_p5 = por %p5678_p3, %p5677_p0 }
  0x23   : > { %p5675_p13 = pneg %p5674_p12 }
  0x25   : > { %p5680_p11 = pnand %p5679_p5, %p5675_p13 }
  0x27   : > { %5683 = shalt.err (!%p5680_p11)
}
  0x28   : > { %s5774_s18 = smov 384   ;;  %s5775_s20 = smov 24  }
  0x29   : > { %5442 = dma.hbm_to_vmem [thread:$0]  (!%p5890_p9), %s244_s9, 12288, %s246_s12, %s234_s13, %s5774_s18, %s5774_s18, %s5775_s20  }
  0x2a   : > { %281 = sbr.rel (%p5857_p8) target bundleno = 1563 (0x61b), region = 40 }
  0x2f   : > { %s5907_s30 = sand.u32 1, %s5761_s22  }
  0x30   : > { %s5426_s1 = smul.u32 768, %s5907_s30  ;;  %s284_s16 = scalar_lea.sflag [#allocation3], %s5907_s30 }
  0x32   : > { %s5911_s10 = scalar_lea.vmem [#allocation2], %s5426_s1 }
  0x33   : > { %5744 = dma.done.wait (%p5844_p4), %s284_s16, 12288  }
  0x34   : > { %5746 = vsyncadd (%p5844_p4), %s284_s16, 4294955008 }
  0x35   : > { %5748 = dma.done.wait (%p45_p1), [#allocation6], 12288  }
  0x36   : > { %5750 = vsyncadd (%p45_p1), [#allocation6], 4294955008  ;;  %v4856_v0 = vld [vmem:[#allocation5 + $0x70] sm:$0xf]  ;;  %v5334_v1 = vld [vmem:[#allocation5 + $0x74] sm:$0xf0] }
  0x37   : > { %v4920_v2 = vld [vmem:[#allocation5 + $0xf0] sm:$0xf]  ;;  %v4857_v3 = vor.u32 %v5334_v1, %v4856_v0  ;;  %v5350_v4 = vld [vmem:[#allocation5 + $0xf4] sm:$0xf0]  ;;  %v4848_v11 = vld [vmem:[#allocation5 + $0x60] sm:$0xf] }
  0x38   : > { %v4984_v5 = vld [vmem:[#allocation5 + $0x170] sm:$0xf]  ;;  %v5366_v6 = vld [vmem:[#allocation5 + $0x174] sm:$0xf0]  ;;  %v4921_v7 = vor.u32 %v5350_v4, %v4920_v2  ;;  %v5332_v13 = vld [vmem:[#allocation5 + $0x64] sm:$0xf0] }
  0x39   : > { %v4985_v8 = vor.u32 %v5366_v6, %v4984_v5  ;;  %v5048_v9 = vld [vmem:[#allocation5 + $0x1f0] sm:$0xf]  ;;  %v5382_v10 = vld [vmem:[#allocation5 + $0x1f4] sm:$0xf0]  ;;  %1515 = vmatpush.bf16.msra.mxu0 %v4857_v3  ;;  %v4912_v14 = vld [vmem:[#allocation5 + $0xe0] sm:$0xf]  ;;  %v4849_v16 = vor.u32 %v5332_v13, %v4848_v11 }
  0x3a   : > { %v5049_v12 = vor.u32 %v5382_v10, %v5048_v9  ;;  %v5348_v15 = vld [vmem:[#allocation5 + $0xe4] sm:$0xf0]  ;;  %1604 = vmatpush.bf16.msra.mxu1 %v4921_v7  ;;  %v4976_v18 = vld [vmem:[#allocation5 + $0x160] sm:$0xf]  ;;  %v4840_v23 = vld [vmem:[#allocation5 + $0x50] sm:$0xf] }
  0x3b   : > { %1693 = vmatpush.bf16.msra.mxu2 %v4985_v8  ;;  %v4913_v17 = vor.u32 %v5348_v15, %v4912_v14  ;;  %v5364_v19 = vld [vmem:[#allocation5 + $0x164] sm:$0xf0]  ;;  %v5040_v20 = vld [vmem:[#allocation5 + $0x1e0] sm:$0xf]  ;;  %v5330_v24 = vld [vmem:[#allocation5 + $0x54] sm:$0xf0] }
  0x3c   : > { %1782 = vmatpush.bf16.msra.mxu3 %v5049_v12  ;;  %v4977_v21 = vor.u32 %v5364_v19, %v4976_v18  ;;  %v5380_v22 = vld [vmem:[#allocation5 + $0x1e4] sm:$0xf0]  ;;  %v4904_v26 = vld [vmem:[#allocation5 + $0xd0] sm:$0xf]  ;;  %v5346_v27 = vld [vmem:[#allocation5 + $0xd4] sm:$0xf0]  ;;  %v4841_v29 = vor.u32 %v5330_v24, %v4840_v23 }
  0x3d   : > { %v5041_v25 = vor.u32 %v5380_v22, %v5040_v20  ;;  %v4968_v28 = vld [vmem:[#allocation5 + $0x150] sm:$0xf]  ;;  %1516 = vmatpush.bf16.msra.mxu0 %v4849_v16  ;;  %v5362_v30 = vld [vmem:[#allocation5 + $0x154] sm:$0xf0]  ;;  %v4905_v33 = vor.u32 %v5346_v27, %v4904_v26  ;;  %v4832_v35 = vld [vmem:[#allocation5 + $0x40] sm:$0xf] }
  0x3e   : > { %v5032_v31 = vld [vmem:[#allocation5 + $0x1d0] sm:$0xf]  ;;  %v5378_v32 = vld [vmem:[#allocation5 + $0x1d4] sm:$0xf0]  ;;  %1605 = vmatpush.bf16.msra.mxu1 %v4913_v17  ;;  %v4969_v34 = vor.u32 %v5362_v30, %v4968_v28  ;;  %v5328_v36 = vld [vmem:[#allocation5 + $0x44] sm:$0xf0] }
  0x3f   : > { %1694 = vmatpush.bf16.msra.mxu2 %v4977_v21  ;;  %v4896_v37 = vld [vmem:[#allocation5 + $0xc0] sm:$0xf]  ;;  %v5033_v38 = vor.u32 %v5378_v32, %v5032_v31  ;;  %v5344_v39 = vld [vmem:[#allocation5 + $0xc4] sm:$0xf0]  ;;  %v4833_v44 = vor.u32 %v5328_v36, %v4832_v35  ;;  %v4824_v47 = vld [vmem:[#allocation5 + $0x30] sm:$0xf] }
  0x40   : > { %1783 = vmatpush.bf16.msra.mxu3 %v5041_v25  ;;  %v4960_v40 = vld [vmem:[#allocation5 + $0x140] sm:$0xf]  ;;  %v5360_v41 = vld [vmem:[#allocation5 + $0x144] sm:$0xf0]  ;;  %v4897_v45 = vor.u32 %v5344_v39, %v4896_v37  ;;  %v5326_v48 = vld [vmem:[#allocation5 + $0x34] sm:$0xf0] }
  0x41   : > { %v5024_v42 = vld [vmem:[#allocation5 + $0x1c0] sm:$0xf]  ;;  %v5376_v43 = vld [vmem:[#allocation5 + $0x1c4] sm:$0xf0]  ;;  %1517 = vmatpush.bf16.msra.mxu0 %v4841_v29  ;;  %v4961_v46 = vor.u32 %v5360_v41, %v4960_v40  ;;  %v4888_v49 = vld [vmem:[#allocation5 + $0xb0] sm:$0xf]  ;;  %v4825_v56 = vor.u32 %v5326_v48, %v4824_v47 }
  0x42   : > { %1606 = vmatpush.bf16.msra.mxu1 %v4905_v33  ;;  %v5025_v50 = vor.u32 %v5376_v43, %v5024_v42  ;;  %v5342_v51 = vld [vmem:[#allocation5 + $0xb4] sm:$0xf0]  ;;  %v4952_v52 = vld [vmem:[#allocation5 + $0x130] sm:$0xf]  ;;  %v4816_v59 = vld [vmem:[#allocation5 + $0x20] sm:$0xf] }
  0x43   : > { %1695 = vmatpush.bf16.msra.mxu2 %v4969_v34  ;;  %v5358_v53 = vld [vmem:[#allocation5 + $0x134] sm:$0xf0]  ;;  %v5016_v54 = vld [vmem:[#allocation5 + $0x1b0] sm:$0xf]  ;;  %v4889_v57 = vor.u32 %v5342_v51, %v4888_v49  ;;  %v5324_v60 = vld [vmem:[#allocation5 + $0x24] sm:$0xf0] }
  0x44   : > { %1784 = vmatpush.bf16.msra.mxu3 %v5033_v38  ;;  %v5374_v55 = vld [vmem:[#allocation5 + $0x1b4] sm:$0xf0]  ;;  %v4953_v58 = vor.u32 %v5358_v53, %v4952_v52  ;;  %v4880_v61 = vld [vmem:[#allocation5 + $0xa0] sm:$0xf]  ;;  %v5340_v63 = vld [vmem:[#allocation5 + $0xa4] sm:$0xf0]  ;;  %v4817_v4 = vor.u32 %v5324_v60, %v4816_v59 }
  0x45   : > { %1518 = vmatpush.bf16.msra.mxu0 %v4833_v44  ;;  %v5017_v62 = vor.u32 %v5374_v55, %v5016_v54  ;;  %v4944_v0 = vld [vmem:[#allocation5 + $0x120] sm:$0xf]  ;;  %v5356_v1 = vld [vmem:[#allocation5 + $0x124] sm:$0xf0]  ;;  %v4881_v5 = vor.u32 %v5340_v63, %v4880_v61  ;;  %v4808_v7 = vld [vmem:[#allocation5 + $0x10] sm:$0xf] }
  0x46   : > { %1607 = vmatpush.bf16.msra.mxu1 %v4897_v45  ;;  %v5008_v2 = vld [vmem:[#allocation5 + $0x1a0] sm:$0xf]  ;;  %v5372_v3 = vld [vmem:[#allocation5 + $0x1a4] sm:$0xf0]  ;;  %v4945_v6 = vor.u32 %v5356_v1, %v4944_v0  ;;  %v5322_v8 = vld [vmem:[#allocation5 + $0x14] sm:$0xf0] }
  0x47   : > { %1696 = vmatpush.bf16.msra.mxu2 %v4961_v46  ;;  %v4872_v9 = vld [vmem:[#allocation5 + $0x90] sm:$0xf]  ;;  %v5009_v10 = vor.u32 %v5372_v3, %v5008_v2  ;;  %v5338_v11 = vld [vmem:[#allocation5 + $0x94] sm:$0xf0]  ;;  %v4800_v16 = vld [vmem:[#allocation5] sm:$0xf]  ;;  %v4809_v17 = vor.u32 %v5322_v8, %v4808_v7 }
  0x48   : > { %1785 = vmatpush.bf16.msra.mxu3 %v5025_v50  ;;  %v4936_v12 = vld [vmem:[#allocation5 + $0x110] sm:$0xf]  ;;  %v5354_v13 = vld [vmem:[#allocation5 + $0x114] sm:$0xf0]  ;;  %v5320_v18 = vld [vmem:[#allocation5 + $0x4] sm:$0xf0]  ;;  %v4873_v21 = vor.u32 %v5338_v11, %v4872_v9 }
  0x49   : > { %1519 = vmatpush.bf16.msra.mxu0 %v4825_v56  ;;  %v5000_v14 = vld [vmem:[#allocation5 + $0x190] sm:$0xf]  ;;  %v5370_v15 = vld [vmem:[#allocation5 + $0x194] sm:$0xf0]  ;;  %v4864_v19 = vld [vmem:[#allocation5 + $0x80] sm:$0xf]  ;;  %v4937_v22 = vor.u32 %v5354_v13, %v4936_v12  ;;  %v4801_v33 = vor.u32 %v5320_v18, %v4800_v16 }
  0x4a   : > { %1608 = vmatpush.bf16.msra.mxu1 %v4889_v57  ;;  %v5336_v20 = vld [vmem:[#allocation5 + $0x84] sm:$0xf0]  ;;  %v4928_v23 = vld [vmem:[#allocation5 + $0x100] sm:$0xf]  ;;  %v5001_v26 = vor.u32 %v5370_v15, %v5000_v14  ;;  %v5226_v29 = vld [vmem:[%s5911_s10 + $0x14] sm:$0xf0] }
  0x4b   : > { %1697 = vmatpush.bf16.msra.mxu2 %v4953_v58  ;;  %v5352_v24 = vld [vmem:[#allocation5 + $0x104] sm:$0xf0]  ;;  %v4992_v25 = vld [vmem:[#allocation5 + $0x180] sm:$0xf]  ;;  %v5223_v30 = vld [vmem:[%s5911_s10 + $0x4] sm:$0xf]  ;;  %v4865_v37 = vor.u32 %v5336_v20, %v4864_v19 }
  0x4c   : > { %1786 = vmatpush.bf16.msra.mxu3 %v5017_v62  ;;  %v5368_v27 = vld [vmem:[#allocation5 + $0x184] sm:$0xf0]  ;;  %v4416_v28 = vld [vmem:[%s5911_s10] sm:$0xf]  ;;  %v5333_v31 = vld [vmem:[#allocation5 + $0x74] sm:$0xf]  ;;  %v4929_v38 = vor.u32 %v5352_v24, %v4928_v23 }
  0x4d   : > { %1520 = vmatpush.bf16.msra.mxu0 %v4817_v4  ;;  %v4858_v32 = vld [vmem:[#allocation5 + $0x78] sm:$0xf0]  ;;  %v5349_v35 = vld [vmem:[#allocation5 + $0xf4] sm:$0xf]  ;;  %v4424_v39 = vld [vmem:[%s5911_s10 + $0x8] sm:$0xf]  ;;  %v4993_v42 = vor.u32 %v5368_v27, %v4992_v25  ;;  %v5929_v47 = vor.u32 %v5226_v29, %v4416_v28 }
  0x4e   : > { %1609 = vmatpush.bf16.msra.mxu1 %v4881_v5  ;;  %v4418_v34 = vld [vmem:[%s5911_s10 + $0x18] sm:$0xf0]  ;;  %v5227_v40 = vld [vmem:[%s5911_s10 + $0x1c] sm:$0xf0]  ;;  %v5224_v41 = vld [vmem:[%s5911_s10 + $0xc] sm:$0xf]  ;;  %v4861_v44 = vor.u32 %v5333_v31, %v4858_v32 }
  0x4f   : > { %1698 = vmatpush.bf16.msra.mxu2 %v4945_v6  ;;  %v4922_v36 = vld [vmem:[#allocation5 + $0xf8] sm:$0xf0]  ;;  %v4426_v43 = vld [vmem:[%s5911_s10 + $0x20] sm:$0xf0]  ;;  %v5112_v45 = vld [vmem:[#allocation5 + $0x270] sm:$0xf]  ;;  %v5931_v51 = vor.u32 %v5223_v30, %v4418_v34  ;;  %v5933_v52 = vor.u32 %v5227_v40, %v4424_v39 }
  0x50   : > { %1787 = vmatpush.bf16.msra.mxu3 %v5009_v10  ;;  %v5398_v46 = vld [vmem:[#allocation5 + $0x274] sm:$0xf0]  ;;  %v4925_v48 = vor.u32 %v5349_v35, %v4922_v36  ;;  %v5176_v49 = vld [vmem:[#allocation5 + $0x2f0] sm:$0xf]  ;;  %v5935_v53 = vor.u32 %v5224_v41, %v4426_v43  ;;  %v5331_v56 = vld [vmem:[#allocation5 + $0x64] sm:$0xf] }
  0x51   : > { %1521 = vmatpush.bf16.msra.mxu0 %v4809_v17  ;;  %v5414_v50 = vld [vmem:[#allocation5 + $0x2f4] sm:$0xf0]  ;;  %8183 = vst [vmem:[#allocation12_spill] sm:$0xff] %v5933_v52  ;;  %v5113_v54 = vor.u32 %v5398_v46, %v5112_v45  ;;  %v4850_v57 = vld [vmem:[#allocation5 + $0x68] sm:$0xf0]  ;;  %p342_p1 = scmp.lt.s32.totalorder %s5835_s25, 1 }
  0x52   : > { %1610 = vmatpush.bf16.msra.mxu1 %v4873_v21  ;;  %8184 = vst [vmem:[#allocation13_spill] sm:$0xff] %v5935_v53  ;;  %v5177_v55 = vor.u32 %v5414_v50, %v5176_v49  ;;  %v5104_v58 = vld [vmem:[#allocation5 + $0x260] sm:$0xf]  ;;  %v4853_v59 = vor.u32 %v5331_v56, %v4850_v57  ;;  %v5396_v60 = vld [vmem:[#allocation5 + $0x264] sm:$0xf0]  ;;  %vm2658_vm0 = vcmask 1040384  }
  0x53   : > { %1699 = vmatpush.bf16.msra.mxu2 %v4937_v22  ;;  %v5347_v61 = vld [vmem:[#allocation5 + $0xe4] sm:$0xf]  ;;  %v4914_v62 = vld [vmem:[#allocation5 + $0xe8] sm:$0xf0]  ;;  %v5105_v63 = vor.u32 %v5396_v60, %v5104_v58  ;;  %v5168_v1 = vld [vmem:[#allocation5 + $0x2e0] sm:$0xf] }
  0x54   : > { %1788 = vmatpush.bf16.msra.mxu3 %v5001_v26  ;;  %v4917_v0 = vor.u32 %v5347_v61, %v4914_v62  ;;  %v5412_v2 = vld [vmem:[#allocation5 + $0x2e4] sm:$0xf0]  ;;  %v4440_v4 = vld [vmem:[%s5911_s10 + $0x30] sm:$0xf]  ;;  %v5229_v6 = vld [vmem:[%s5911_s10 + $0x34] sm:$0xf] }
  0x55   : > { %1522 = vmatpush.bf16.msra.mxu0 %v4801_v33  ;;  %v5169_v3 = vor.u32 %v5412_v2, %v5168_v1  ;;  %v5232_v5 = vld [vmem:[%s5911_s10 + $0x44] sm:$0xf0]  ;;  %v4442_v7 = vld [vmem:[%s5911_s10 + $0x48] sm:$0xf0]  ;;  %v4448_v8 = vld [vmem:[%s5911_s10 + $0x38] sm:$0xf] }
  0x56   : > { %1611 = vmatpush.bf16.msra.mxu1 %v4865_v37  ;;  %v5233_v9 = vld [vmem:[%s5911_s10 + $0x4c] sm:$0xf0]  ;;  %v5230_v10 = vld [vmem:[%s5911_s10 + $0x3c] sm:$0xf]  ;;  %v4450_v11 = vld [vmem:[%s5911_s10 + $0x50] sm:$0xf0]  ;;  %v5949_v12 = vor.u32 %v5232_v5, %v4440_v4  ;;  %v5951_v13 = vor.u32 %v5229_v6, %v4442_v7 }
  0x57   : > { %1700 = vmatpush.bf16.msra.mxu2 %v4929_v38  ;;  %v5953_v14 = vor.u32 %v5233_v9, %v4448_v8  ;;  %v5955_v15 = vor.u32 %v5230_v10, %v4450_v11  ;;  %v4464_v16 = vld [vmem:[%s5911_s10 + $0x60] sm:$0xf]  ;;  %v5238_v17 = vld [vmem:[%s5911_s10 + $0x74] sm:$0xf0]  ;;  %v5235_v18 = vld [vmem:[%s5911_s10 + $0x64] sm:$0xf] }
  0x58   : > { %1789 = vmatpush.bf16.msra.mxu3 %v4993_v42  ;;  %1523 = vmatmul.bf16.vlgmr.msra.gmra.mxu0 %v5929_v47  ;;  %v4466_v19 = vld [vmem:[%s5911_s10 + $0x78] sm:$0xf0]  ;;  %v4472_v20 = vld [vmem:[%s5911_s10 + $0x68] sm:$0xf]  ;;  %v5239_v21 = vld [vmem:[%s5911_s10 + $0x7c] sm:$0xf0]  ;;  %v5969_v24 = vor.u32 %v5238_v17, %v4464_v16 }
  0x59   : > { %1612 = vmatmul.bf16.vlgmr.msra.gmra.mxu1 %v5931_v51  ;;  %1871 = vmatpush.bf16.msrb.mxu0 %v5113_v54  ;;  %8185 = vst [vmem:[#allocation14_spill] sm:$0xff] %v5953_v14  ;;  %v5236_v22 = vld [vmem:[%s5911_s10 + $0x6c] sm:$0xf]  ;;  %v4474_v23 = vld [vmem:[%s5911_s10 + $0x80] sm:$0xf0]  ;;  %v5971_v25 = vor.u32 %v5235_v18, %v4466_v19  ;;  %v5973_v26 = vor.u32 %v5239_v21, %v4472_v20  ;;  %s6223_s27 = scalar_select %p342_p1, %s5835_s25, 1 }
  0x5a   : > { %1701 = vmatmul.bf16.vlgmr.msra.gmra.mxu2 %v5933_v52  ;;  %1960 = vmatpush.bf16.msrb.mxu1 %v5177_v55  ;;  %8186 = vst [vmem:[#allocation15_spill] sm:$0xff] %v5955_v15  ;;  %v5975_v27 = vor.u32 %v5236_v22, %v4474_v23  ;;  %v5329_v28 = vld [vmem:[#allocation5 + $0x54] sm:$0xf]  ;;  %v4842_v29 = vld [vmem:[#allocation5 + $0x58] sm:$0xf0]  ;;  %vm2660_vm1 = vcmask 1041409  }
  0x5b   : > { %2049 = vmatpush.bf16.msrb.mxu2 %v4861_v44  ;;  %1790 = vmatmul.bf16.vlgmr.msra.gmra.mxu3 %v5935_v53  ;;  %8187 = vst [vmem:[#allocation16_spill] sm:$0xff] %v5973_v26  ;;  %v5096_v30 = vld [vmem:[#allocation5 + $0x250] sm:$0xf]  ;;  %v4845_v31 = vor.u32 %v5329_v28, %v4842_v29  ;;  %v5394_v32 = vld [vmem:[#allocation5 + $0x254] sm:$0xf0]  ;;  %s5219_s8 = sshll.u32 %s6223_s27, 8 }
  0x5c   : > { %2138 = vmatpush.bf16.msrb.mxu3 %v4925_v48  ;;  %8188 = vst [vmem:[#allocation17_spill] sm:$0xff] %v5975_v27  ;;  %v5345_v33 = vld [vmem:[#allocation5 + $0xd4] sm:$0xf]  ;;  %v4906_v34 = vld [vmem:[#allocation5 + $0xd8] sm:$0xf0]  ;;  %v5097_v35 = vor.u32 %v5394_v32, %v5096_v30  ;;  %s6241_s12 = scalar_lea.vmem %s8048_s2, %s5219_s8  ;;  %s5220_s13 = sshll.u32 %s6223_s27, 3 }
  0x5d   : > { %1872 = vmatpush.bf16.msrb.mxu0 %v5105_v63  ;;  %v4909_v36 = vor.u32 %v5345_v33, %v4906_v34  ;;  %v5160_v37 = vld [vmem:[#allocation5 + $0x2d0] sm:$0xf]  ;;  %v5410_v38 = vld [vmem:[#allocation5 + $0x2d4] sm:$0xf0]  ;;  %v5244_v41 = vld [vmem:[%s5911_s10 + $0xa4] sm:$0xf0]  ;;  %s6497_s19 = scalar_lea.vmem %s8049_s3, %s5220_s13 }
  0x5e   : > { %1961 = vmatpush.bf16.msrb.mxu1 %v5169_v3  ;;  %v5161_v39 = vor.u32 %v5410_v38, %v5160_v37  ;;  %v4488_v40 = vld [vmem:[%s5911_s10 + $0x90] sm:$0xf]  ;;  %v5241_v42 = vld [vmem:[%s5911_s10 + $0x94] sm:$0xf]  ;;  %v4490_v43 = vld [vmem:[%s5911_s10 + $0xa8] sm:$0xf0] }
  0x5f   : > { %2050 = vmatpush.bf16.msrb.mxu2 %v4853_v59  ;;  %v4496_v44 = vld [vmem:[%s5911_s10 + $0x98] sm:$0xf]  ;;  %v5245_v45 = vld [vmem:[%s5911_s10 + $0xac] sm:$0xf0]  ;;  %v5242_v46 = vld [vmem:[%s5911_s10 + $0x9c] sm:$0xf]  ;;  %v5989_v49 = vor.u32 %v5244_v41, %v4488_v40  ;;  %v5991_v50 = vor.u32 %v5241_v42, %v4490_v43 }
  0x60   : > { %2139 = vmatpush.bf16.msrb.mxu3 %v4917_v0  ;;  %v4498_v48 = vld [vmem:[%s5911_s10 + $0xb0] sm:$0xf0]  ;;  %v5993_v54 = vor.u32 %v5245_v45, %v4496_v44  ;;  %v4512_v56 = vld [vmem:[%s5911_s10 + $0xc0] sm:$0xf]  ;;  %v5250_v57 = vld [vmem:[%s5911_s10 + $0xd4] sm:$0xf0] }
  0x61   : > { %1873 = vmatpush.bf16.msrb.mxu0 %v5097_v35  ;;  %v5995_v55 = vor.u32 %v5242_v46, %v4498_v48  ;;  %v5247_v58 = vld [vmem:[%s5911_s10 + $0xc4] sm:$0xf]  ;;  %v4514_v59 = vld [vmem:[%s5911_s10 + $0xd8] sm:$0xf0]  ;;  %v4520_v60 = vld [vmem:[%s5911_s10 + $0xc8] sm:$0xf]  ;;  %v6009_v0 = vor.u32 %v5250_v57, %v4512_v56 }
  0x62   : > { %1962 = vmatpush.bf16.msrb.mxu1 %v5161_v39  ;;  %8189 = vst [vmem:[#allocation18_spill] sm:$0xff] %v5993_v54  ;;  %v5251_v61 = vld [vmem:[%s5911_s10 + $0xdc] sm:$0xf0]  ;;  %v5248_v62 = vld [vmem:[%s5911_s10 + $0xcc] sm:$0xf]  ;;  %v6011_v1 = vor.u32 %v5247_v58, %v4514_v59  ;;  %vm2663_vm2 = vcmask 1042434  }
  0x63   : > { %2051 = vmatpush.bf16.msrb.mxu2 %v4845_v31  ;;  %8190 = vst [vmem:[#allocation19_spill] sm:$0xff] %v5995_v55  ;;  %v4522_v63 = vld [vmem:[%s5911_s10 + $0xe0] sm:$0xf0]  ;;  %v6013_v2 = vor.u32 %v5251_v61, %v4520_v60  ;;  %v4834_v5 = vld [vmem:[#allocation5 + $0x48] sm:$0xf0]  ;;  %vm2666_vm3 = vcmask 1043459  }
  0x64   : > { %2140 = vmatpush.bf16.msrb.mxu3 %v4909_v36  ;;  %v6015_v3 = vor.u32 %v5248_v62, %v4522_v63  ;;  %v5327_v4 = vld [vmem:[#allocation5 + $0x44] sm:$0xf]  ;;  %v5088_v6 = vld [vmem:[#allocation5 + $0x240] sm:$0xf]  ;;  %v5392_v8 = vld [vmem:[#allocation5 + $0x244] sm:$0xf0] }
  0x65   : > { %8191 = vst [vmem:[#allocation20_spill] sm:$0xff] %v6013_v2  ;;  %v4837_v7 = vor.u32 %v5327_v4, %v4834_v5  ;;  %v5343_v9 = vld [vmem:[#allocation5 + $0xc4] sm:$0xf]  ;;  %v4898_v10 = vld [vmem:[#allocation5 + $0xc8] sm:$0xf0]  ;;  %v5089_v11 = vor.u32 %v5392_v8, %v5088_v6  ;;  %s5221_s26 = sshll.u32 %s6223_s27, 6 }
  0x66   : > { %8192 = vst [vmem:[#allocation21_spill] sm:$0xff] %v6015_v3  ;;  %v4901_v16 = vor.u32 %v5343_v9, %v4898_v10  ;;  %v5152_v17 = vld [vmem:[#allocation5 + $0x2c0] sm:$0xf]  ;;  %v5408_v18 = vld [vmem:[#allocation5 + $0x2c4] sm:$0xf0]  ;;  %s7199_s20 = scalar_lea.vmem %s8050_s4, %s5221_s26  ;;  %s4405_s1 = sshll.u32 %s5907_s30, 8 }
  0x67   : > { %2052 = vmatpush.bf16.msrb.mxu2 %v4837_v7  ;;  %v5153_v19 = vor.u32 %v5408_v18, %v5152_v17  ;;  %1874 = vmatpush.bf16.msrb.mxu0 %v5089_v11  ;;  %v4536_v20 = vld [vmem:[%s5911_s10 + $0xf0] sm:$0xf]  ;;  %v5256_v21 = vld [vmem:[%s5911_s10 + $0x104] sm:$0xf0]  ;;  %v5253_v22 = vld [vmem:[%s5911_s10 + $0xf4] sm:$0xf]  ;;  %s7942_s7 = scalar_lea.vmem %s8052_s6, %s5221_s26 }
  0x68   : > { %1528 = vmatmul.bf16.gmra.mxu0 %v5949_v12  ;;  %2141 = vmatpush.bf16.msrb.mxu3 %v4901_v16  ;;  %v4538_v23 = vld [vmem:[%s5911_s10 + $0x108] sm:$0xf0]  ;;  %v4544_v28 = vld [vmem:[%s5911_s10 + $0xf8] sm:$0xf]  ;;  %v5257_v29 = vld [vmem:[%s5911_s10 + $0x10c] sm:$0xf0]  ;;  %v6029_v32 = vor.u32 %v5256_v21, %v4536_v20 }
  0x69   : > { %1617 = vmatmul.bf16.gmra.mxu1 %v5951_v13  ;;  %v5254_v30 = vld [vmem:[%s5911_s10 + $0xfc] sm:$0xf]  ;;  %v4546_v31 = vld [vmem:[%s5911_s10 + $0x110] sm:$0xf0]  ;;  %v6031_v33 = vor.u32 %v5253_v22, %v4538_v23  ;;  %v6033_v34 = vor.u32 %v5257_v29, %v4544_v28  ;;  %v4560_v36 = vld [vmem:[%s5911_s10 + $0x120] sm:$0xf] }
  0x6a   : > { %1706 = vmatmul.bf16.gmra.mxu2 %v5953_v14  ;;  %1963 = vmatpush.bf16.msrb.mxu1 %v5153_v19  ;;  %v6035_v35 = vor.u32 %v5254_v30, %v4546_v31  ;;  %v5262_v37 = vld [vmem:[%s5911_s10 + $0x134] sm:$0xf0]  ;;  %v5259_v38 = vld [vmem:[%s5911_s10 + $0x124] sm:$0xf]  ;;  %v4562_v39 = vld [vmem:[%s5911_s10 + $0x138] sm:$0xf0] }
  0x6b   : > { %1795 = vmatmul.bf16.gmra.mxu3 %v5955_v15  ;;  %8193 = vst [vmem:[#allocation22_spill] sm:$0xff] %v6033_v34  ;;  %v4568_v40 = vld [vmem:[%s5911_s10 + $0x128] sm:$0xf]  ;;  %v5263_v41 = vld [vmem:[%s5911_s10 + $0x13c] sm:$0xf0]  ;;  %v6049_v44 = vor.u32 %v5262_v37, %v4560_v36  ;;  %v6051_v45 = vor.u32 %v5259_v38, %v4562_v39  ;;  %s7585_s16 = scalar_lea.vmem [#allocation7], %s4405_s1 }
  0x6c   : > { %8194 = vst [vmem:[#allocation23_spill] sm:$0xff] %v6035_v35  ;;  %v5260_v42 = vld [vmem:[%s5911_s10 + $0x12c] sm:$0xf]  ;;  %v4570_v43 = vld [vmem:[%s5911_s10 + $0x140] sm:$0xf0]  ;;  %v6053_v46 = vor.u32 %v5263_v41, %v4568_v40  ;;  %s5423_s27 = sshll.u32 %s5835_s25, 8 }
  0x6d   : > { %v6055_v48 = vor.u32 %v5260_v42, %v4570_v43  ;;  %v5325_v56 = vld [vmem:[#allocation5 + $0x34] sm:$0xf]  ;;  %v4826_v57 = vld [vmem:[#allocation5 + $0x38] sm:$0xf0]  ;;  %v5080_v58 = vld [vmem:[#allocation5 + $0x230] sm:$0xf]  ;;  %s4247_s13 = scalar_lea.hbm %s8051_s5, %s5423_s27 }
  0x6e   : > { %8195 = vst [vmem:[#allocation24_spill] sm:$0xff] %v6053_v46  ;;  %v4829_v59 = vor.u32 %v5325_v56, %v4826_v57  ;;  %v5390_v60 = vld [vmem:[#allocation5 + $0x234] sm:$0xf0]  ;;  %v5341_v61 = vld [vmem:[#allocation5 + $0xb4] sm:$0xf]  ;;  %s4248_s14 = sshll.u32 %s7585_s16, 4  ;;  %s4249_s14 = int_to_ptr.vmem [resolvable:$true] %s4248_s14 }
  0x6f   : > { %8196 = vst [vmem:[#allocation25_spill] sm:$0xff] %v6055_v48  ;;  %v4890_v62 = vld [vmem:[#allocation5 + $0xb8] sm:$0xf0]  ;;  %v5081_v63 = vor.u32 %v5390_v60, %v5080_v58  ;;  %v5144_v5 = vld [vmem:[#allocation5 + $0x2b0] sm:$0xf]  ;;  %s4250_s15 = sshll.u32 %s4247_s13, 4  ;;  %s4251_s15 = int_to_ptr.hbm [resolvable:$true] %s4250_s15 }
  0x70   : > { %v4893_v4 = vor.u32 %v5341_v61, %v4890_v62  ;;  %2053 = vmatpush.bf16.msrb.mxu2 %v4829_v59  ;;  %v5406_v6 = vld [vmem:[#allocation5 + $0x2b4] sm:$0xf0]  ;;  %v4584_v8 = vld [vmem:[%s5911_s10 + $0x150] sm:$0xf]  ;;  %v5268_v9 = vld [vmem:[%s5911_s10 + $0x164] sm:$0xf0] }
  0x71   : > { %1875 = vmatpush.bf16.msrb.mxu0 %v5081_v63  ;;  %v5145_v7 = vor.u32 %v5406_v6, %v5144_v5  ;;  %v5265_v10 = vld [vmem:[%s5911_s10 + $0x154] sm:$0xf]  ;;  %v4586_v11 = vld [vmem:[%s5911_s10 + $0x168] sm:$0xf0]  ;;  %v4592_v16 = vld [vmem:[%s5911_s10 + $0x158] sm:$0xf]  ;;  %v6069_v20 = vor.u32 %v5268_v9, %v4584_v8 }
  0x72   : > { %2142 = vmatpush.bf16.msrb.mxu3 %v4893_v4  ;;  %v5269_v17 = vld [vmem:[%s5911_s10 + $0x16c] sm:$0xf0]  ;;  %v5266_v18 = vld [vmem:[%s5911_s10 + $0x15c] sm:$0xf]  ;;  %v4594_v19 = vld [vmem:[%s5911_s10 + $0x170] sm:$0xf0]  ;;  %v6071_v21 = vor.u32 %v5265_v10, %v4586_v11 }
  0x73   : > { %1964 = vmatpush.bf16.msrb.mxu1 %v5145_v7  ;;  %v6073_v22 = vor.u32 %v5269_v17, %v4592_v16  ;;  %v6075_v23 = vor.u32 %v5266_v18, %v4594_v19  ;;  %v4608_v28 = vld [vmem:[%s5911_s10 + $0x180] sm:$0xf]  ;;  %v5274_v29 = vld [vmem:[%s5911_s10 + $0x194] sm:$0xf0]  ;;  %v5271_v30 = vld [vmem:[%s5911_s10 + $0x184] sm:$0xf] }
  0x74   : > { %v4610_v31 = vld [vmem:[%s5911_s10 + $0x198] sm:$0xf0]  ;;  %v4616_v36 = vld [vmem:[%s5911_s10 + $0x188] sm:$0xf]  ;;  %v5275_v37 = vld [vmem:[%s5911_s10 + $0x19c] sm:$0xf0]  ;;  %v6089_v40 = vor.u32 %v5274_v29, %v4608_v28 }
  0x75   : > { %8197 = vst [vmem:[#allocation26_spill] sm:$0xff] %v6073_v22  ;;  %v5272_v38 = vld [vmem:[%s5911_s10 + $0x18c] sm:$0xf]  ;;  %v4618_v39 = vld [vmem:[%s5911_s10 + $0x1a0] sm:$0xf0]  ;;  %v6091_v42 = vor.u32 %v5271_v30, %v4610_v31  ;;  %v6093_v43 = vor.u32 %v5275_v37, %v4616_v36  ;;  %s5713_s26 = sshra.s32 %s4251_s15, 4  ;;  %s5714_s26 = int_to_ptr.hbm [resolvable:$true] %s5713_s26 }
  0x76   : > { %8198 = vst [vmem:[#allocation27_spill] sm:$0xff] %v6075_v23  ;;  %v6095_v57 = vor.u32 %v5272_v38, %v4618_v39  ;;  %v5323_v59 = vld [vmem:[#allocation5 + $0x24] sm:$0xf]  ;;  %v4818_v60 = vld [vmem:[#allocation5 + $0x28] sm:$0xf0]  ;;  %s5715_s29 = scalar_lea.hbm %s5714_s26, 256  ;;  %p5720_p9 = scmp.lt.s32.totalorder %s5714_s26, %s8051_s5 }
  0x77   : > { %8199 = vst [vmem:[#allocation28_spill] sm:$0xff] %v6093_v43  ;;  %v5072_v61 = vld [vmem:[#allocation5 + $0x220] sm:$0xf]  ;;  %v4821_v62 = vor.u32 %v5323_v59, %v4818_v60  ;;  %v5388_v63 = vld [vmem:[#allocation5 + $0x224] sm:$0xf0]  ;;  %p5716_p4 = scmp.ne.s32.totalorder %s5714_s26, %s5715_s29  ;;  %s5719_s25 = scalar_lea.hbm %s8051_s5, 512 }
  0x78   : > { %1533 = vmatmul.bf16.gmra.mxu0 %v5969_v24  ;;  %8200 = vst [vmem:[#allocation29_spill] sm:$0xff] %v6095_v57  ;;  %v5339_v4 = vld [vmem:[#allocation5 + $0xa4] sm:$0xf]  ;;  %v4882_v5 = vld [vmem:[#allocation5 + $0xa8] sm:$0xf0]  ;;  %v5073_v7 = vor.u32 %v5388_v63, %v5072_v61  ;;  %p5721_p2 = scmp.lt.s32.totalorder %s5719_s25, %s5715_s29 }
  0x79   : > { %1622 = vmatmul.bf16.gmra.mxu1 %v5971_v25  ;;  %v4885_v8 = vor.u32 %v5339_v4, %v4882_v5  ;;  %2054 = vmatpush.bf16.msrb.mxu2 %v4821_v62  ;;  %v5136_v19 = vld [vmem:[#allocation5 + $0x2a0] sm:$0xf]  ;;  %v5404_v28 = vld [vmem:[#allocation5 + $0x2a4] sm:$0xf0]  ;;  %v4632_v30 = vld [vmem:[%s5911_s10 + $0x1b0] sm:$0xf]  ;;  %p5717_p8 = pnand %p5716_p4, %p5881_p7 }
  0x7a   : > { %1711 = vmatmul.bf16.gmra.mxu2 %v5973_v26  ;;  %1876 = vmatpush.bf16.msrb.mxu0 %v5073_v7  ;;  %v5137_v29 = vor.u32 %v5404_v28, %v5136_v19  ;;  %v5280_v31 = vld [vmem:[%s5911_s10 + $0x1c4] sm:$0xf0]  ;;  %v5277_v36 = vld [vmem:[%s5911_s10 + $0x1b4] sm:$0xf]  ;;  %v4634_v37 = vld [vmem:[%s5911_s10 + $0x1c8] sm:$0xf0]  ;;  %p5722_p10 = por %p5721_p2, %p5720_p9 }
  0x7b   : > { %1800 = vmatmul.bf16.gmra.mxu3 %v5975_v27  ;;  %v4640_v38 = vld [vmem:[%s5911_s10 + $0x1b8] sm:$0xf]  ;;  %v5281_v39 = vld [vmem:[%s5911_s10 + $0x1cc] sm:$0xf0]  ;;  %v6111_v59 = vor.u32 %v5280_v31, %v4632_v30  ;;  %v6113_v63 = vor.u32 %v5277_v36, %v4634_v37  ;;  %v5283_v31 = vld [vmem:[%s5911_s10 + $0x1e4] sm:$0xf]  ;;  %p5718_p11 = pneg %p5717_p8 }
  0x7c   : > { %2143 = vmatpush.bf16.msrb.mxu3 %v4885_v8  ;;  %1965 = vmatpush.bf16.msrb.mxu1 %v5137_v29  ;;  %v6115_v4 = vor.u32 %v5281_v39, %v4640_v38  ;;  %v4656_v29 = vld [vmem:[%s5911_s10 + $0x1e0] sm:$0xf]  ;;  %v5286_v30 = vld [vmem:[%s5911_s10 + $0x1f4] sm:$0xf0]  ;;  %v4658_v36 = vld [vmem:[%s5911_s10 + $0x1f8] sm:$0xf0] }
  0x7d   : > { %v4664_v37 = vld [vmem:[%s5911_s10 + $0x1e8] sm:$0xf]  ;;  %v5287_v38 = vld [vmem:[%s5911_s10 + $0x1fc] sm:$0xf0]  ;;  %v5284_v39 = vld [vmem:[%s5911_s10 + $0x1ec] sm:$0xf]  ;;  %p5723_p12 = pnand %p5722_p10, %p5718_p11 }
  0x7e   : > { %8201 = vst [vmem:[#allocation30_spill] sm:$0xff] %v6115_v4  ;;  %v5776_v27 = vmov 0   ;;  %v4784_v26 = vld [vmem:[%s5911_s10 + $0x2d8] sm:$0xf]  ;;  %v5317_v15 = vld [vmem:[%s5911_s10 + $0x2ec] sm:$0xf0] }
  0x7f   : > { %5491 = vset.pattern.permute.xlu0 %v5776_v27  ;;  %5492 = vset.pattern.permute.xlu1 %v5776_v27 }
  0x80   : > { %5493 = vset.pattern.permute.xlu2 %v5776_v27 }
  0x88   : > { %1538 = vmatmul.bf16.gmra.mxu0 %v5989_v49 }
  0x89   : > { %1627 = vmatmul.bf16.gmra.mxu1 %v5991_v50 }
  0x8a   : > { %1716 = vmatmul.bf16.gmra.mxu2 %v5993_v54 }
  0x8b   : > { %1805 = vmatmul.bf16.gmra.mxu3 %v5995_v55 }
  0x98   : > { %1543 = vmatmul.bf16.gmra.mxu0 %v6009_v0 }
  0x99   : > { %1632 = vmatmul.bf16.gmra.mxu1 %v6011_v1 }
  0x9a   : > { %1721 = vmatmul.bf16.gmra.mxu2 %v6013_v2 }
  0x9b   : > { %1810 = vmatmul.bf16.gmra.mxu3 %v6015_v3 }
  0xa8   : > { %1548 = vmatmul.bf16.gmra.mxu0 %v6029_v32 }
  0xa9   : > { %1637 = vmatmul.bf16.gmra.mxu1 %v6031_v33 }
  0xaa   : > { %1726 = vmatmul.bf16.gmra.mxu2 %v6033_v34 }
  0xab   : > { %1815 = vmatmul.bf16.gmra.mxu3 %v6035_v35  ;;  %v4738_v35 = vld [vmem:[%s5911_s10 + $0x290] sm:$0xf0] }
  0xb8   : > { %1553 = vmatmul.bf16.gmra.mxu0 %v6049_v44 }
  0xb9   : > { %1642 = vmatmul.bf16.gmra.mxu1 %v6051_v45 }
  0xba   : > { %1731 = vmatmul.bf16.gmra.mxu2 %v6053_v46  ;;  %v5305_v46 = vld [vmem:[%s5911_s10 + $0x28c] sm:$0xf0] }
  0xbb   : > { %1820 = vmatmul.bf16.gmra.mxu3 %v6055_v48 }
  0xc8   : > { %1558 = vmatmul.bf16.gmra.mxu0 %v6069_v20 }
  0xc9   : > { %1647 = vmatmul.bf16.gmra.mxu1 %v6071_v21 }
  0xca   : > { %1736 = vmatmul.bf16.gmra.mxu2 %v6073_v22 }
  0xcb   : > { %1825 = vmatmul.bf16.gmra.mxu3 %v6075_v23 }
  0xd5   : > { %v1524_v41 = vpop.f32.mrf.mxu0 }
  0xd6   : > { %v1613_v56 = vpop.f32.mrf.mxu1 }
  0xd7   : > { %v1614_v58 = vadd.f32 %v1613_v56, %v1524_v41  ;;  %v5278_v41 = vld [vmem:[%s5911_s10 + $0x1bc] sm:$0xf]  ;;  %v4642_v56 = vld [vmem:[%s5911_s10 + $0x1d0] sm:$0xf0] }
  0xd8   : > { %1563 = vmatmul.bf16.gmra.mxu0 %v6089_v40 }
  0xd9   : > { %1652 = vmatmul.bf16.gmra.mxu1 %v6091_v42 }
  0xda   : > { %1741 = vmatmul.bf16.gmra.mxu2 %v6093_v43  ;;  %v4714_v43 = vld [vmem:[%s5911_s10 + $0x260] sm:$0xf0] }
  0xdb   : > { %1830 = vmatmul.bf16.gmra.mxu3 %v6095_v57 }
  0xdd   : > { %v1702_v6 = vpop.f32.mrf.mxu2  ;;  %v1526_v11 = vpop.f32.mrf.mxu0 }
  0xde   : > { %v1703_v9 = vadd.f32 %v1702_v6, %v1614_v58  ;;  %v1791_v10 = vpop.f32.mrf.mxu3  ;;  %v1615_v16 = vpop.f32.mrf.mxu1  ;;  %v6117_v6 = vor.u32 %v5278_v41, %v4642_v56  ;;  %v4666_v41 = vld [vmem:[%s5911_s10 + $0x200] sm:$0xf0] }
  0xdf   : > { %v1616_v18 = vadd.f32 %v1615_v16, %v1526_v11 }
  0xe0   : > { %v6101_v17 = vadd.f32 %v1791_v10, %v1703_v9  ;;  %8202 = vst [vmem:[#allocation31_spill] sm:$0xff] %v6117_v6 }
  0xe5   : > { %v1704_v58 = vpop.f32.mrf.mxu2  ;;  %v1529_v62 = vpop.f32.mrf.mxu0 }
  0xe6   : > { %v1705_v60 = vadd.f32 %v1704_v58, %v1616_v18  ;;  %v1793_v61 = vpop.f32.mrf.mxu3  ;;  %v1618_v5 = vpop.f32.mrf.mxu1  ;;  %v6135_v58 = vor.u32 %v5286_v30, %v4656_v29  ;;  %v5064_v29 = vld [vmem:[#allocation5 + $0x210] sm:$0xf] }
  0xe7   : > { %v1619_v8 = vadd.f32 %v1618_v5, %v1529_v62  ;;  %v6137_v5 = vor.u32 %v5283_v31, %v4658_v36  ;;  %v5386_v31 = vld [vmem:[#allocation5 + $0x214] sm:$0xf0]  ;;  %v5337_v36 = vld [vmem:[#allocation5 + $0x94] sm:$0xf] }
  0xe8   : > { %v6119_v7 = vadd.f32 %v1793_v61, %v1705_v60  ;;  %1568 = vmatmul.bf16.gmra.mxu0 %v6111_v59 }
  0xe9   : > { %1657 = vmatmul.bf16.gmra.mxu1 %v6113_v63 }
  0xea   : > { %1746 = vmatmul.bf16.gmra.mxu2 %v6115_v4 }
  0xeb   : > { %1835 = vmatmul.bf16.gmra.mxu3 %v6117_v6  ;;  %v5290_v6 = vld [vmem:[%s5911_s10 + $0x21c] sm:$0xf] }
  0xed   : > { %v1707_v9 = vpop.f32.mrf.mxu2  ;;  %v1531_v16 = vpop.f32.mrf.mxu0 }
  0xee   : > { %v1708_v10 = vadd.f32 %v1707_v9, %v1619_v8  ;;  %v1796_v11 = vpop.f32.mrf.mxu3  ;;  %v1620_v18 = vpop.f32.mrf.mxu1  ;;  %v6139_v8 = vor.u32 %v5287_v38, %v4664_v37  ;;  %v4874_v37 = vld [vmem:[#allocation5 + $0x98] sm:$0xf0] }
  0xef   : > { %v1621_v28 = vadd.f32 %v1620_v18, %v1531_v16  ;;  %v5321_v18 = vld [vmem:[#allocation5 + $0x14] sm:$0xf] }
  0xf0   : > { %v6125_v19 = vadd.f32 %v1796_v11, %v1708_v10  ;;  %8203 = vst [vmem:[#allocation32_spill] sm:$0xff] %v6139_v8  ;;  %v6141_v10 = vor.u32 %v5284_v39, %v4666_v41  ;;  %v5065_v39 = vor.u32 %v5386_v31, %v5064_v29  ;;  %v4877_v41 = vor.u32 %v5337_v36, %v4874_v37  ;;  %v4680_v31 = vld [vmem:[%s5911_s10 + $0x210] sm:$0xf]  ;;  %v5292_v36 = vld [vmem:[%s5911_s10 + $0x224] sm:$0xf0] }
  0xf1   : > { %v5289_v37 = vld [vmem:[%s5911_s10 + $0x214] sm:$0xf]  ;;  %v6159_v57 = vor.u32 %v5292_v36, %v4680_v31 }
  0xf2   : > { %8204 = vst [vmem:[#allocation33_spill] sm:$0xff] %v6141_v10  ;;  %1877 = vmatpush.bf16.msrb.mxu0 %v5065_v39  ;;  %2144 = vmatpush.bf16.msrb.mxu3 %v4877_v41 }
  0xf5   : > { %v1709_v56 = vpop.f32.mrf.mxu2  ;;  %v1534_v62 = vpop.f32.mrf.mxu0 }
  0xf6   : > { %v1710_v60 = vadd.f32 %v1709_v56, %v1621_v28  ;;  %v1798_v61 = vpop.f32.mrf.mxu3  ;;  %v1623_v9 = vpop.f32.mrf.mxu1  ;;  %v4810_v28 = vld [vmem:[#allocation5 + $0x18] sm:$0xf0] }
  0xf7   : > { %v1624_v16 = vadd.f32 %v1623_v9, %v1534_v62  ;;  %v4813_v30 = vor.u32 %v5321_v18, %v4810_v28  ;;  %v5128_v28 = vld [vmem:[#allocation5 + $0x290] sm:$0xf] }
  0xf8   : > { %v6143_v11 = vadd.f32 %v1798_v61, %v1710_v60  ;;  %1573 = vmatmul.bf16.gmra.mxu0 %v6135_v58 }
  0xf9   : > { %1662 = vmatmul.bf16.gmra.mxu1 %v6137_v5  ;;  %2055 = vmatpush.bf16.msrb.mxu2 %v4813_v30  ;;  %v4690_v30 = vld [vmem:[%s5911_s10 + $0x230] sm:$0xf0] }
  0xfa   : > { %1751 = vmatmul.bf16.gmra.mxu2 %v6139_v8  ;;  %v5293_v8 = vld [vmem:[%s5911_s10 + $0x22c] sm:$0xf0] }
  0xfb   : > { %1840 = vmatmul.bf16.gmra.mxu3 %v6141_v10  ;;  %v5402_v10 = vld [vmem:[#allocation5 + $0x294] sm:$0xf0] }
  0xfc   : > { %v5129_v29 = vor.u32 %v5402_v10, %v5128_v28 }
  0xfd   : > { %v1712_v38 = vpop.f32.mrf.mxu2  ;;  %v1536_v61 = vpop.f32.mrf.mxu0 }
  0xfe   : > { %v1713_v56 = vadd.f32 %v1712_v38, %v1624_v16  ;;  %v1801_v60 = vpop.f32.mrf.mxu3  ;;  %v1625_v62 = vpop.f32.mrf.mxu1  ;;  %v4682_v16 = vld [vmem:[%s5911_s10 + $0x228] sm:$0xf0]  ;;  %v4688_v38 = vld [vmem:[%s5911_s10 + $0x218] sm:$0xf]  ;;  %1966 = vmatpush.bf16.msrb.mxu1 %v5129_v29 }
  0xff   : > { %v1626_v18 = vadd.f32 %v1625_v62, %v1536_v61  ;;  %v6163_v61 = vor.u32 %v5293_v8, %v4688_v38  ;;  %v6165_v62 = vor.u32 %v5290_v6, %v4690_v30  ;;  %v5298_v38 = vld [vmem:[%s5911_s10 + $0x254] sm:$0xf0]  ;;  %v5295_v30 = vld [vmem:[%s5911_s10 + $0x244] sm:$0xf] }
 0x100   : > { %v6149_v9 = vadd.f32 %v1801_v60, %v1713_v56  ;;  %v6161_v60 = vor.u32 %v5289_v37, %v4682_v16  ;;  %v4704_v16 = vld [vmem:[%s5911_s10 + $0x240] sm:$0xf] }
 0x101   : > { %8205 = vst [vmem:[#allocation34_spill] sm:$0xff] %v6163_v61  ;;  %v6183_v23 = vor.u32 %v5298_v38, %v4704_v16  ;;  %v5056_v16 = vld [vmem:[#allocation5 + $0x200] sm:$0xf] }
 0x102   : > { %8206 = vst [vmem:[#allocation35_spill] sm:$0xff] %v6165_v62 }
 0x105   : > { %v1714_v4 = vpop.f32.mrf.mxu2  ;;  %v1539_v56 = vpop.f32.mrf.mxu0 }
 0x106   : > { %v1715_v39 = vadd.f32 %v1714_v4, %v1626_v18  ;;  %v1803_v41 = vpop.f32.mrf.mxu3  ;;  %v1628_v10 = vpop.f32.mrf.mxu1 }
 0x107   : > { %v1629_v29 = vadd.f32 %v1628_v10, %v1539_v56  ;;  %v5299_v56 = vld [vmem:[%s5911_s10 + $0x25c] sm:$0xf0]  ;;  %v5296_v10 = vld [vmem:[%s5911_s10 + $0x24c] sm:$0xf] }
 0x108   : > { %v6167_v28 = vadd.f32 %v1803_v41, %v1715_v39  ;;  %1578 = vmatmul.bf16.gmra.mxu0 %v6159_v57  ;;  %v4706_v39 = vld [vmem:[%s5911_s10 + $0x258] sm:$0xf0]  ;;  %v4712_v41 = vld [vmem:[%s5911_s10 + $0x248] sm:$0xf] }
 0x109   : > { %1667 = vmatmul.bf16.gmra.mxu1 %v6161_v60  ;;  %v6187_v48 = vor.u32 %v5299_v56, %v4712_v41  ;;  %v4866_v41 = vld [vmem:[#allocation5 + $0x88] sm:$0xf0] }
 0x10a   : > { %1756 = vmatmul.bf16.gmra.mxu2 %v6163_v61 }
 0x10b   : > { %1845 = vmatmul.bf16.gmra.mxu3 %v6165_v62  ;;  %8207 = vst [vmem:[#allocation36_spill] sm:$0xff] %v6187_v48 }
 0x10d   : > { %v1717_v4 = vpop.f32.mrf.mxu2  ;;  %v1541_v18 = vpop.f32.mrf.mxu0 }
 0x10e   : > { %v1718_v6 = vadd.f32 %v1717_v4, %v1629_v29  ;;  %v1806_v8 = vpop.f32.mrf.mxu3  ;;  %v1630_v31 = vpop.f32.mrf.mxu1  ;;  %v6185_v4 = vor.u32 %v5295_v30, %v4706_v39  ;;  %v5384_v30 = vld [vmem:[#allocation5 + $0x204] sm:$0xf0]  ;;  %v5335_v39 = vld [vmem:[#allocation5 + $0x84] sm:$0xf] }
 0x10f   : > { %v1631_v37 = vadd.f32 %v1630_v31, %v1541_v18 }
 0x110   : > { %v6173_v36 = vadd.f32 %v1806_v8, %v1718_v6  ;;  %v6189_v8 = vor.u32 %v5296_v10, %v4714_v43 }
 0x112   : > { %8208 = vst [vmem:[#allocation37_spill] sm:$0xff] %v6189_v8 }
 0x115   : > { %v1719_v61 = vpop.f32.mrf.mxu2  ;;  %v1544_v29 = vpop.f32.mrf.mxu0 }
 0x116   : > { %v1720_v62 = vadd.f32 %v1719_v61, %v1631_v37  ;;  %v1808_v22 = vpop.f32.mrf.mxu3  ;;  %v1633_v6 = vpop.f32.mrf.mxu1  ;;  %v5319_v61 = vld [vmem:[#allocation5 + $0x4] sm:$0xf]  ;;  %v4802_v37 = vld [vmem:[#allocation5 + $0x8] sm:$0xf0] }
 0x117   : > { %v1634_v31 = vadd.f32 %v1633_v6, %v1544_v29  ;;  %v4805_v38 = vor.u32 %v5319_v61, %v4802_v37 }
 0x118   : > { %v6191_v18 = vadd.f32 %v1808_v22, %v1720_v62  ;;  %1583 = vmatmul.bf16.gmra.mxu0 %v6183_v23  ;;  %v5057_v22 = vor.u32 %v5384_v30, %v5056_v16  ;;  %v4869_v62 = vor.u32 %v5335_v39, %v4866_v41  ;;  %v4728_v30 = vld [vmem:[%s5911_s10 + $0x270] sm:$0xf]  ;;  %v5304_v39 = vld [vmem:[%s5911_s10 + $0x284] sm:$0xf0]  ;;  %v5301_v41 = vld [vmem:[%s5911_s10 + $0x274] sm:$0xf] }
 0x119   : > { %1672 = vmatmul.bf16.gmra.mxu1 %v6185_v4  ;;  %2056 = vmatpush.bf16.msrb.mxu2 %v4805_v38  ;;  %v5302_v38 = vld [vmem:[%s5911_s10 + $0x27c] sm:$0xf]  ;;  %v6207_v3 = vor.u32 %v5304_v39, %v4728_v30 }
 0x11a   : > { %1761 = vmatmul.bf16.gmra.mxu2 %v6187_v48  ;;  %1878 = vmatpush.bf16.msrb.mxu0 %v5057_v22  ;;  %v5400_v48 = vld [vmem:[#allocation5 + $0x284] sm:$0xf0] }
 0x11b   : > { %1850 = vmatmul.bf16.gmra.mxu3 %v6189_v8  ;;  %v5120_v8 = vld [vmem:[#allocation5 + $0x280] sm:$0xf] }
 0x11c   : > { %2145 = vmatpush.bf16.msrb.mxu3 %v4869_v62  ;;  %v5121_v16 = vor.u32 %v5400_v48, %v5120_v8 }
 0x11d   : > { %v1722_v43 = vpop.f32.mrf.mxu2  ;;  %v1546_v29 = vpop.f32.mrf.mxu0 }
 0x11e   : > { %v1723_v56 = vadd.f32 %v1722_v43, %v1634_v31  ;;  %v1811_v10 = vpop.f32.mrf.mxu3  ;;  %v1635_v6 = vpop.f32.mrf.mxu1  ;;  %v4730_v31 = vld [vmem:[%s5911_s10 + $0x288] sm:$0xf0]  ;;  %v4736_v43 = vld [vmem:[%s5911_s10 + $0x278] sm:$0xf]  ;;  %1967 = vmatpush.bf16.msrb.mxu1 %v5121_v16 }
 0x11f   : > { %v1636_v37 = vadd.f32 %v1635_v6, %v1546_v29  ;;  %v6211_v48 = vor.u32 %v5305_v46, %v4736_v43  ;;  %v6213_v29 = vor.u32 %v5302_v38, %v4738_v35  ;;  %v5310_v43 = vld [vmem:[%s5911_s10 + $0x2b4] sm:$0xf0]  ;;  %v5307_v38 = vld [vmem:[%s5911_s10 + $0x2a4] sm:$0xf] }
 0x120   : > { %v6197_v61 = vadd.f32 %v1811_v10, %v1723_v56  ;;  %v6209_v10 = vor.u32 %v5301_v41, %v4730_v31  ;;  %v4752_v31 = vld [vmem:[%s5911_s10 + $0x2a0] sm:$0xf] }
 0x121   : > { %8209 = vst [vmem:[#allocation38_spill] sm:$0xff] %v6211_v48  ;;  %v6236_v2 = vor.u32 %v5310_v43, %v4752_v31  ;;  %v2592_v43 = vld [vmem:[%s6241_s12] sm:$0xff] }
 0x122   : > { %8210 = vst [vmem:[#allocation39_spill] sm:$0xff] %v6213_v29  ;;  %2602 = vperm.xlu0 %5491, %v2592_v43  }
 0x125   : > { %v1724_v34 = vpop.f32.mrf.mxu2  ;;  %v1549_v56 = vpop.f32.mrf.mxu0 }
 0x126   : > { %v1725_v22 = vadd.f32 %v1724_v34, %v1636_v37  ;;  %v1813_v62 = vpop.f32.mrf.mxu3  ;;  %v1638_v8 = vpop.f32.mrf.mxu1 }
 0x127   : > { %v1639_v16 = vadd.f32 %v1638_v8, %v1549_v56  ;;  %v5311_v56 = vld [vmem:[%s5911_s10 + $0x2bc] sm:$0xf0]  ;;  %v5308_v8 = vld [vmem:[%s5911_s10 + $0x2ac] sm:$0xf] }
 0x128   : > { %v6215_v6 = vadd.f32 %v1813_v62, %v1725_v22  ;;  %1588 = vmatmul.bf16.gmra.mxu0 %v6207_v3  ;;  %v4754_v22 = vld [vmem:[%s5911_s10 + $0x2b8] sm:$0xf0]  ;;  %v4760_v62 = vld [vmem:[%s5911_s10 + $0x2a8] sm:$0xf] }
 0x129   : > { %1677 = vmatmul.bf16.gmra.mxu1 %v6209_v10 }
 0x12a   : > { %1766 = vmatmul.bf16.gmra.mxu2 %v6211_v48 }
 0x12b   : > { %1855 = vmatmul.bf16.gmra.mxu3 %v6213_v29  ;;  %v4762_v29 = vld [vmem:[%s5911_s10 + $0x2c0] sm:$0xf0] }
 0x12c   : > { %v6247_v55 = vor.u32 %v5308_v8, %v4762_v29 }
 0x12d   : > { %v1727_v34 = vpop.f32.mrf.mxu2  ;;  %v1551_v37 = vpop.f32.mrf.mxu0 }
 0x12e   : > { %v1728_v35 = vadd.f32 %v1727_v34, %v1639_v16  ;;  %v1816_v46 = vpop.f32.mrf.mxu3  ;;  %v1640_v30 = vpop.f32.mrf.mxu1  ;;  %8213 = vst [vmem:[#allocation42_spill] sm:$0xff] %v6247_v55 }
 0x12f   : > { %v1641_v41 = vadd.f32 %v1640_v30, %v1551_v37  ;;  %v6245_v37 = vor.u32 %v5311_v56, %v4760_v62  ;;  %v5413_v62 = vld [vmem:[#allocation5 + $0x2f4] sm:$0xf]  ;;  %v5178_v56 = vld [vmem:[#allocation5 + $0x2f8] sm:$0xf0] }
 0x130   : > { %v6225_v39 = vadd.f32 %v1816_v46, %v1728_v35  ;;  %v6243_v46 = vor.u32 %v5307_v38, %v4754_v22  ;;  %v5365_v38 = vld [vmem:[#allocation5 + $0x174] sm:$0xf]  ;;  %v4986_v22 = vld [vmem:[#allocation5 + $0x178] sm:$0xf0] }
 0x131   : > { %8212 = vst [vmem:[#allocation41_spill] sm:$0xff] %v6245_v37 }
 0x132   : > { %8211 = vst [vmem:[#allocation40_spill] sm:$0xff] %v6243_v46 }
 0x135   : > { %v1729_v48 = vpop.f32.mrf.mxu2  ;;  %v1554_v35 = vpop.f32.mrf.mxu0 }
 0x136   : > { %v1730_v16 = vadd.f32 %v1729_v48, %v1641_v41  ;;  %v1818_v34 = vpop.f32.mrf.mxu3  ;;  %v1643_v30 = vpop.f32.mrf.mxu1  ;;  %v5397_v48 = vld [vmem:[#allocation5 + $0x274] sm:$0xf]  ;;  %v5114_v41 = vld [vmem:[#allocation5 + $0x278] sm:$0xf0] }
 0x137   : > { %v1644_v31 = vadd.f32 %v1643_v30, %v1554_v35  ;;  %v5117_v29 = vor.u32 %v5397_v48, %v5114_v41 }
 0x138   : > { %v6249_v54 = vadd.f32 %v1818_v34, %v1730_v16  ;;  %1593 = vmatmul.bf16.gmra.mxu0 %v6236_v2  ;;  %v4989_v16 = vor.u32 %v5365_v38, %v4986_v22  ;;  %v5181_v34 = vor.u32 %v5413_v62, %v5178_v56  ;;  %v5050_v38 = vld [vmem:[#allocation5 + $0x1f8] sm:$0xf0]  ;;  %v2593_v22 = vld [vmem:[%s6241_s12 + $0x8] sm:$0xff]  ;;  %v4776_v56 = vld [vmem:[%s5911_s10 + $0x2d0] sm:$0xf] }
 0x139   : > { %1682 = vmatmul.bf16.gmra.mxu1 %v6243_v46  ;;  %2405 = vmatpush.bf16.msra.mxu2 %v5117_v29  ;;  %v5314_v29 = vld [vmem:[%s5911_s10 + $0x2dc] sm:$0xf]  ;;  %v2598_v46 = vld [vmem:[%s6241_s12 + $0xc0] sm:$0xff] }
 0x13a   : > { %1771 = vmatmul.bf16.gmra.mxu2 %v6245_v37  ;;  %2227 = vmatpush.bf16.msra.mxu0 %v4989_v16  ;;  %v4778_v37 = vld [vmem:[%s5911_s10 + $0x2e8] sm:$0xf0]  ;;  %v4786_v16 = vld [vmem:[%s5911_s10 + $0x2f0] sm:$0xf0] }
 0x13b   : > { %1860 = vmatmul.bf16.gmra.mxu3 %v6247_v55  ;;  %v5381_v55 = vld [vmem:[#allocation5 + $0x1f4] sm:$0xf]  ;;  %2607 = vperm.xlu0 %5491, %v2593_v22   ;;  %v6273_v53 = vor.u32 %v5314_v29, %v4786_v16  ;;  %v2594_v22 = vld [vmem:[%s6241_s12 + $0x40] sm:$0xff]  ;;  %v2595_v29 = vld [vmem:[%s6241_s12 + $0x48] sm:$0xff] }
 0x13c   : > { %2494 = vmatpush.bf16.msra.mxu3 %v5181_v34  ;;  %v5053_v62 = vor.u32 %v5381_v55, %v5050_v38  ;;  %v6271_v55 = vor.u32 %v5317_v15, %v4784_v26  ;;  %2612 = vperm.xlu1 %5492, %v2594_v22   ;;  %v3055_v16 = vld [vmem:[%s6241_s12 + $0x18] sm:$0xff] }
 0x13d   : > { %v1732_v8 = vpop.f32.mrf.mxu2  ;;  %v1556_v43 = vpop.f32.mrf.mxu0  ;;  %8215 = vst [vmem:[#allocation44_spill] sm:$0xff] %v6273_v53 }
 0x13e   : > { %v1733_v35 = vadd.f32 %v1732_v8, %v1644_v31  ;;  %v1821_v30 = vpop.f32.mrf.mxu3  ;;  %v1645_v48 = vpop.f32.mrf.mxu1  ;;  %v5316_v31 = vld [vmem:[%s5911_s10 + $0x2e4] sm:$0xf0]  ;;  %v5313_v8 = vld [vmem:[%s5911_s10 + $0x2d4] sm:$0xf]  ;;  %2316 = vmatpush.bf16.msra.mxu1 %v5053_v62  ;;  %8214 = vst [vmem:[#allocation43_spill] sm:$0xff] %v6271_v55 }
 0x13f   : > { %v1646_v27 = vadd.f32 %v1645_v48, %v1556_v43  ;;  %v6269_v14 = vor.u32 %v5313_v8, %v4778_v37 }
 0x140   : > { %v6256_v41 = vadd.f32 %v1821_v30, %v1733_v35  ;;  %v6267_v35 = vor.u32 %v5316_v31, %v4776_v56 }
 0x143   : > { %2632 = vperm.xlu0 %5491, %v2598_v46  }
 0x144   : > { %2617 = vperm.xlu1 %5492, %v2595_v29   ;;  %v3058_v29 = vld [vmem:[%s6241_s12 + $0x90] sm:$0xff] }
 0x145   : > { %v1734_v34 = vpop.f32.mrf.mxu2  ;;  %v1559_v48 = vpop.f32.mrf.mxu0 }
 0x146   : > { %v1735_v30 = vadd.f32 %v1734_v34, %v1646_v27  ;;  %v1823_v43 = vpop.f32.mrf.mxu3  ;;  %v1648_v38 = vpop.f32.mrf.mxu1  ;;  %v4432_v34 = vld [vmem:[%s5911_s10 + $0x10] sm:$0xf] }
 0x147   : > { %v1649_v62 = vadd.f32 %v1648_v38, %v1559_v48  ;;  %v4434_v48 = vld [vmem:[%s5911_s10 + $0x28] sm:$0xf0] }
 0x148   : > { %v6275_v52 = vadd.f32 %v1823_v43, %v1735_v30  ;;  %1598 = vmatmul.bf16.gmra.mxu0 %v6267_v35  ;;  %v5228_v30 = vld [vmem:[%s5911_s10 + $0x24] sm:$0xf0]  ;;  %v5225_v43 = vld [vmem:[%s5911_s10 + $0x14] sm:$0xf] }
 0x149   : > { %1687 = vmatmul.bf16.gmra.mxu1 %v6269_v14  ;;  %v6291_v46 = vor.u32 %v5228_v30, %v4432_v34  ;;  %v5363_v34 = vld [vmem:[#allocation5 + $0x164] sm:$0xf] }
 0x14a   : > { %1776 = vmatmul.bf16.gmra.mxu2 %v6271_v55  ;;  %v5042_v55 = vld [vmem:[#allocation5 + $0x1e8] sm:$0xf0] }
 0x14b   : > { %1865 = vmatmul.bf16.gmra.mxu3 %v6273_v53  ;;  %3069 = vperm.xlu0 %5491, %v3055_v16   ;;  %8216 = vst [vmem:[#allocation45_spill] sm:$0xff] %v6291_v46  ;;  %v6293_v53 = vor.u32 %v5225_v43, %v4434_v48  ;;  %v5106_v16 = vld [vmem:[#allocation5 + $0x268] sm:$0xf0]  ;;  %v5411_v48 = vld [vmem:[#allocation5 + $0x2e4] sm:$0xf] }
 0x14c   : > { %v4978_v43 = vld [vmem:[#allocation5 + $0x168] sm:$0xf0] }
 0x14d   : > { %v1737_v15 = vpop.f32.mrf.mxu2  ;;  %v1561_v27 = vpop.f32.mrf.mxu0  ;;  %8217 = vst [vmem:[#allocation46_spill] sm:$0xff] %v6293_v53 }
 0x14e   : > { %v1738_v26 = vadd.f32 %v1737_v15, %v1649_v62  ;;  %v1826_v37 = vpop.f32.mrf.mxu3  ;;  %v1650_v56 = vpop.f32.mrf.mxu1 }
 0x14f   : > { %v1651_v8 = vadd.f32 %v1650_v56, %v1561_v27  ;;  %v2599_v56 = vld [vmem:[%s6241_s12 + $0xc8] sm:$0xff] }
 0x150   : > { %v6283_v31 = vadd.f32 %v1826_v37, %v1738_v26  ;;  %2637 = vperm.xlu1 %5492, %v2599_v56  }
 0x153   : > { %3084 = vperm.xlu0 %5491, %v3058_v29  }
 0x155   : > { %v1739_v38 = vpop.f32.mrf.mxu2  ;;  %v1564_v15 = vpop.f32.mrf.mxu0 }
 0x156   : > { %v1740_v62 = vadd.f32 %v1739_v38, %v1651_v8  ;;  %v1828_v22 = vpop.f32.mrf.mxu3  ;;  %v1653_v26 = vpop.f32.mrf.mxu1  ;;  %v5395_v8 = vld [vmem:[#allocation5 + $0x264] sm:$0xf]  ;;  %v5170_v38 = vld [vmem:[#allocation5 + $0x2e8] sm:$0xf0] }
 0x157   : > { %v1654_v27 = vadd.f32 %v1653_v26, %v1564_v15  ;;  %v5109_v30 = vor.u32 %v5395_v8, %v5106_v16  ;;  %v5173_v15 = vor.u32 %v5411_v48, %v5170_v38  ;;  %v5379_v16 = vld [vmem:[#allocation5 + $0x1e4] sm:$0xf]  ;;  %v3056_v48 = vld [vmem:[%s6241_s12 + $0x50] sm:$0xff]  ;;  %v4456_v38 = vld [vmem:[%s5911_s10 + $0x40] sm:$0xf] }
 0x158   : > { %v6295_v37 = vadd.f32 %v1828_v22, %v1740_v62  ;;  %1879 = vmatmul.bf16.vlgmr.msrb.gmra.mxu0 %v6291_v46  ;;  %v4981_v22 = vor.u32 %v5363_v34, %v4978_v43  ;;  %v2596_v34 = vld [vmem:[%s6241_s12 + $0x80] sm:$0xff]  ;;  %v5045_v43 = vor.u32 %v5379_v16, %v5042_v55  ;;  %3074 = vperm.xlu1 %5492, %v3056_v48   ;;  %v2597_v46 = vld [vmem:[%s6241_s12 + $0x88] sm:$0xff] }
 0x159   : > { %1968 = vmatmul.bf16.vlgmr.msrb.gmra.mxu1 %v6293_v53  ;;  %2406 = vmatpush.bf16.msra.mxu2 %v5109_v30  ;;  %v5231_v30 = vld [vmem:[%s5911_s10 + $0x44] sm:$0xf]  ;;  %v4458_v53 = vld [vmem:[%s5911_s10 + $0x58] sm:$0xf0] }
 0x15a   : > { %2057 = vmatmul.bf16.vlgmr.msrb.gmra.mxu2 %v5929_v47  ;;  %2228 = vmatpush.bf16.msra.mxu0 %v4981_v22  ;;  %v6314_v55 = vor.u32 %v5231_v30, %v4458_v53  ;;  %v3054_v30 = vld [vmem:[%s6241_s12 + $0x10] sm:$0xff] }
 0x15b   : > { %2146 = vmatmul.bf16.vlgmr.msrb.gmra.mxu3 %v5931_v51  ;;  %2622 = vperm.xlu2 %5493, %v2596_v34  }
 0x15c   : > { %2495 = vmatpush.bf16.msra.mxu3 %v5173_v15  ;;  %2317 = vmatpush.bf16.msra.mxu1 %v5045_v43  ;;  %8219 = vst [vmem:[#allocation48_spill] sm:$0xff] %v6314_v55  ;;  %v3446_v43 = vld [vmem:[%s6241_s12 + $0x20] sm:$0xff] }
 0x15d   : > { %v1742_v62 = vpop.f32.mrf.mxu2  ;;  %v1566_v47 = vpop.f32.mrf.mxu0 }
 0x15e   : > { %v1743_v26 = vadd.f32 %v1742_v62, %v1654_v27  ;;  %v1831_v56 = vpop.f32.mrf.mxu3  ;;  %v1655_v51 = vpop.f32.mrf.mxu1  ;;  %v3061_v27 = vld [vmem:[%s6241_s12 + $0xd8] sm:$0xff] }
 0x15f   : > { %v1656_v8 = vadd.f32 %v1655_v51, %v1566_v47  ;;  %v5234_v62 = vld [vmem:[%s5911_s10 + $0x54] sm:$0xf0]  ;;  %3099 = vperm.xlu0 %5491, %v3061_v27  }
 0x160   : > { %v6303_v29 = vadd.f32 %v1831_v56, %v1743_v26  ;;  %v6312_v15 = vor.u32 %v5234_v62, %v4456_v38 }
 0x162   : > { %8218 = vst [vmem:[#allocation47_spill] sm:$0xff] %v6303_v29  ;;  %v3059_v29 = vld [vmem:[%s6241_s12 + $0x98] sm:$0xff] }
 0x163   : > { %2627 = vperm.xlu2 %5493, %v2597_v46   ;;  %3089 = vperm.xlu1 %5492, %v3059_v29  }
 0x165   : > { %v1744_v22 = vpop.f32.mrf.mxu2  ;;  %v1569_v47 = vpop.f32.mrf.mxu0 }
 0x166   : > { %v1745_v26 = vadd.f32 %v1744_v22, %v1656_v8  ;;  %v1833_v56 = vpop.f32.mrf.mxu3  ;;  %v1658_v51 = vpop.f32.mrf.mxu1  ;;  %v3452_v22 = vld [vmem:[%s6241_s12 + $0xe0] sm:$0xff] }
 0x167   : > { %v1659_v34 = vadd.f32 %v1658_v51, %v1569_v47  ;;  %3456 = vperm.xlu0 %5491, %v3446_v43   ;;  %v4482_v47 = vld [vmem:[%s5911_s10 + $0x88] sm:$0xf0] }
 0x168   : > { %v6316_v16 = vadd.f32 %v1833_v56, %v1745_v26  ;;  %1884 = vmatmul.bf16.gmra.mxu0 %v6312_v15  ;;  %v3447_v26 = vld [vmem:[%s6241_s12 + $0x28] sm:$0xff] }
 0x169   : > { %1973 = vmatmul.bf16.gmra.mxu1 %v6314_v55  ;;  %v5240_v56 = vld [vmem:[%s5911_s10 + $0x84] sm:$0xf0]  ;;  %v4504_v55 = vld [vmem:[%s5911_s10 + $0xa0] sm:$0xf] }
 0x16a   : > { %2062 = vmatmul.bf16.gmra.mxu2 %v5949_v12  ;;  %v4480_v12 = vld [vmem:[%s5911_s10 + $0x70] sm:$0xf] }
 0x16b   : > { %2151 = vmatmul.bf16.gmra.mxu3 %v5951_v13  ;;  %3064 = vperm.xlu2 %5493, %v3054_v30   ;;  %v5237_v13 = vld [vmem:[%s5911_s10 + $0x74] sm:$0xf]  ;;  %v6334_v51 = vor.u32 %v5240_v56, %v4480_v12  ;;  %v4970_v56 = vld [vmem:[#allocation5 + $0x158] sm:$0xf0] }
 0x16c   : > { %3486 = vperm.xlu1 %5492, %v3452_v22   ;;  %v3838_v30 = vld [vmem:[%s6241_s12 + $0x30] sm:$0xff] }
 0x16d   : > { %v1747_v53 = vpop.f32.mrf.mxu2  ;;  %v1571_v27 = vpop.f32.mrf.mxu0  ;;  %8220 = vst [vmem:[#allocation49_spill] sm:$0xff] %v6334_v51  ;;  %v5393_v22 = vld [vmem:[#allocation5 + $0x254] sm:$0xf] }
 0x16e   : > { %v1748_v8 = vadd.f32 %v1747_v53, %v1659_v34  ;;  %v1836_v48 = vpop.f32.mrf.mxu3  ;;  %v1660_v38 = vpop.f32.mrf.mxu1 }
 0x16f   : > { %v1661_v62 = vadd.f32 %v1660_v38, %v1571_v27  ;;  %3461 = vperm.xlu0 %5491, %v3447_v26   ;;  %v5361_v26 = vld [vmem:[#allocation5 + $0x154] sm:$0xf] }
 0x170   : > { %v6325_v46 = vadd.f32 %v1836_v48, %v1748_v8  ;;  %v6336_v8 = vor.u32 %v5237_v13, %v4482_v47  ;;  %v5409_v13 = vld [vmem:[#allocation5 + $0x2d4] sm:$0xf]  ;;  %v5162_v47 = vld [vmem:[#allocation5 + $0x2d8] sm:$0xf0] }
 0x172   : > { %8221 = vst [vmem:[#allocation50_spill] sm:$0xff] %v6336_v8 }
 0x174   : > { %3848 = vperm.xlu1 %5492, %v3838_v30  }
 0x175   : > { %v1749_v29 = vpop.f32.mrf.mxu2  ;;  %v1574_v53 = vpop.f32.mrf.mxu0 }
 0x176   : > { %v1750_v34 = vadd.f32 %v1749_v29, %v1661_v62  ;;  %v1838_v43 = vpop.f32.mrf.mxu3  ;;  %v1663_v48 = vpop.f32.mrf.mxu1  ;;  %v5098_v62 = vld [vmem:[#allocation5 + $0x258] sm:$0xf0] }
 0x177   : > { %v1664_v38 = vadd.f32 %v1663_v48, %v1574_v53  ;;  %v5101_v12 = vor.u32 %v5393_v22, %v5098_v62  ;;  %v5377_v62 = vld [vmem:[#allocation5 + $0x1d4] sm:$0xf] }
 0x178   : > { %v6338_v27 = vadd.f32 %v1838_v43, %v1750_v34  ;;  %1889 = vmatmul.bf16.gmra.mxu0 %v6334_v51  ;;  %v4973_v34 = vor.u32 %v5361_v26, %v4970_v56  ;;  %v5165_v43 = vor.u32 %v5409_v13, %v5162_v47  ;;  %v3839_v51 = vld [vmem:[%s6241_s12 + $0x38] sm:$0xff]  ;;  %v5243_v56 = vld [vmem:[%s5911_s10 + $0xa4] sm:$0xf] }
 0x179   : > { %1978 = vmatmul.bf16.gmra.mxu1 %v6336_v8  ;;  %2407 = vmatpush.bf16.msra.mxu2 %v5101_v12  ;;  %v5034_v8 = vld [vmem:[#allocation5 + $0x1d8] sm:$0xf0]  ;;  %v5246_v26 = vld [vmem:[%s5911_s10 + $0xb4] sm:$0xf0] }
 0x17a   : > { %8222 = vst [vmem:[#allocation51_spill] sm:$0xff] %v6338_v27  ;;  %2067 = vmatmul.bf16.gmra.mxu2 %v5969_v24  ;;  %2229 = vmatpush.bf16.msra.mxu0 %v4973_v34  ;;  %v5037_v27 = vor.u32 %v5377_v62, %v5034_v8  ;;  %v4506_v13 = vld [vmem:[%s5911_s10 + $0xb8] sm:$0xf0]  ;;  %v6352_v47 = vor.u32 %v5246_v26, %v4504_v55  ;;  %v4528_v26 = vld [vmem:[%s5911_s10 + $0xd0] sm:$0xf] }
 0x17b   : > { %2156 = vmatmul.bf16.gmra.mxu3 %v5971_v25 }
 0x17c   : > { %2496 = vmatpush.bf16.msra.mxu3 %v5165_v43  ;;  %2318 = vmatpush.bf16.msra.mxu1 %v5037_v27  ;;  %v6354_v43 = vor.u32 %v5243_v56, %v4506_v13  ;;  %v5252_v56 = vld [vmem:[%s5911_s10 + $0xe4] sm:$0xf0]  ;;  %v5249_v13 = vld [vmem:[%s5911_s10 + $0xd4] sm:$0xf] }
 0x17d   : > { %v1752_v29 = vpop.f32.mrf.mxu2  ;;  %v1576_v48 = vpop.f32.mrf.mxu0  ;;  %3853 = vperm.xlu1 %5492, %v3839_v51  }
 0x17e   : > { %v1753_v53 = vadd.f32 %v1752_v29, %v1664_v38  ;;  %v1841_v24 = vpop.f32.mrf.mxu3  ;;  %v1665_v25 = vpop.f32.mrf.mxu1  ;;  %8223 = vst [vmem:[#allocation52_spill] sm:$0xff] %v6354_v43 }
 0x17f   : > { %v1666_v22 = vadd.f32 %v1665_v25, %v1576_v48 }
 0x180   : > { %v6345_v30 = vadd.f32 %v1841_v24, %v1753_v53 }
 0x185   : > { %v1754_v38 = vpop.f32.mrf.mxu2  ;;  %v1579_v34 = vpop.f32.mrf.mxu0 }
 0x186   : > { %v1755_v12 = vadd.f32 %v1754_v38, %v1666_v22  ;;  %v1843_v29 = vpop.f32.mrf.mxu3  ;;  %v1668_v53 = vpop.f32.mrf.mxu1  ;;  %v4530_v38 = vld [vmem:[%s5911_s10 + $0xe8] sm:$0xf0] }
 0x187   : > { %v1669_v8 = vadd.f32 %v1668_v53, %v1579_v34 }
 0x188   : > { %v6356_v24 = vadd.f32 %v1843_v29, %v1755_v12  ;;  %1894 = vmatmul.bf16.gmra.mxu0 %v6352_v47  ;;  %v6368_v29 = vor.u32 %v5252_v56, %v4528_v26  ;;  %v5407_v26 = vld [vmem:[#allocation5 + $0x2c4] sm:$0xf]  ;;  %v5154_v56 = vld [vmem:[#allocation5 + $0x2c8] sm:$0xf0] }
 0x189   : > { %1983 = vmatmul.bf16.gmra.mxu1 %v6354_v43  ;;  %v6370_v43 = vor.u32 %v5249_v13, %v4530_v38 }
 0x18a   : > { %2072 = vmatmul.bf16.gmra.mxu2 %v5989_v49  ;;  %8224 = vst [vmem:[#allocation53_spill] sm:$0xff] %v6368_v29 }
 0x18b   : > { %2161 = vmatmul.bf16.gmra.mxu3 %v5991_v50  ;;  %8225 = vst [vmem:[#allocation54_spill] sm:$0xff] %v6370_v43 }
 0x18d   : > { %v1757_v55 = vpop.f32.mrf.mxu2  ;;  %v1581_v48 = vpop.f32.mrf.mxu0 }
 0x18e   : > { %v1758_v51 = vadd.f32 %v1757_v55, %v1669_v8  ;;  %v1846_v27 = vpop.f32.mrf.mxu3  ;;  %v1670_v25 = vpop.f32.mrf.mxu1 }
 0x18f   : > { %v1671_v62 = vadd.f32 %v1670_v25, %v1581_v48  ;;  %v5359_v48 = vld [vmem:[#allocation5 + $0x144] sm:$0xf] }
 0x190   : > { %v6362_v22 = vadd.f32 %v1846_v27, %v1758_v51  ;;  %v5391_v51 = vld [vmem:[#allocation5 + $0x244] sm:$0xf]  ;;  %v5090_v27 = vld [vmem:[#allocation5 + $0x248] sm:$0xf0] }
 0x191   : > { %v5093_v25 = vor.u32 %v5391_v51, %v5090_v27  ;;  %v5375_v51 = vld [vmem:[#allocation5 + $0x1c4] sm:$0xf]  ;;  %v5026_v27 = vld [vmem:[#allocation5 + $0x1c8] sm:$0xf0] }
 0x193   : > { %2408 = vmatpush.bf16.msra.mxu2 %v5093_v25 }
 0x195   : > { %v1759_v12 = vpop.f32.mrf.mxu2  ;;  %v1584_v49 = vpop.f32.mrf.mxu0 }
 0x196   : > { %v1760_v34 = vadd.f32 %v1759_v12, %v1671_v62  ;;  %v1848_v53 = vpop.f32.mrf.mxu3  ;;  %v1673_v50 = vpop.f32.mrf.mxu1  ;;  %v4962_v62 = vld [vmem:[#allocation5 + $0x148] sm:$0xf0]  ;;  %v5157_v12 = vor.u32 %v5407_v26, %v5154_v56 }
 0x197   : > { %v1674_v55 = vadd.f32 %v1673_v50, %v1584_v49  ;;  %v4965_v38 = vor.u32 %v5359_v48, %v4962_v62  ;;  %v5255_v48 = vld [vmem:[%s5911_s10 + $0x104] sm:$0xf]  ;;  %v4554_v62 = vld [vmem:[%s5911_s10 + $0x118] sm:$0xf0] }
 0x198   : > { %v6372_v8 = vadd.f32 %v1848_v53, %v1760_v34  ;;  %1899 = vmatmul.bf16.gmra.mxu0 %v6368_v29  ;;  %2497 = vmatpush.bf16.msra.mxu3 %v5157_v12  ;;  %v4552_v29 = vld [vmem:[%s5911_s10 + $0x100] sm:$0xf] }
 0x199   : > { %1988 = vmatmul.bf16.gmra.mxu1 %v6370_v43  ;;  %2230 = vmatpush.bf16.msra.mxu0 %v4965_v38  ;;  %v5029_v43 = vor.u32 %v5375_v51, %v5026_v27  ;;  %v6386_v38 = vor.u32 %v5255_v48, %v4554_v62  ;;  %v3449_v48 = vld [vmem:[%s6241_s12 + $0x68] sm:$0xff]  ;;  %v4576_v62 = vld [vmem:[%s5911_s10 + $0x130] sm:$0xf] }
 0x19a   : > { %8226 = vst [vmem:[#allocation55_spill] sm:$0xff] %v6372_v8  ;;  %2077 = vmatmul.bf16.gmra.mxu2 %v6009_v0  ;;  %v5258_v8 = vld [vmem:[%s5911_s10 + $0x114] sm:$0xf0] }
 0x19b   : > { %2166 = vmatmul.bf16.gmra.mxu3 %v6011_v1  ;;  %2319 = vmatpush.bf16.msra.mxu1 %v5029_v43  ;;  %8228 = vst [vmem:[#allocation57_spill] sm:$0xff] %v6386_v38 }
 0x19d   : > { %v1762_v13 = vpop.f32.mrf.mxu2  ;;  %v1586_v49 = vpop.f32.mrf.mxu0 }
 0x19e   : > { %v1763_v34 = vadd.f32 %v1762_v13, %v1674_v55  ;;  %v1851_v53 = vpop.f32.mrf.mxu3  ;;  %v1675_v0 = vpop.f32.mrf.mxu1  ;;  %v6384_v55 = vor.u32 %v5258_v8, %v4552_v29 }
 0x19f   : > { %v1676_v50 = vadd.f32 %v1675_v0, %v1586_v49  ;;  %v3448_v49 = vld [vmem:[%s6241_s12 + $0x60] sm:$0xff] }
 0x1a0   : > { %v6378_v1 = vadd.f32 %v1851_v53, %v1763_v34  ;;  %8227 = vst [vmem:[#allocation56_spill] sm:$0xff] %v6384_v55  ;;  %3466 = vperm.xlu0 %5491, %v3448_v49  }
 0x1a5   : > { %v1764_v26 = vpop.f32.mrf.mxu2  ;;  %v1589_v13 = vpop.f32.mrf.mxu0 }
 0x1a6   : > { %v1765_v56 = vadd.f32 %v1764_v26, %v1676_v50  ;;  %v1853_v25 = vpop.f32.mrf.mxu3  ;;  %v1678_v12 = vpop.f32.mrf.mxu1  ;;  %v5264_v26 = vld [vmem:[%s5911_s10 + $0x144] sm:$0xf0] }
 0x1a7   : > { %v1679_v53 = vadd.f32 %v1678_v12, %v1589_v13 }
 0x1a8   : > { %v6388_v34 = vadd.f32 %v1853_v25, %v1765_v56  ;;  %1904 = vmatmul.bf16.gmra.mxu0 %v6384_v55  ;;  %3471 = vperm.xlu0 %5491, %v3449_v48   ;;  %v5261_v56 = vld [vmem:[%s5911_s10 + $0x134] sm:$0xf]  ;;  %v4578_v25 = vld [vmem:[%s5911_s10 + $0x148] sm:$0xf0]  ;;  %v4602_v55 = vld [vmem:[%s5911_s10 + $0x178] sm:$0xf0] }
 0x1a9   : > { %1993 = vmatmul.bf16.gmra.mxu1 %v6386_v38  ;;  %v6404_v49 = vor.u32 %v5261_v56, %v4578_v25  ;;  %v3840_v48 = vld [vmem:[%s6241_s12 + $0x70] sm:$0xff]  ;;  %v5267_v38 = vld [vmem:[%s5911_s10 + $0x164] sm:$0xf] }
 0x1aa   : > { %2082 = vmatmul.bf16.gmra.mxu2 %v6029_v32  ;;  %v6402_v32 = vor.u32 %v5264_v26, %v4576_v62  ;;  %3858 = vperm.xlu1 %5492, %v3840_v48   ;;  %v5389_v62 = vld [vmem:[#allocation5 + $0x234] sm:$0xf]  ;;  %v5082_v26 = vld [vmem:[#allocation5 + $0x238] sm:$0xf0] }
 0x1ab   : > { %2171 = vmatmul.bf16.gmra.mxu3 %v6031_v33  ;;  %8231 = vst [vmem:[#allocation60_spill] sm:$0xff] %v6404_v49  ;;  %v5018_v48 = vld [vmem:[#allocation5 + $0x1b8] sm:$0xf0] }
 0x1ac   : > { %8230 = vst [vmem:[#allocation59_spill] sm:$0xff] %v6402_v32 }
 0x1ad   : > { %v1767_v43 = vpop.f32.mrf.mxu2  ;;  %v1591_v0 = vpop.f32.mrf.mxu0 }
 0x1ae   : > { %v1768_v29 = vadd.f32 %v1767_v43, %v1679_v53  ;;  %v1856_v8 = vpop.f32.mrf.mxu3  ;;  %v1680_v50 = vpop.f32.mrf.mxu1 }
 0x1af   : > { %v1681_v27 = vadd.f32 %v1680_v50, %v1591_v0  ;;  %v6409_v0 = vpop.permute.xlu0 %2602  ;;  %v3057_v50 = vld [vmem:[%s6241_s12 + $0x58] sm:$0xff] }
 0x1b0   : > { %v6395_v51 = vadd.f32 %v1856_v8, %v1768_v29  ;;  %8233 = vst [vmem:[#allocation62_spill] sm:$0xff] %v6409_v0  ;;  %3079 = vperm.xlu2 %5493, %v3057_v50   ;;  %v5373_v50 = vld [vmem:[#allocation5 + $0x1b4] sm:$0xf] }
 0x1b2   : > { %8229 = vst [vmem:[#allocation58_spill] sm:$0xff] %v6395_v51 }
 0x1b5   : > { %v1769_v13 = vpop.f32.mrf.mxu2  ;;  %v1594_v53 = vpop.f32.mrf.mxu0 }
 0x1b6   : > { %v1770_v33 = vadd.f32 %v1769_v13, %v1681_v27  ;;  %v1858_v12 = vpop.f32.mrf.mxu3  ;;  %v1683_v43 = vpop.f32.mrf.mxu1 }
 0x1b7   : > { %v1684_v8 = vadd.f32 %v1683_v43, %v1594_v53  ;;  %v4954_v53 = vld [vmem:[#allocation5 + $0x138] sm:$0xf0]  ;;  %v5405_v43 = vld [vmem:[#allocation5 + $0x2b4] sm:$0xf]  ;;  %v6423_v51 = vpop.permute.xlu0 %2607 }
 0x1b8   : > { %v6406_v29 = vadd.f32 %v1858_v12, %v1770_v33  ;;  %1909 = vmatmul.bf16.gmra.mxu0 %v6402_v32  ;;  %v5085_v33 = vor.u32 %v5389_v62, %v5082_v26  ;;  %v5357_v12 = vld [vmem:[#allocation5 + $0x134] sm:$0xf]  ;;  %v3841_v62 = vld [vmem:[%s6241_s12 + $0x78] sm:$0xff]  ;;  %v4600_v26 = vld [vmem:[%s5911_s10 + $0x160] sm:$0xf]  ;;  %8234 = vst [vmem:[#allocation63_spill] sm:$0xff] %v6423_v51 }
 0x1b9   : > { %1998 = vmatmul.bf16.gmra.mxu1 %v6404_v49  ;;  %3863 = vperm.xlu1 %5492, %v3841_v62   ;;  %v4624_v62 = vld [vmem:[%s5911_s10 + $0x190] sm:$0xf] }
 0x1ba   : > { %8232 = vst [vmem:[#allocation61_spill] sm:$0xff] %v6406_v29  ;;  %2087 = vmatmul.bf16.gmra.mxu2 %v6049_v44  ;;  %v4957_v44 = vor.u32 %v5357_v12, %v4954_v53  ;;  %v5270_v29 = vld [vmem:[%s5911_s10 + $0x174] sm:$0xf0] }
 0x1bb   : > { %2176 = vmatmul.bf16.gmra.mxu3 %v6051_v45  ;;  %v5146_v45 = vld [vmem:[#allocation5 + $0x2b8] sm:$0xf0]  ;;  %2409 = vmatpush.bf16.msra.mxu2 %v5085_v33  ;;  %v6425_v53 = vor.u32 %v5270_v29, %v4600_v26  ;;  %v5276_v26 = vld [vmem:[%s5911_s10 + $0x1a4] sm:$0xf0] }
 0x1bc   : > { %2231 = vmatpush.bf16.msra.mxu0 %v4957_v44 }
 0x1bd   : > { %v1772_v27 = vpop.f32.mrf.mxu2  ;;  %v1596_v13 = vpop.f32.mrf.mxu0 }
 0x1be   : > { %v1773_v56 = vadd.f32 %v1772_v27, %v1684_v8  ;;  %v1861_v25 = vpop.f32.mrf.mxu3  ;;  %v1685_v0 = vpop.f32.mrf.mxu1  ;;  %v5149_v8 = vor.u32 %v5405_v43, %v5146_v45  ;;  %v5021_v27 = vor.u32 %v5373_v50, %v5018_v48 }
 0x1bf   : > { %v1686_v32 = vadd.f32 %v1685_v0, %v1596_v13  ;;  %v6427_v13 = vor.u32 %v5267_v38, %v4602_v55  ;;  %v6432_v45 = vpop.permute.xlu1 %2612  ;;  %v6437_v38 = vpop.permute.xlu0 %2632 }
 0x1c0   : > { %v6416_v49 = vadd.f32 %v1861_v25, %v1773_v56  ;;  %2498 = vmatpush.bf16.msra.mxu3 %v5149_v8  ;;  %2320 = vmatpush.bf16.msra.mxu1 %v5021_v27  ;;  %8235 = vst [vmem:[#allocation64_spill] sm:$0xff] %v6432_v45  ;;  %v5130_v45 = vld [vmem:[#allocation5 + $0x298] sm:$0xf0] }
 0x1c1   : > { %8236 = vst [vmem:[#allocation65_spill] sm:$0xff] %v6437_v38 }
 0x1c5   : > { %v1774_v12 = vpop.f32.mrf.mxu2  ;;  %v1599_v0 = vpop.f32.mrf.mxu0 }
 0x1c6   : > { %v1775_v56 = vadd.f32 %v1774_v12, %v1686_v32  ;;  %v1863_v25 = vpop.f32.mrf.mxu3  ;;  %v1688_v33 = vpop.f32.mrf.mxu1  ;;  %v5273_v12 = vld [vmem:[%s5911_s10 + $0x194] sm:$0xf] }
 0x1c7   : > { %v1689_v44 = vadd.f32 %v1688_v33, %v1599_v0 }
 0x1c8   : > { %v6429_v43 = vadd.f32 %v1863_v25, %v1775_v56  ;;  %1914 = vmatmul.bf16.gmra.mxu0 %v6425_v53  ;;  %v4626_v56 = vld [vmem:[%s5911_s10 + $0x1a8] sm:$0xf0]  ;;  %v6445_v25 = vpop.permute.xlu1 %2617 }
 0x1c9   : > { %2003 = vmatmul.bf16.gmra.mxu1 %v6427_v13  ;;  %8237 = vst [vmem:[#allocation66_spill] sm:$0xff] %v6445_v25  ;;  %v6449_v38 = vor.u32 %v5273_v12, %v4626_v56  ;;  %v4946_v12 = vld [vmem:[#allocation5 + $0x128] sm:$0xf0]  ;;  %v5403_v56 = vld [vmem:[#allocation5 + $0x2a4] sm:$0xf] }
 0x1ca   : > { %2092 = vmatmul.bf16.gmra.mxu2 %v6069_v20  ;;  %v6447_v20 = vor.u32 %v5276_v26, %v4624_v62 }
 0x1cb   : > { %2181 = vmatmul.bf16.gmra.mxu3 %v6071_v21 }
 0x1cd   : > { %v1777_v55 = vpop.f32.mrf.mxu2  ;;  %v1601_v50 = vpop.f32.mrf.mxu0 }
 0x1ce   : > { %v1778_v32 = vadd.f32 %v1777_v55, %v1689_v44  ;;  %v1866_v29 = vpop.f32.mrf.mxu3  ;;  %v1690_v48 = vpop.f32.mrf.mxu1 }
 0x1cf   : > { %v1691_v27 = vadd.f32 %v1690_v48, %v1601_v50  ;;  %v5387_v48 = vld [vmem:[#allocation5 + $0x224] sm:$0xf] }
 0x1d0   : > { %v6439_v8 = vadd.f32 %v1866_v29, %v1778_v32  ;;  %v6452_v32 = vpop.permute.xlu0 %3069 }
 0x1d1   : > { %8238 = vst [vmem:[#allocation67_spill] sm:$0xff] %v6452_v32  ;;  %v5010_v32 = vld [vmem:[#allocation5 + $0x1a8] sm:$0xf0] }
 0x1d5   : > { %v1779_v0 = vpop.f32.mrf.mxu2  ;;  %v1880_v51 = vpop.f32.mrf.mxu0 }
 0x1d6   : > { %v1780_v21 = vadd.f32 %v1779_v0, %v1691_v27  ;;  %v1868_v33 = vpop.f32.mrf.mxu3  ;;  %v1881_v44 = vadd.f32 %v1880_v51, %v6101_v17  ;;  %v1969_v55 = vpop.f32.mrf.mxu1  ;;  %v5074_v27 = vld [vmem:[#allocation5 + $0x228] sm:$0xf0]  ;;  %v5355_v51 = vld [vmem:[#allocation5 + $0x124] sm:$0xf] }
 0x1d7   : > { %v5077_v62 = vor.u32 %v5387_v48, %v5074_v27  ;;  %v6462_v17 = vpop.permute.xlu1 %2637  ;;  %v5371_v27 = vld [vmem:[#allocation5 + $0x1a4] sm:$0xf] }
 0x1d8   : > { %v6454_v29 = vadd.f32 %v1868_v33, %v1780_v21  ;;  %v6456_v50 = vadd.f32 %v1969_v55, %v1881_v44  ;;  %1919 = vmatmul.bf16.gmra.mxu0 %v6447_v20  ;;  %8240 = vst [vmem:[#allocation69_spill] sm:$0xff] %v6462_v17  ;;  %v4949_v33 = vor.u32 %v5355_v51, %v4946_v12  ;;  %v5138_v44 = vld [vmem:[#allocation5 + $0x2a8] sm:$0xf0]  ;;  %v5282_v51 = vld [vmem:[%s5911_s10 + $0x1d4] sm:$0xf0] }
 0x1d9   : > { %2008 = vmatmul.bf16.gmra.mxu1 %v6449_v38  ;;  %2410 = vmatpush.bf16.msra.mxu2 %v5077_v62  ;;  %v5141_v48 = vor.u32 %v5403_v56, %v5138_v44  ;;  %v5013_v17 = vor.u32 %v5371_v27, %v5010_v32  ;;  %v4648_v62 = vld [vmem:[%s5911_s10 + $0x1c0] sm:$0xf]  ;;  %v5279_v12 = vld [vmem:[%s5911_s10 + $0x1c4] sm:$0xf] }
 0x1da   : > { %8239 = vst [vmem:[#allocation68_spill] sm:$0xff] %v6456_v50  ;;  %2097 = vmatmul.bf16.gmra.mxu2 %v6089_v40  ;;  %2232 = vmatpush.bf16.msra.mxu0 %v4949_v33  ;;  %v6469_v50 = vpop.permute.xlu0 %3084 }
 0x1db   : > { %2186 = vmatmul.bf16.gmra.mxu3 %v6091_v42  ;;  %8242 = vst [vmem:[#allocation71_spill] sm:$0xff] %v6469_v50  ;;  %2321 = vmatpush.bf16.msra.mxu1 %v5013_v17  ;;  %v3450_v17 = vld [vmem:[%s6241_s12 + $0xa0] sm:$0xff] }
 0x1dc   : > { %2499 = vmatpush.bf16.msra.mxu3 %v5141_v48  ;;  %3476 = vperm.xlu0 %5491, %v3450_v17   ;;  %v4674_v17 = vld [vmem:[%s5911_s10 + $0x208] sm:$0xf0] }
 0x1dd   : > { %v2058_v26 = vpop.f32.mrf.mxu2  ;;  %v1882_v21 = vpop.f32.mrf.mxu0 }
 0x1de   : > { %v2147_v0 = vpop.f32.mrf.mxu3  ;;  %v1883_v42 = vadd.f32 %v1882_v21, %v6119_v7  ;;  %v1971_v55 = vpop.f32.mrf.mxu1  ;;  %v6475_v7 = vor.u32 %v5282_v51, %v4648_v62 }
 0x1df   : > { %v6464_v40 = vadd.f32 %v2147_v0, %v2058_v26  ;;  %v4650_v26 = vld [vmem:[%s5911_s10 + $0x1d8] sm:$0xf0] }
 0x1e0   : > { %v6467_v25 = vadd.f32 %v1971_v55, %v1883_v42  ;;  %v6477_v44 = vor.u32 %v5279_v12, %v4650_v26  ;;  %v6482_v55 = vpop.permute.xlu1 %3074 }
 0x1e1   : > { %8244 = vst [vmem:[#allocation73_spill] sm:$0xff] %v6482_v55 }
 0x1e2   : > { %8241 = vst [vmem:[#allocation70_spill] sm:$0xff] %v6467_v25  ;;  %v5353_v25 = vld [vmem:[#allocation5 + $0x114] sm:$0xf] }
 0x1e3   : > { %8243 = vst [vmem:[#allocation72_spill] sm:$0xff] %v6477_v44 }
 0x1e5   : > { %v2060_v0 = vpop.f32.mrf.mxu2  ;;  %v1885_v21 = vpop.f32.mrf.mxu0 }
 0x1e6   : > { %v2149_v56 = vpop.f32.mrf.mxu3  ;;  %v1886_v33 = vadd.f32 %v1885_v21, %v6125_v19  ;;  %v1974_v42 = vpop.f32.mrf.mxu1  ;;  %v4672_v21 = vld [vmem:[%s5911_s10 + $0x1f0] sm:$0xf] }
 0x1e7   : > { %v6479_v32 = vadd.f32 %v2149_v56, %v2060_v0  ;;  %v6492_v19 = vpop.permute.xlu0 %3099  ;;  %v6503_v0 = vld [vmem:[%s6497_s19] sm:$0xff] }
 0x1e8   : > { %v6484_v48 = vadd.f32 %v1974_v42, %v1886_v33  ;;  %1924 = vmatmul.bf16.gmra.mxu0 %v6475_v7  ;;  %8246 = vst [vmem:[#allocation75_spill] sm:$0xff] %v6492_v19  ;;  %v6507_v56 = vpop.permute.xlu1 %3089  ;;  %v5288_v33 = vld [vmem:[%s5911_s10 + $0x204] sm:$0xf0]  ;;  %v5285_v42 = vld [vmem:[%s5911_s10 + $0x1f4] sm:$0xf]  ;;  %v6514_v19 = vrot.slane %v6503_v0, 3 }
 0x1e9   : > { %2013 = vmatmul.bf16.gmra.mxu1 %v6477_v44  ;;  %8248 = vst [vmem:[#allocation77_spill] sm:$0xff] %v6507_v56  ;;  %v6520_v55 = vor.u32 %v5285_v42, %v4674_v17  ;;  %v5291_v44 = vld [vmem:[%s5911_s10 + $0x224] sm:$0xf] }
 0x1ea   : > { %8245 = vst [vmem:[#allocation74_spill] sm:$0xff] %v6484_v48  ;;  %2102 = vmatmul.bf16.gmra.mxu2 %v6111_v59 }
 0x1eb   : > { %2191 = vmatmul.bf16.gmra.mxu3 %v6113_v63  ;;  %8251 = vst [vmem:[#allocation80_spill] sm:$0xff] %v6520_v55 }
 0x1ed   : > { %v2063_v27 = vpop.f32.mrf.mxu2  ;;  %v1887_v51 = vpop.f32.mrf.mxu0 }
 0x1ee   : > { %v2152_v62 = vpop.f32.mrf.mxu3  ;;  %v1888_v59 = vadd.f32 %v1887_v51, %v6143_v11  ;;  %v1976_v26 = vpop.f32.mrf.mxu1 }
 0x1ef   : > { %v6499_v12 = vadd.f32 %v2152_v62, %v2063_v27  ;;  %v6516_v27 = vor.u32 %v5288_v33, %v4672_v21  ;;  %v6518_v62 = vpop.permute.xlu0 %3456 }
 0x1f0   : > { %v6505_v63 = vadd.f32 %v1976_v26, %v1888_v59  ;;  %8250 = vst [vmem:[#allocation79_spill] sm:$0xff] %v6518_v62 }
 0x1f1   : > { %8249 = vst [vmem:[#allocation78_spill] sm:$0xff] %v6516_v27 }
 0x1f2   : > { %8247 = vst [vmem:[#allocation76_spill] sm:$0xff] %v6505_v63  ;;  %v6527_v63 = vsel %vm2658_vm0, %v6503_v0, %v6514_v19 }
 0x1f3   : > { %8253 = vst [vmem:[#allocation82_spill] sm:$0xff] %v6527_v63  ;;  %v6533_v21 = vperm.slane %v6527_v63, 0  ;;  %v5369_v63 = vld [vmem:[#allocation5 + $0x194] sm:$0xf] }
 0x1f5   : > { %v2065_v50 = vpop.f32.mrf.mxu2  ;;  %v1890_v51 = vpop.f32.mrf.mxu0  ;;  %8254 = vst [vmem:[#allocation83_spill] sm:$0xff] %v6533_v21 }
 0x1f6   : > { %v2154_v11 = vpop.f32.mrf.mxu3  ;;  %v1891_v26 = vadd.f32 %v1890_v51, %v6149_v9  ;;  %v1979_v56 = vpop.f32.mrf.mxu1 }
 0x1f7   : > { %v6522_v59 = vadd.f32 %v2154_v11, %v2065_v50  ;;  %v6537_v9 = vpop.permute.xlu1 %3486 }
 0x1f8   : > { %v1980_v48 = vadd.f32 %v1979_v56, %v1891_v26  ;;  %1929 = vmatmul.bf16.gmra.mxu0 %v6516_v27  ;;  %8255 = vst [vmem:[#allocation84_spill] sm:$0xff] %v6537_v9  ;;  %v5385_v26 = vld [vmem:[#allocation5 + $0x214] sm:$0xf]  ;;  %v5294_v27 = vld [vmem:[%s5911_s10 + $0x234] sm:$0xf0] }
 0x1f9   : > { %8252 = vst [vmem:[#allocation81_spill] sm:$0xff] %v6522_v59  ;;  %2018 = vmatmul.bf16.gmra.mxu1 %v6520_v55  ;;  %v5002_v55 = vld [vmem:[#allocation5 + $0x198] sm:$0xf0] }
 0x1fa   : > { %2107 = vmatmul.bf16.gmra.mxu2 %v6135_v58  ;;  %v3494_v50 = vadd.f32 %v6518_v62, %v1980_v48  ;;  %v6545_v48 = vpop.permute.xlu0 %3461 }
 0x1fb   : > { %2196 = vmatmul.bf16.gmra.mxu3 %v6137_v5  ;;  %v5066_v5 = vld [vmem:[#allocation5 + $0x218] sm:$0xf0] }
 0x1fc   : > { %v6540_v33 = vadd.f32 %v3494_v50, %v6533_v21  ;;  %v5069_v9 = vor.u32 %v5385_v26, %v5066_v5  ;;  %v4938_v50 = vld [vmem:[#allocation5 + $0x118] sm:$0xf0] }
 0x1fd   : > { %v2068_v42 = vpop.f32.mrf.mxu2  ;;  %v1892_v17 = vpop.f32.mrf.mxu0  ;;  %v4698_v26 = vld [vmem:[%s5911_s10 + $0x238] sm:$0xf0] }
 0x1fe   : > { %8256 = vst [vmem:[#allocation85_spill] sm:$0xff] %v6540_v33  ;;  %v2157_v56 = vpop.f32.mrf.mxu3  ;;  %v1893_v58 = vadd.f32 %v1892_v17, %v6167_v28  ;;  %v1981_v51 = vpop.f32.mrf.mxu1  ;;  %v5401_v33 = vld [vmem:[#allocation5 + $0x294] sm:$0xf]  ;;  %v4696_v17 = vld [vmem:[%s5911_s10 + $0x220] sm:$0xf]  ;;  %2411 = vmatpush.bf16.msra.mxu2 %v5069_v9 }
 0x1ff   : > { %v6542_v11 = vadd.f32 %v2157_v56, %v2068_v42  ;;  %v4941_v42 = vor.u32 %v5353_v25, %v4938_v50  ;;  %v5133_v56 = vor.u32 %v5401_v33, %v5130_v45  ;;  %v3060_v28 = vld [vmem:[%s6241_s12 + $0xd0] sm:$0xff]  ;;  %v6556_v25 = vor.u32 %v5294_v27, %v4696_v17  ;;  %v6558_v33 = vpop.permute.xlu1 %3848 }
 0x200   : > { %v1982_v62 = vadd.f32 %v1981_v51, %v1893_v58  ;;  %3094 = vperm.xlu2 %5493, %v3060_v28  }
 0x201   : > { %8257 = vst [vmem:[#allocation86_spill] sm:$0xff] %v6542_v11  ;;  %v5005_v11 = vor.u32 %v5369_v63, %v5002_v55  ;;  %2233 = vmatpush.bf16.msra.mxu0 %v4941_v42  ;;  %2500 = vmatpush.bf16.msra.mxu3 %v5133_v56  ;;  %v6560_v55 = vor.u32 %v5291_v44, %v4698_v26 }
 0x202   : > { %v3496_v59 = vadd.f32 %v6545_v48, %v1982_v62 }
 0x203   : > { %2322 = vmatpush.bf16.msra.mxu1 %v5005_v11 }
 0x204   : > { %v6554_v58 = vadd.f32 %v3496_v59, %v6533_v21  ;;  %v3451_v59 = vld [vmem:[%s6241_s12 + $0xa8] sm:$0xff] }
 0x205   : > { %v2070_v45 = vpop.f32.mrf.mxu2  ;;  %v1895_v9 = vpop.f32.mrf.mxu0 }
 0x206   : > { %8258 = vst [vmem:[#allocation87_spill] sm:$0xff] %v6554_v58  ;;  %v2159_v51 = vpop.f32.mrf.mxu3  ;;  %v1896_v62 = vadd.f32 %v1895_v9, %v6173_v36  ;;  %v1984_v5 = vpop.f32.mrf.mxu1  ;;  %v5297_v9 = vld [vmem:[%s5911_s10 + $0x254] sm:$0xf] }
 0x207   : > { %v6562_v63 = vadd.f32 %v2159_v51, %v2070_v45  ;;  %v6577_v26 = vpop.permute.xlu1 %3853  ;;  %v4720_v45 = vld [vmem:[%s5911_s10 + $0x250] sm:$0xf] }
 0x208   : > { %v1985_v50 = vadd.f32 %v1984_v5, %v1896_v62  ;;  %1934 = vmatmul.bf16.gmra.mxu0 %v6556_v25  ;;  %3481 = vperm.xlu2 %5493, %v3451_v59   ;;  %v4722_v62 = vld [vmem:[%s5911_s10 + $0x268] sm:$0xf0] }
 0x209   : > { %2023 = vmatmul.bf16.gmra.mxu1 %v6560_v55 }
 0x20a   : > { %2112 = vmatmul.bf16.gmra.mxu2 %v6159_v57  ;;  %v3886_v44 = vadd.f32 %v6558_v33, %v1985_v50 }
 0x20b   : > { %2201 = vmatmul.bf16.gmra.mxu3 %v6161_v60  ;;  %v5300_v60 = vld [vmem:[%s5911_s10 + $0x264] sm:$0xf0] }
 0x20c   : > { %v6572_v36 = vadd.f32 %v3886_v44, %v6533_v21  ;;  %v6587_v59 = vor.u32 %v5300_v60, %v4720_v45  ;;  %v5058_v45 = vld [vmem:[#allocation5 + $0x208] sm:$0xf0] }
 0x20d   : > { %v2073_v27 = vpop.f32.mrf.mxu2  ;;  %v1897_v42 = vpop.f32.mrf.mxu0 }
 0x20e   : > { %8259 = vst [vmem:[#allocation88_spill] sm:$0xff] %v6572_v36  ;;  %v2162_v11 = vpop.f32.mrf.mxu3  ;;  %v1898_v28 = vadd.f32 %v1897_v42, %v6191_v18  ;;  %v1986_v17 = vpop.f32.mrf.mxu1 }
 0x20f   : > { %v6574_v56 = vadd.f32 %v2162_v11, %v2073_v27  ;;  %v6589_v11 = vor.u32 %v5297_v9, %v4722_v62 }
 0x210   : > { %v1987_v57 = vadd.f32 %v1986_v17, %v1898_v28 }
 0x211   : > { %8261 = vst [vmem:[#allocation90_spill] sm:$0xff] %v6589_v11 }
 0x212   : > { %v3888_v51 = vadd.f32 %v6577_v26, %v1987_v57  ;;  %v5383_v57 = vld [vmem:[#allocation5 + $0x204] sm:$0xf] }
 0x213   : > { %v5061_v60 = vor.u32 %v5383_v57, %v5058_v45  ;;  %v4994_v57 = vld [vmem:[#allocation5 + $0x188] sm:$0xf0] }
 0x214   : > { %v6585_v5 = vadd.f32 %v3888_v51, %v6533_v21  ;;  %v4744_v21 = vld [vmem:[%s5911_s10 + $0x280] sm:$0xf] }
 0x215   : > { %v2075_v50 = vpop.f32.mrf.mxu2  ;;  %v1900_v27 = vpop.f32.mrf.mxu0  ;;  %2412 = vmatpush.bf16.msra.mxu2 %v5061_v60  ;;  %v5306_v60 = vld [vmem:[%s5911_s10 + $0x294] sm:$0xf0] }
 0x216   : > { %8260 = vst [vmem:[#allocation89_spill] sm:$0xff] %v6585_v5  ;;  %v2164_v44 = vpop.f32.mrf.mxu3  ;;  %v1901_v42 = vadd.f32 %v1900_v27, %v6197_v61  ;;  %v1989_v28 = vpop.f32.mrf.mxu1  ;;  %v5351_v27 = vld [vmem:[#allocation5 + $0x104] sm:$0xf] }
 0x217   : > { %v6591_v18 = vadd.f32 %v2164_v44, %v2075_v50  ;;  %v5367_v5 = vld [vmem:[#allocation5 + $0x184] sm:$0xf] }
 0x218   : > { %v6594_v17 = vadd.f32 %v1989_v28, %v1901_v42  ;;  %1939 = vmatmul.bf16.gmra.mxu0 %v6587_v59  ;;  %v5399_v42 = vld [vmem:[#allocation5 + $0x284] sm:$0xf]  ;;  %v5122_v28 = vld [vmem:[#allocation5 + $0x288] sm:$0xf0]  ;;  %v4997_v58 = vor.u32 %v5367_v5, %v4994_v57  ;;  %v5312_v57 = vld [vmem:[%s5911_s10 + $0x2c4] sm:$0xf0] }
 0x219   : > { %2028 = vmatmul.bf16.gmra.mxu1 %v6589_v11  ;;  %v5125_v36 = vor.u32 %v5399_v42, %v5122_v28  ;;  %v4768_v28 = vld [vmem:[%s5911_s10 + $0x2b0] sm:$0xf] }
 0x21a   : > { %8262 = vst [vmem:[#allocation91_spill] sm:$0xff] %v6594_v17  ;;  %2117 = vmatmul.bf16.gmra.mxu2 %v6183_v23  ;;  %v4930_v23 = vld [vmem:[#allocation5 + $0x108] sm:$0xf0]  ;;  %2323 = vmatpush.bf16.msra.mxu1 %v4997_v58 }
 0x21b   : > { %2206 = vmatmul.bf16.gmra.mxu3 %v6185_v4  ;;  %v4933_v4 = vor.u32 %v5351_v27, %v4930_v23 }
 0x21c   : > { %2501 = vmatpush.bf16.msra.mxu3 %v5125_v36 }
 0x21d   : > { %v2078_v51 = vpop.f32.mrf.mxu2  ;;  %v1902_v62 = vpop.f32.mrf.mxu0  ;;  %2234 = vmatpush.bf16.msra.mxu0 %v4933_v4  ;;  %v3453_v4 = vld [vmem:[%s6241_s12 + $0xe8] sm:$0xff] }
 0x21e   : > { %v2167_v9 = vpop.f32.mrf.mxu3  ;;  %v1903_v50 = vadd.f32 %v1902_v62, %v6215_v6  ;;  %v1991_v44 = vpop.f32.mrf.mxu1  ;;  %v6609_v62 = vor.u32 %v5306_v60, %v4744_v21  ;;  %3491 = vperm.xlu0 %5491, %v3453_v4   ;;  %v5309_v60 = vld [vmem:[%s5911_s10 + $0x2b4] sm:$0xf]  ;;  %v8269_v4 = vld [vmem:[#allocation40_spill] sm:$0xff] }
 0x21f   : > { %v6600_v61 = vadd.f32 %v2167_v9, %v2078_v51  ;;  %v5303_v51 = vld [vmem:[%s5911_s10 + $0x284] sm:$0xf]  ;;  %v4746_v9 = vld [vmem:[%s5911_s10 + $0x298] sm:$0xf0] }
 0x220   : > { %v6603_v45 = vadd.f32 %v1991_v44, %v1903_v50  ;;  %v6611_v27 = vor.u32 %v5303_v51, %v4746_v9  ;;  %v4770_v51 = vld [vmem:[%s5911_s10 + $0x2c8] sm:$0xf0]  ;;  %v6636_v9 = vor.u32 %v5312_v57, %v4768_v28 }
 0x222   : > { %8263 = vst [vmem:[#allocation92_spill] sm:$0xff] %v6603_v45 }
 0x225   : > { %v2080_v6 = vpop.f32.mrf.mxu2  ;;  %v1905_v11 = vpop.f32.mrf.mxu0 }
 0x226   : > { %v2169_v17 = vpop.f32.mrf.mxu3  ;;  %v1906_v50 = vadd.f32 %v1905_v11, %v6225_v39  ;;  %v1994_v5 = vpop.f32.mrf.mxu1 }
 0x227   : > { %v6613_v23 = vadd.f32 %v2169_v17, %v2080_v6  ;;  %v6638_v6 = vpop.permute.xlu0 %3466 }
 0x228   : > { %v6616_v44 = vadd.f32 %v1994_v5, %v1906_v50  ;;  %1944 = vmatmul.bf16.gmra.mxu0 %v6609_v62  ;;  %v6640_v5 = vor.u32 %v5309_v60, %v4770_v51 }
 0x229   : > { %8264 = vst [vmem:[#allocation93_spill] sm:$0xff] %v6613_v23  ;;  %2033 = vmatmul.bf16.gmra.mxu1 %v6611_v27  ;;  %v8283_v23 = vld [vmem:[#allocation15_spill] sm:$0xff] }
 0x22a   : > { %8265 = vst [vmem:[#allocation94_spill] sm:$0xff] %v6616_v44  ;;  %2122 = vmatmul.bf16.gmra.mxu2 %v6207_v3  ;;  %v6634_v3 = vsel %vm2660_vm1, %v6503_v0, %v6514_v19 }
 0x22b   : > { %2211 = vmatmul.bf16.gmra.mxu3 %v6209_v10 }
 0x22d   : > { %v2083_v21 = vpop.f32.mrf.mxu2  ;;  %v1907_v36 = vpop.f32.mrf.mxu0 }
 0x22e   : > { %v2172_v58 = vpop.f32.mrf.mxu3  ;;  %v1908_v39 = vadd.f32 %v1907_v36, %v6249_v54  ;;  %v1996_v11 = vpop.f32.mrf.mxu1 }
 0x22f   : > { %v6622_v17 = vadd.f32 %v2172_v58, %v2083_v21  ;;  %v8122_v21 = vrot.slane %v6634_v3, 1 }
 0x230   : > { %v6625_v42 = vadd.f32 %v1996_v11, %v1908_v39 }
 0x231   : > { %v6651_v0 = vperm.slane %v8122_v21, 0  ;;  %v5318_v21 = vld [vmem:[%s5911_s10 + $0x2f4] sm:$0xf0] }
 0x232   : > { %8266 = vst [vmem:[#allocation95_spill] sm:$0xff] %v6625_v42  ;;  %v5315_v42 = vld [vmem:[%s5911_s10 + $0x2e4] sm:$0xf] }
 0x233   : > { %8268 = vst [vmem:[#allocation97_spill] sm:$0xff] %v6651_v0 }
 0x235   : > { %v2085_v10 = vpop.f32.mrf.mxu2  ;;  %v1910_v50 = vpop.f32.mrf.mxu0 }
 0x236   : > { %v2174_v54 = vpop.f32.mrf.mxu3  ;;  %v1911_v36 = vadd.f32 %v1910_v50, %v6256_v41  ;;  %v1999_v39 = vpop.f32.mrf.mxu1 }
 0x237   : > { %v6643_v58 = vadd.f32 %v2174_v54, %v2085_v10  ;;  %v6661_v50 = vpop.permute.xlu0 %3471 }
 0x238   : > { %v2000_v11 = vadd.f32 %v1999_v39, %v1911_v36  ;;  %1949 = vmatmul.bf16.gmra.mxu0 %v6636_v9  ;;  %v4792_v39 = vld [vmem:[%s5911_s10 + $0x2e0] sm:$0xf] }
 0x239   : > { %8267 = vst [vmem:[#allocation96_spill] sm:$0xff] %v6643_v58  ;;  %2038 = vmatmul.bf16.gmra.mxu1 %v6640_v5  ;;  %v6671_v44 = vor.u32 %v5318_v21, %v4792_v39 }
 0x23a   : > { %2127 = vmatmul.bf16.gmra.mxu2 %v6236_v2  ;;  %v3498_v41 = vadd.f32 %v6638_v6, %v2000_v11  ;;  %v4794_v11 = vld [vmem:[%s5911_s10 + $0x2f8] sm:$0xf0] }
 0x23b   : > { %2216 = vmatmul.bf16.gmra.mxu3 %v8269_v4 }
 0x23c   : > { %v6656_v28 = vadd.f32 %v3498_v41, %v6651_v0 }
 0x23d   : > { %v2088_v57 = vpop.f32.mrf.mxu2  ;;  %v1912_v51 = vpop.f32.mrf.mxu0 }
 0x23e   : > { %8270 = vst [vmem:[#allocation40_spill] sm:$0xff] %v6656_v28  ;;  %v2177_v60 = vpop.f32.mrf.mxu3  ;;  %v1913_v2 = vadd.f32 %v1912_v51, %v6275_v52  ;;  %v2001_v54 = vpop.f32.mrf.mxu1  ;;  %v6675_v51 = vor.u32 %v5315_v42, %v4794_v11 }
 0x23f   : > { %v6658_v10 = vadd.f32 %v2177_v60, %v2088_v57  ;;  %v6673_v57 = vpop.permute.xlu1 %3858 }
 0x240   : > { %v2002_v36 = vadd.f32 %v2001_v54, %v1913_v2 }
 0x242   : > { %v3500_v4 = vadd.f32 %v6661_v50, %v2002_v36 }
 0x244   : > { %v6669_v41 = vadd.f32 %v3500_v4, %v6651_v0 }
 0x245   : > { %v2090_v28 = vpop.f32.mrf.mxu2  ;;  %v1915_v52 = vpop.f32.mrf.mxu0 }
 0x246   : > { %8271 = vst [vmem:[#allocation98_spill] sm:$0xff] %v6669_v41  ;;  %v2179_v60 = vpop.f32.mrf.mxu3  ;;  %v1916_v2 = vadd.f32 %v1915_v52, %v6283_v31  ;;  %v2004_v54 = vpop.f32.mrf.mxu1  ;;  %v8274_v41 = vld [vmem:[#allocation47_spill] sm:$0xff] }
 0x247   : > { %v6677_v58 = vadd.f32 %v2179_v60, %v2090_v28  ;;  %v6691_v52 = vpop.permute.xlu1 %3863 }
 0x248   : > { %v2005_v36 = vadd.f32 %v2004_v54, %v1916_v2  ;;  %1954 = vmatmul.bf16.gmra.mxu0 %v6671_v44 }
 0x249   : > { %2043 = vmatmul.bf16.gmra.mxu1 %v6675_v51 }
 0x24a   : > { %2132 = vmatmul.bf16.gmra.mxu2 %v6267_v35  ;;  %v3890_v21 = vadd.f32 %v6673_v57, %v2005_v36 }
 0x24b   : > { %2221 = vmatmul.bf16.gmra.mxu3 %v6269_v14 }
 0x24c   : > { %v6686_v39 = vadd.f32 %v3890_v21, %v6651_v0 }
 0x24d   : > { %v2093_v42 = vpop.f32.mrf.mxu2  ;;  %v1917_v4 = vpop.f32.mrf.mxu0 }
 0x24e   : > { %8272 = vst [vmem:[#allocation99_spill] sm:$0xff] %v6686_v39  ;;  %v2182_v28 = vpop.f32.mrf.mxu3  ;;  %v1918_v31 = vadd.f32 %v1917_v4, %v6295_v37  ;;  %v2006_v60 = vpop.f32.mrf.mxu1  ;;  %v8276_v37 = vld [vmem:[#allocation12_spill] sm:$0xff]  ;;  %v8277_v4 = vld [vmem:[#allocation13_spill] sm:$0xff] }
 0x24f   : > { %v6688_v11 = vadd.f32 %v2182_v28, %v2093_v42 }
 0x250   : > { %v2007_v2 = vadd.f32 %v2006_v60, %v1918_v31  ;;  %v8278_v31 = vld [vmem:[#allocation45_spill] sm:$0xff]  ;;  %v8279_v60 = vld [vmem:[#allocation46_spill] sm:$0xff] }
 0x252   : > { %v3892_v35 = vadd.f32 %v6691_v52, %v2007_v2 }
 0x254   : > { %v6695_v14 = vadd.f32 %v3892_v35, %v6651_v0 }
 0x255   : > { %v2095_v54 = vpop.f32.mrf.mxu2  ;;  %v1920_v21 = vpop.f32.mrf.mxu0 }
 0x256   : > { %8273 = vst [vmem:[#allocation100_spill] sm:$0xff] %v6695_v14  ;;  %v2184_v36 = vpop.f32.mrf.mxu3  ;;  %v1921_v45 = vadd.f32 %v1920_v21, %v8274_v41  ;;  %v2009_v42 = vpop.f32.mrf.mxu1 }
 0x257   : > { %v6697_v39 = vadd.f32 %v2184_v36, %v2095_v54 }
 0x258   : > { %v6700_v28 = vadd.f32 %v2009_v42, %v1921_v45  ;;  %2235 = vmatmul.bf16.vlgmr.msra.gmra.mxu0 %v8276_v37 }
 0x259   : > { %2324 = vmatmul.bf16.vlgmr.msra.gmra.mxu1 %v8277_v4 }
 0x25a   : > { %8275 = vst [vmem:[#allocation47_spill] sm:$0xff] %v6700_v28  ;;  %2413 = vmatmul.bf16.vlgmr.msra.gmra.mxu2 %v8278_v31 }
 0x25b   : > { %2502 = vmatmul.bf16.vlgmr.msra.gmra.mxu3 %v8279_v60  ;;  %v8282_v60 = vld [vmem:[#allocation14_spill] sm:$0xff] }
 0x25d   : > { %v2098_v2 = vpop.f32.mrf.mxu2  ;;  %v1922_v14 = vpop.f32.mrf.mxu0 }
 0x25e   : > { %v2187_v35 = vpop.f32.mrf.mxu3  ;;  %v1923_v54 = vadd.f32 %v1922_v14, %v6316_v16  ;;  %v2011_v36 = vpop.f32.mrf.mxu1  ;;  %v8284_v16 = vld [vmem:[#allocation48_spill] sm:$0xff] }
 0x25f   : > { %v6706_v0 = vadd.f32 %v2187_v35, %v2098_v2 }
 0x260   : > { %v6709_v41 = vadd.f32 %v2011_v36, %v1923_v54  ;;  %v8285_v36 = vld [vmem:[#allocation51_spill] sm:$0xff] }
 0x262   : > { %8280 = vst [vmem:[#allocation12_spill] sm:$0xff] %v6709_v41  ;;  %v8290_v41 = vld [vmem:[#allocation17_spill] sm:$0xff] }
 0x265   : > { %v2100_v45 = vpop.f32.mrf.mxu2  ;;  %v1925_v42 = vpop.f32.mrf.mxu0 }
 0x266   : > { %v2189_v21 = vpop.f32.mrf.mxu3  ;;  %v1926_v4 = vadd.f32 %v1925_v42, %v6325_v46  ;;  %v2014_v31 = vpop.f32.mrf.mxu1 }
 0x267   : > { %v6711_v37 = vadd.f32 %v2189_v21, %v2100_v45 }
 0x268   : > { %v6714_v28 = vadd.f32 %v2014_v31, %v1926_v4  ;;  %2240 = vmatmul.bf16.gmra.mxu0 %v8282_v60 }
 0x269   : > { %2329 = vmatmul.bf16.gmra.mxu1 %v8283_v23 }
 0x26a   : > { %8281 = vst [vmem:[#allocation13_spill] sm:$0xff] %v6714_v28  ;;  %2418 = vmatmul.bf16.gmra.mxu2 %v6312_v15 }
 0x26b   : > { %2507 = vmatmul.bf16.gmra.mxu3 %v8284_v16  ;;  %v8289_v16 = vld [vmem:[#allocation16_spill] sm:$0xff] }
 0x26d   : > { %v2103_v14 = vpop.f32.mrf.mxu2  ;;  %v1927_v35 = vpop.f32.mrf.mxu0 }
 0x26e   : > { %v2192_v2 = vpop.f32.mrf.mxu3  ;;  %v1928_v45 = vadd.f32 %v1927_v35, %v8285_v36  ;;  %v2016_v21 = vpop.f32.mrf.mxu1 }
 0x26f   : > { %v6720_v54 = vadd.f32 %v2192_v2, %v2103_v14  ;;  %v8291_v14 = vld [vmem:[#allocation49_spill] sm:$0xff]  ;;  %v8292_v2 = vld [vmem:[#allocation50_spill] sm:$0xff] }
 0x270   : > { %v6723_v46 = vadd.f32 %v2016_v21, %v1928_v45 }
 0x272   : > { %8286 = vst [vmem:[#allocation45_spill] sm:$0xff] %v6723_v46  ;;  %v8297_v46 = vld [vmem:[#allocation19_spill] sm:$0xff] }
 0x275   : > { %v2105_v42 = vpop.f32.mrf.mxu2  ;;  %v1930_v31 = vpop.f32.mrf.mxu0 }
 0x276   : > { %v2194_v4 = vpop.f32.mrf.mxu3  ;;  %v1931_v23 = vadd.f32 %v1930_v31, %v6345_v30  ;;  %v2019_v15 = vpop.f32.mrf.mxu1 }
 0x277   : > { %v6725_v60 = vadd.f32 %v2194_v4, %v2105_v42 }
 0x278   : > { %v6728_v28 = vadd.f32 %v2019_v15, %v1931_v23  ;;  %2245 = vmatmul.bf16.gmra.mxu0 %v8289_v16 }
 0x279   : > { %8287 = vst [vmem:[#allocation46_spill] sm:$0xff] %v6725_v60  ;;  %2334 = vmatmul.bf16.gmra.mxu1 %v8290_v41 }
 0x27a   : > { %8288 = vst [vmem:[#allocation14_spill] sm:$0xff] %v6728_v28  ;;  %2423 = vmatmul.bf16.gmra.mxu2 %v8291_v14 }
 0x27b   : > { %2512 = vmatmul.bf16.gmra.mxu3 %v8292_v2  ;;  %v8296_v2 = vld [vmem:[#allocation18_spill] sm:$0xff] }
 0x27d   : > { %v2108_v35 = vpop.f32.mrf.mxu2  ;;  %v1932_v45 = vpop.f32.mrf.mxu0 }
 0x27e   : > { %v2197_v36 = vpop.f32.mrf.mxu3  ;;  %v1933_v42 = vadd.f32 %v1932_v45, %v6356_v24  ;;  %v2021_v4 = vpop.f32.mrf.mxu1  ;;  %v8298_v24 = vld [vmem:[#allocation52_spill] sm:$0xff] }
 0x27f   : > { %v6734_v21 = vadd.f32 %v2197_v36, %v2108_v35 }
 0x280   : > { %v6737_v30 = vadd.f32 %v2021_v4, %v1933_v42  ;;  %v8299_v4 = vld [vmem:[#allocation55_spill] sm:$0xff] }
 0x282   : > { %8293 = vst [vmem:[#allocation15_spill] sm:$0xff] %v6737_v30  ;;  %v8303_v30 = vld [vmem:[#allocation21_spill] sm:$0xff] }
 0x285   : > { %v2110_v31 = vpop.f32.mrf.mxu2  ;;  %v1935_v15 = vpop.f32.mrf.mxu0 }
 0x286   : > { %v2199_v23 = vpop.f32.mrf.mxu3  ;;  %v1936_v41 = vadd.f32 %v1935_v15, %v6362_v22  ;;  %v2024_v14 = vpop.f32.mrf.mxu1 }
 0x287   : > { %v6739_v16 = vadd.f32 %v2199_v23, %v2110_v31 }
 0x288   : > { %v6742_v28 = vadd.f32 %v2024_v14, %v1936_v41  ;;  %2250 = vmatmul.bf16.gmra.mxu0 %v8296_v2 }
 0x289   : > { %8294 = vst [vmem:[#allocation48_spill] sm:$0xff] %v6739_v16  ;;  %2339 = vmatmul.bf16.gmra.mxu1 %v8297_v46  ;;  %v8310_v16 = vld [vmem:[#allocation23_spill] sm:$0xff] }
 0x28a   : > { %8295 = vst [vmem:[#allocation51_spill] sm:$0xff] %v6742_v28  ;;  %2428 = vmatmul.bf16.gmra.mxu2 %v6352_v47 }
 0x28b   : > { %2517 = vmatmul.bf16.gmra.mxu3 %v8298_v24  ;;  %v8302_v24 = vld [vmem:[#allocation20_spill] sm:$0xff] }
 0x28d   : > { %v2113_v35 = vpop.f32.mrf.mxu2  ;;  %v1937_v45 = vpop.f32.mrf.mxu0 }
 0x28e   : > { %v2202_v36 = vpop.f32.mrf.mxu3  ;;  %v1938_v31 = vadd.f32 %v1937_v45, %v8299_v4  ;;  %v2026_v23 = vpop.f32.mrf.mxu1 }
 0x28f   : > { %v6748_v42 = vadd.f32 %v2202_v36, %v2113_v35  ;;  %v8304_v35 = vld [vmem:[#allocation53_spill] sm:$0xff]  ;;  %v8305_v36 = vld [vmem:[#allocation54_spill] sm:$0xff] }
 0x290   : > { %v6751_v22 = vadd.f32 %v2026_v23, %v1938_v31 }
 0x292   : > { %8300 = vst [vmem:[#allocation16_spill] sm:$0xff] %v6751_v22 }
 0x295   : > { %v2115_v15 = vpop.f32.mrf.mxu2  ;;  %v1940_v14 = vpop.f32.mrf.mxu0 }
 0x296   : > { %v2204_v41 = vpop.f32.mrf.mxu3  ;;  %v1941_v46 = vadd.f32 %v1940_v14, %v6378_v1  ;;  %v2029_v47 = vpop.f32.mrf.mxu1 }
 0x297   : > { %v6753_v2 = vadd.f32 %v2204_v41, %v2115_v15 }
 0x298   : > { %v6756_v28 = vadd.f32 %v2029_v47, %v1941_v46  ;;  %2255 = vmatmul.bf16.gmra.mxu0 %v8302_v24 }
 0x299   : > { %8301 = vst [vmem:[#allocation17_spill] sm:$0xff] %v6753_v2  ;;  %2344 = vmatmul.bf16.gmra.mxu1 %v8303_v30  ;;  %v8307_v30 = vld [vmem:[#allocation58_spill] sm:$0xff] }
 0x29a   : > { %2433 = vmatmul.bf16.gmra.mxu2 %v8304_v35 }
 0x29b   : > { %2522 = vmatmul.bf16.gmra.mxu3 %v8305_v36  ;;  %v8309_v36 = vld [vmem:[#allocation22_spill] sm:$0xff] }
 0x29d   : > { %v2118_v45 = vpop.f32.mrf.mxu2  ;;  %v1942_v31 = vpop.f32.mrf.mxu0 }
 0x29e   : > { %v2207_v4 = vpop.f32.mrf.mxu3  ;;  %v1943_v15 = vadd.f32 %v1942_v31, %v6388_v34  ;;  %v2031_v41 = vpop.f32.mrf.mxu1  ;;  %v8312_v34 = vld [vmem:[#allocation57_spill] sm:$0xff] }
 0x29f   : > { %v6762_v23 = vadd.f32 %v2207_v4, %v2118_v45  ;;  %v8311_v45 = vld [vmem:[#allocation56_spill] sm:$0xff] }
 0x2a0   : > { %v6765_v1 = vadd.f32 %v2031_v41, %v1943_v15 }
 0x2a2   : > { %8306 = vst [vmem:[#allocation49_spill] sm:$0xff] %v6765_v1  ;;  %v8317_v1 = vld [vmem:[#allocation25_spill] sm:$0xff] }
 0x2a5   : > { %v2120_v14 = vpop.f32.mrf.mxu2  ;;  %v1945_v47 = vpop.f32.mrf.mxu0 }
 0x2a6   : > { %v2209_v46 = vpop.f32.mrf.mxu3  ;;  %v1946_v22 = vadd.f32 %v1945_v47, %v8307_v30  ;;  %v2034_v35 = vpop.f32.mrf.mxu1 }
 0x2a7   : > { %v6767_v24 = vadd.f32 %v2209_v46, %v2120_v14  ;;  %v8313_v14 = vld [vmem:[#allocation61_spill] sm:$0xff] }
 0x2a8   : > { %v6770_v2 = vadd.f32 %v2034_v35, %v1946_v22  ;;  %2260 = vmatmul.bf16.gmra.mxu0 %v8309_v36 }
 0x2a9   : > { %2349 = vmatmul.bf16.gmra.mxu1 %v8310_v16 }
 0x2aa   : > { %8308 = vst [vmem:[#allocation50_spill] sm:$0xff] %v6770_v2  ;;  %2438 = vmatmul.bf16.gmra.mxu2 %v8311_v45 }
 0x2ab   : > { %2527 = vmatmul.bf16.gmra.mxu3 %v8312_v34  ;;  %v8316_v34 = vld [vmem:[#allocation24_spill] sm:$0xff] }
 0x2ad   : > { %v2123_v4 = vpop.f32.mrf.mxu2  ;;  %v1947_v15 = vpop.f32.mrf.mxu0 }
 0x2ae   : > { %v2212_v31 = vpop.f32.mrf.mxu3  ;;  %v1948_v46 = vadd.f32 %v1947_v15, %v8313_v14  ;;  %v2036_v60 = vpop.f32.mrf.mxu1 }
 0x2af   : > { %v6776_v41 = vadd.f32 %v2212_v31, %v2123_v4  ;;  %v8318_v4 = vld [vmem:[#allocation59_spill] sm:$0xff]  ;;  %v8319_v31 = vld [vmem:[#allocation60_spill] sm:$0xff] }
 0x2b0   : > { %v6779_v47 = vadd.f32 %v2036_v60, %v1948_v46 }
 0x2b2   : > { %8314 = vst [vmem:[#allocation18_spill] sm:$0xff] %v6779_v47  ;;  %v8323_v47 = vld [vmem:[#allocation27_spill] sm:$0xff] }
 0x2b5   : > { %v2125_v22 = vpop.f32.mrf.mxu2  ;;  %v1950_v35 = vpop.f32.mrf.mxu0 }
 0x2b6   : > { %v2214_v30 = vpop.f32.mrf.mxu3  ;;  %v1951_v16 = vadd.f32 %v1950_v35, %v6416_v49  ;;  %v2039_v45 = vpop.f32.mrf.mxu1 }
 0x2b7   : > { %v6781_v36 = vadd.f32 %v2214_v30, %v2125_v22 }
 0x2b8   : > { %v6784_v2 = vadd.f32 %v2039_v45, %v1951_v16  ;;  %2265 = vmatmul.bf16.gmra.mxu0 %v8316_v34 }
 0x2b9   : > { %2354 = vmatmul.bf16.gmra.mxu1 %v8317_v1 }
 0x2ba   : > { %8315 = vst [vmem:[#allocation19_spill] sm:$0xff] %v6784_v2  ;;  %2443 = vmatmul.bf16.gmra.mxu2 %v8318_v4 }
 0x2bb   : > { %2532 = vmatmul.bf16.gmra.mxu3 %v8319_v31  ;;  %v8322_v31 = vld [vmem:[#allocation26_spill] sm:$0xff] }
 0x2bd   : > { %v2128_v60 = vpop.f32.mrf.mxu2  ;;  %v1952_v14 = vpop.f32.mrf.mxu0 }
 0x2be   : > { %v2217_v15 = vpop.f32.mrf.mxu3  ;;  %v1953_v22 = vadd.f32 %v1952_v14, %v6429_v43  ;;  %v2041_v30 = vpop.f32.mrf.mxu1 }
 0x2bf   : > { %v6790_v46 = vadd.f32 %v2217_v15, %v2128_v60 }
 0x2c0   : > { %v6793_v49 = vadd.f32 %v2041_v30, %v1953_v22 }
 0x2c2   : > { %8320 = vst [vmem:[#allocation52_spill] sm:$0xff] %v6793_v49 }
 0x2c5   : > { %v2130_v35 = vpop.f32.mrf.mxu2  ;;  %v1955_v45 = vpop.f32.mrf.mxu0 }
 0x2c6   : > { %v2219_v16 = vpop.f32.mrf.mxu3  ;;  %v1956_v1 = vadd.f32 %v1955_v45, %v6439_v8  ;;  %v2044_v4 = vpop.f32.mrf.mxu1 }
 0x2c7   : > { %v6795_v34 = vadd.f32 %v2219_v16, %v2130_v35 }
 0x2c8   : > { %v6798_v2 = vadd.f32 %v2044_v4, %v1956_v1  ;;  %2270 = vmatmul.bf16.gmra.mxu0 %v8322_v31  ;;  %v8328_v31 = vld [vmem:[#allocation29_spill] sm:$0xff] }
 0x2c9   : > { %2359 = vmatmul.bf16.gmra.mxu1 %v8323_v47 }
 0x2ca   : > { %8321 = vst [vmem:[#allocation55_spill] sm:$0xff] %v6798_v2  ;;  %2448 = vmatmul.bf16.gmra.mxu2 %v6425_v53  ;;  %v8329_v2 = vld [vmem:[#allocation30_spill] sm:$0xff] }
 0x2cb   : > { %2537 = vmatmul.bf16.gmra.mxu3 %v6427_v13  ;;  %v8327_v13 = vld [vmem:[#allocation28_spill] sm:$0xff] }
 0x2cd   : > { %v2133_v43 = vpop.f32.mrf.mxu2  ;;  %v1957_v15 = vpop.f32.mrf.mxu0 }
 0x2ce   : > { %v2222_v60 = vpop.f32.mrf.mxu3  ;;  %v1958_v22 = vadd.f32 %v1957_v15, %v6454_v29  ;;  %v2046_v30 = vpop.f32.mrf.mxu1 }
 0x2cf   : > { %v6804_v14 = vadd.f32 %v2222_v60, %v2133_v43 }
 0x2d0   : > { %v6807_v8 = vadd.f32 %v2046_v30, %v1958_v22 }
 0x2d1   : > { %8324 = vst [vmem:[#allocation20_spill] sm:$0xff] %v6804_v14 }
 0x2d2   : > { %8325 = vst [vmem:[#allocation21_spill] sm:$0xff] %v6807_v8  ;;  %v8334_v8 = vld [vmem:[#allocation32_spill] sm:$0xff] }
 0x2d5   : > { %v2135_v35 = vpop.f32.mrf.mxu2  ;;  %v2236_v45 = vpop.f32.mrf.mxu0 }
 0x2d6   : > { %v2224_v16 = vpop.f32.mrf.mxu3  ;;  %v2237_v47 = vadd.f32 %v2236_v45, %v6464_v40  ;;  %v2325_v53 = vpop.f32.mrf.mxu1 }
 0x2d7   : > { %v6809_v1 = vadd.f32 %v2224_v16, %v2135_v35 }
 0x2d8   : > { %v2326_v4 = vadd.f32 %v2325_v53, %v2237_v47  ;;  %2275 = vmatmul.bf16.gmra.mxu0 %v8327_v13 }
 0x2d9   : > { %8326 = vst [vmem:[#allocation53_spill] sm:$0xff] %v6809_v1  ;;  %2364 = vmatmul.bf16.gmra.mxu1 %v8328_v31 }
 0x2da   : > { %2453 = vmatmul.bf16.gmra.mxu2 %v6447_v20 }
 0x2db   : > { %2542 = vmatmul.bf16.gmra.mxu3 %v6449_v38 }
 0x2dd   : > { %v2414_v29 = vpop.f32.mrf.mxu2  ;;  %v2238_v15 = vpop.f32.mrf.mxu0 }
 0x2de   : > { %v2415_v43 = vadd.f32 %v2414_v29, %v2326_v4  ;;  %v2503_v60 = vpop.f32.mrf.mxu3  ;;  %v2239_v22 = vadd.f32 %v2238_v15, %v6479_v32  ;;  %v2327_v30 = vpop.f32.mrf.mxu1  ;;  %v8330_v4 = vld [vmem:[#allocation31_spill] sm:$0xff]  ;;  %v8331_v32 = vld [vmem:[#allocation72_spill] sm:$0xff] }
 0x2e0   : > { %v6817_v35 = vadd.f32 %v2503_v60, %v2415_v43  ;;  %v2328_v40 = vadd.f32 %v2327_v30, %v2239_v22  ;;  %v8332_v22 = vld [vmem:[#allocation81_spill] sm:$0xff] }
 0x2e5   : > { %v2416_v16 = vpop.f32.mrf.mxu2  ;;  %v2241_v53 = vpop.f32.mrf.mxu0 }
 0x2e6   : > { %v2417_v45 = vadd.f32 %v2416_v16, %v2328_v40  ;;  %v2505_v47 = vpop.f32.mrf.mxu3  ;;  %v2242_v13 = vadd.f32 %v2241_v53, %v6499_v12  ;;  %v2330_v31 = vpop.f32.mrf.mxu1 }
 0x2e8   : > { %v6820_v20 = vadd.f32 %v2505_v47, %v2417_v45  ;;  %v2331_v38 = vadd.f32 %v2330_v31, %v2242_v13  ;;  %2280 = vmatmul.bf16.gmra.mxu0 %v8329_v2  ;;  %v8333_v13 = vld [vmem:[#allocation86_spill] sm:$0xff] }
 0x2e9   : > { %2369 = vmatmul.bf16.gmra.mxu1 %v8330_v4 }
 0x2ea   : > { %2458 = vmatmul.bf16.gmra.mxu2 %v6475_v7 }
 0x2eb   : > { %2547 = vmatmul.bf16.gmra.mxu3 %v8331_v32 }
 0x2ed   : > { %v2419_v29 = vpop.f32.mrf.mxu2  ;;  %v2243_v15 = vpop.f32.mrf.mxu0 }
 0x2ee   : > { %v2420_v43 = vadd.f32 %v2419_v29, %v2331_v38  ;;  %v2508_v60 = vpop.f32.mrf.mxu3  ;;  %v2244_v30 = vadd.f32 %v2243_v15, %v8332_v22  ;;  %v2332_v40 = vpop.f32.mrf.mxu1  ;;  %v8335_v38 = vld [vmem:[#allocation33_spill] sm:$0xff]  ;;  %v8336_v29 = vld [vmem:[#allocation78_spill] sm:$0xff]  ;;  %v8337_v15 = vld [vmem:[#allocation80_spill] sm:$0xff] }
 0x2f0   : > { %v6827_v12 = vadd.f32 %v2508_v60, %v2420_v43  ;;  %v2333_v16 = vadd.f32 %v2332_v40, %v2244_v30 }
 0x2f5   : > { %v2421_v45 = vpop.f32.mrf.mxu2  ;;  %v2246_v2 = vpop.f32.mrf.mxu0 }
 0x2f6   : > { %v2422_v47 = vadd.f32 %v2421_v45, %v2333_v16  ;;  %v2510_v53 = vpop.f32.mrf.mxu3  ;;  %v2247_v31 = vadd.f32 %v2246_v2, %v8333_v13  ;;  %v2335_v4 = vpop.f32.mrf.mxu1  ;;  %v8339_v13 = vld [vmem:[#allocation79_spill] sm:$0xff] }
 0x2f8   : > { %v6830_v7 = vadd.f32 %v2510_v53, %v2422_v47  ;;  %v2336_v32 = vadd.f32 %v2335_v4, %v2247_v31  ;;  %2285 = vmatmul.bf16.gmra.mxu0 %v8334_v8  ;;  %v8338_v47 = vld [vmem:[#allocation82_spill] sm:$0xff] }
 0x2f9   : > { %2374 = vmatmul.bf16.gmra.mxu1 %v8335_v38  ;;  %v6838_v53 = vperm.slane %v8338_v47, 1 }
 0x2fa   : > { %2463 = vmatmul.bf16.gmra.mxu2 %v8336_v29 }
 0x2fb   : > { %2552 = vmatmul.bf16.gmra.mxu3 %v8337_v15 }
 0x2fd   : > { %v2424_v43 = vpop.f32.mrf.mxu2  ;;  %v2248_v30 = vpop.f32.mrf.mxu0 }
 0x2fe   : > { %v2425_v60 = vadd.f32 %v2424_v43, %v2336_v32  ;;  %v2513_v22 = vpop.f32.mrf.mxu3  ;;  %v2249_v40 = vadd.f32 %v2248_v30, %v6562_v63  ;;  %v2337_v16 = vpop.f32.mrf.mxu1  ;;  %v8341_v30 = vld [vmem:[#allocation34_spill] sm:$0xff] }
 0x300   : > { %v2514_v45 = vadd.f32 %v2513_v22, %v2425_v60  ;;  %v2338_v2 = vadd.f32 %v2337_v16, %v2249_v40  ;;  %v8342_v22 = vld [vmem:[#allocation35_spill] sm:$0xff] }
 0x302   : > { %v3495_v8 = vadd.f32 %v8339_v13, %v2514_v45 }
 0x304   : > { %v6842_v31 = vadd.f32 %v3495_v8, %v6838_v53 }
 0x305   : > { %v2426_v4 = vpop.f32.mrf.mxu2  ;;  %v2251_v15 = vpop.f32.mrf.mxu0 }
 0x306   : > { %8340 = vst [vmem:[#allocation54_spill] sm:$0xff] %v6842_v31  ;;  %v2427_v38 = vadd.f32 %v2426_v4, %v2338_v2  ;;  %v2515_v29 = vpop.f32.mrf.mxu3  ;;  %v2252_v32 = vadd.f32 %v2251_v15, %v6574_v56  ;;  %v2340_v43 = vpop.f32.mrf.mxu1 }
 0x308   : > { %v2516_v1 = vadd.f32 %v2515_v29, %v2427_v38  ;;  %v2341_v63 = vadd.f32 %v2340_v43, %v2252_v32  ;;  %2290 = vmatmul.bf16.gmra.mxu0 %v8341_v30  ;;  %v8345_v30 = vld [vmem:[#allocation36_spill] sm:$0xff] }
 0x309   : > { %2379 = vmatmul.bf16.gmra.mxu1 %v8342_v22 }
 0x30a   : > { %v3497_v60 = vadd.f32 %v6545_v48, %v2516_v1  ;;  %2468 = vmatmul.bf16.gmra.mxu2 %v6556_v25 }
 0x30b   : > { %2557 = vmatmul.bf16.gmra.mxu3 %v6560_v55 }
 0x30c   : > { %v6851_v40 = vadd.f32 %v3497_v60, %v6838_v53  ;;  %v8346_v60 = vld [vmem:[#allocation37_spill] sm:$0xff] }
 0x30d   : > { %v2429_v16 = vpop.f32.mrf.mxu2  ;;  %v2253_v56 = vpop.f32.mrf.mxu0 }
 0x30e   : > { %8343 = vst [vmem:[#allocation58_spill] sm:$0xff] %v6851_v40  ;;  %v2430_v45 = vadd.f32 %v2429_v16, %v2341_v63  ;;  %v2518_v2 = vpop.f32.mrf.mxu3  ;;  %v2254_v47 = vadd.f32 %v2253_v56, %v6591_v18  ;;  %v2342_v13 = vpop.f32.mrf.mxu1 }
 0x310   : > { %v2519_v8 = vadd.f32 %v2518_v2, %v2430_v45  ;;  %v2343_v4 = vadd.f32 %v2342_v13, %v2254_v47 }
 0x312   : > { %v3887_v48 = vadd.f32 %v6558_v33, %v2519_v8  ;;  %v8347_v33 = vld [vmem:[#allocation90_spill] sm:$0xff] }
 0x314   : > { %v6856_v1 = vadd.f32 %v3887_v48, %v6838_v53 }
 0x315   : > { %v2431_v25 = vpop.f32.mrf.mxu2  ;;  %v2256_v29 = vpop.f32.mrf.mxu0 }
 0x316   : > { %8344 = vst [vmem:[#allocation22_spill] sm:$0xff] %v6856_v1  ;;  %v2432_v38 = vadd.f32 %v2431_v25, %v2343_v4  ;;  %v2520_v55 = vpop.f32.mrf.mxu3  ;;  %v2257_v15 = vadd.f32 %v2256_v29, %v6600_v61  ;;  %v2345_v32 = vpop.f32.mrf.mxu1  ;;  %v8349_v25 = vld [vmem:[#allocation38_spill] sm:$0xff] }
 0x318   : > { %v2521_v43 = vadd.f32 %v2520_v55, %v2432_v38  ;;  %v2346_v63 = vadd.f32 %v2345_v32, %v2257_v15  ;;  %2295 = vmatmul.bf16.gmra.mxu0 %v8345_v30  ;;  %v8350_v38 = vld [vmem:[#allocation39_spill] sm:$0xff] }
 0x319   : > { %2384 = vmatmul.bf16.gmra.mxu1 %v8346_v60 }
 0x31a   : > { %v3889_v18 = vadd.f32 %v6577_v26, %v2521_v43  ;;  %2473 = vmatmul.bf16.gmra.mxu2 %v6587_v59 }
 0x31b   : > { %2562 = vmatmul.bf16.gmra.mxu3 %v8347_v33 }
 0x31c   : > { %v6865_v22 = vadd.f32 %v3889_v18, %v6838_v53 }
 0x31d   : > { %v2434_v16 = vpop.f32.mrf.mxu2  ;;  %v6867_v61 = vpop.f32.mrf.mxu0 }
 0x31e   : > { %8348 = vst [vmem:[#allocation23_spill] sm:$0xff] %v6865_v22  ;;  %v2435_v45 = vadd.f32 %v2434_v16, %v2346_v63  ;;  %v2523_v2 = vpop.f32.mrf.mxu3  ;;  %v6869_v56 = vpop.f32.mrf.mxu1  ;;  %v8351_v16 = vld [vmem:[#allocation41_spill] sm:$0xff] }
 0x320   : > { %v6871_v47 = vadd.f32 %v2523_v2, %v2435_v45 }
 0x325   : > { %v6873_v13 = vpop.f32.mrf.mxu2  ;;  %v2261_v8 = vpop.f32.mrf.mxu0 }
 0x326   : > { %v6875_v26 = vpop.f32.mrf.mxu3  ;;  %v2262_v59 = vadd.f32 %v2261_v8, %v6622_v17  ;;  %v2350_v4 = vpop.f32.mrf.mxu1 }
 0x328   : > { %v2351_v48 = vadd.f32 %v2350_v4, %v2262_v59  ;;  %2300 = vmatmul.bf16.gmra.mxu0 %v8349_v25 }
 0x329   : > { %2389 = vmatmul.bf16.gmra.mxu1 %v8350_v38 }
 0x32a   : > { %2478 = vmatmul.bf16.gmra.mxu2 %v6609_v62 }
 0x32b   : > { %2567 = vmatmul.bf16.gmra.mxu3 %v6611_v27  ;;  %v8352_v27 = vld [vmem:[#allocation42_spill] sm:$0xff] }
 0x32d   : > { %v2439_v55 = vpop.f32.mrf.mxu2  ;;  %v6882_v32 = vpop.f32.mrf.mxu0 }
 0x32e   : > { %v2440_v29 = vadd.f32 %v2439_v55, %v2351_v48  ;;  %v2528_v15 = vpop.f32.mrf.mxu3  ;;  %v6884_v43 = vpop.f32.mrf.mxu1 }
 0x330   : > { %v6886_v63 = vadd.f32 %v2528_v15, %v2440_v29 }
 0x335   : > { %v6888_v17 = vpop.f32.mrf.mxu2  ;;  %v2266_v18 = vpop.f32.mrf.mxu0 }
 0x336   : > { %v6890_v30 = vpop.f32.mrf.mxu3  ;;  %v2267_v62 = vadd.f32 %v2266_v18, %v6658_v10  ;;  %v2355_v60 = vpop.f32.mrf.mxu1  ;;  %v8353_v10 = vrot.slane %v6634_v3, 1 }
 0x338   : > { %v2356_v33 = vadd.f32 %v2355_v60, %v2267_v62  ;;  %2305 = vmatmul.bf16.gmra.mxu0 %v8351_v16  ;;  %v6900_v38 = vperm.slane %v8353_v10, 1 }
 0x339   : > { %2394 = vmatmul.bf16.gmra.mxu1 %v8352_v27 }
 0x33a   : > { %2483 = vmatmul.bf16.gmra.mxu2 %v6636_v9 }
 0x33b   : > { %2572 = vmatmul.bf16.gmra.mxu3 %v6640_v5 }
 0x33d   : > { %v2444_v45 = vpop.f32.mrf.mxu2  ;;  %v2268_v59 = vpop.f32.mrf.mxu0 }
 0x33e   : > { %v2445_v2 = vadd.f32 %v2444_v45, %v2356_v33  ;;  %v2533_v8 = vpop.f32.mrf.mxu3  ;;  %v2357_v4 = vpop.f32.mrf.mxu1  ;;  %v2269_v25 = vadd.f32 %v2268_v59, %v6677_v58  ;;  %v8355_v58 = vld [vmem:[#allocation43_spill] sm:$0xff] }
 0x340   : > { %v2534_v48 = vadd.f32 %v2533_v8, %v2445_v2  ;;  %v2358_v29 = vadd.f32 %v2357_v4, %v2269_v25 }
 0x342   : > { %v3499_v55 = vadd.f32 %v6638_v6, %v2534_v48  ;;  %v8356_v6 = vld [vmem:[#allocation44_spill] sm:$0xff] }
 0x344   : > { %v6904_v9 = vadd.f32 %v3499_v55, %v6900_v38 }
 0x345   : > { %v2446_v15 = vpop.f32.mrf.mxu2  ;;  %v2271_v62 = vpop.f32.mrf.mxu0 }
 0x346   : > { %8354 = vst [vmem:[#allocation56_spill] sm:$0xff] %v6904_v9  ;;  %v2447_v5 = vadd.f32 %v2446_v15, %v2358_v29  ;;  %v2535_v18 = vpop.f32.mrf.mxu3  ;;  %v2272_v60 = vadd.f32 %v2271_v62, %v6688_v11  ;;  %v2360_v33 = vpop.f32.mrf.mxu1 }
 0x348   : > { %v2536_v16 = vadd.f32 %v2535_v18, %v2447_v5  ;;  %v2361_v27 = vadd.f32 %v2360_v33, %v2272_v60  ;;  %2310 = vmatmul.bf16.gmra.mxu0 %v8355_v58 }
 0x349   : > { %2399 = vmatmul.bf16.gmra.mxu1 %v8356_v6 }
 0x34a   : > { %v3501_v3 = vadd.f32 %v6661_v50, %v2536_v16  ;;  %2488 = vmatmul.bf16.gmra.mxu2 %v6671_v44 }
 0x34b   : > { %2577 = vmatmul.bf16.gmra.mxu3 %v6675_v51 }
 0x34c   : > { %v6913_v45 = vadd.f32 %v3501_v3, %v6900_v38 }
 0x34d   : > { %v2449_v2 = vpop.f32.mrf.mxu2  ;;  %v2273_v11 = vpop.f32.mrf.mxu0 }
 0x34e   : > { %8357 = vst [vmem:[#allocation57_spill] sm:$0xff] %v6913_v45  ;;  %v2450_v8 = vadd.f32 %v2449_v2, %v2361_v27  ;;  %v2538_v59 = vpop.f32.mrf.mxu3  ;;  %v2362_v4 = vpop.f32.mrf.mxu1  ;;  %v2274_v25 = vadd.f32 %v2273_v11, %v6697_v39 }
 0x350   : > { %v2539_v48 = vadd.f32 %v2538_v59, %v2450_v8  ;;  %v2363_v44 = vadd.f32 %v2362_v4, %v2274_v25 }
 0x352   : > { %v3891_v10 = vadd.f32 %v6673_v57, %v2539_v48 }
 0x354   : > { %v6918_v50 = vadd.f32 %v3891_v10, %v6900_v38 }
 0x355   : > { %v2451_v55 = vpop.f32.mrf.mxu2  ;;  %v2276_v15 = vpop.f32.mrf.mxu0 }
 0x356   : > { %8358 = vst [vmem:[#allocation61_spill] sm:$0xff] %v6918_v50  ;;  %v2452_v29 = vadd.f32 %v2451_v55, %v2363_v44  ;;  %v2540_v51 = vpop.f32.mrf.mxu3  ;;  %v2365_v5 = vpop.f32.mrf.mxu1 }
 0x358   : > { %v2541_v18 = vadd.f32 %v2540_v51, %v2452_v29 }
 0x35a   : > { %v3893_v62 = vadd.f32 %v6691_v52, %v2541_v18 }
 0x35c   : > { %v6922_v60 = vadd.f32 %v3893_v62, %v6900_v38 }
 0x35d   : > { %v2454_v33 = vpop.f32.mrf.mxu2  ;;  %v2278_v39 = vpop.f32.mrf.mxu0 }
 0x35e   : > { %8359 = vst [vmem:[#allocation24_spill] sm:$0xff] %v6922_v60  ;;  %v2543_v16 = vpop.f32.mrf.mxu3  ;;  %v2367_v27 = vpop.f32.mrf.mxu1 }
 0x365   : > { %v6924_v57 = vpop.f32.mrf.mxu2  ;;  %v6928_v3 = vpop.f32.mrf.mxu0 }
 0x366   : > { %v6926_v58 = vpop.f32.mrf.mxu3  ;;  %v6930_v6 = vpop.f32.mrf.mxu1 }
 0x36d   : > { %v6932_v2 = vpop.f32.mrf.mxu2  ;;  %v6936_v52 = vpop.f32.mrf.mxu0 }
 0x36e   : > { %v6934_v8 = vpop.f32.mrf.mxu3  ;;  %v6938_v59 = vpop.f32.mrf.mxu1 }
 0x375   : > { %v6940_v11 = vpop.f32.mrf.mxu2  ;;  %v2286_v48 = vpop.f32.mrf.mxu0 }
 0x376   : > { %v6942_v4 = vpop.f32.mrf.mxu3  ;;  %v2287_v25 = vadd.f32 %v2286_v48, %v6734_v21  ;;  %v2375_v10 = vpop.f32.mrf.mxu1 }
 0x377   : > { %v2623_v48 = vpop.permute.xlu2 %2622 }
 0x378   : > { %v2376_v44 = vadd.f32 %v2375_v10, %v2287_v25  ;;  %v2277_v10 = vadd.f32 %v2276_v15, %v6706_v0 }
 0x37d   : > { %v2464_v55 = vpop.f32.mrf.mxu2  ;;  %v6945_v18 = vpop.f32.mrf.mxu0 }
 0x37e   : > { %v2465_v29 = vadd.f32 %v2464_v55, %v2376_v44  ;;  %v2553_v51 = vpop.f32.mrf.mxu3  ;;  %v6947_v62 = vpop.f32.mrf.mxu1 }
 0x37f   : > { %8360 = vst [vmem:[#allocation25_spill] sm:$0xff] %v6947_v62  ;;  %v5638_v62 = vld [vmem:[%s6497_s19] sm:$0xff]  ;;  %s4231_s19 = scalar_lea.sflag [#allocation4], %s5907_s30 }
 0x380   : > { %v6949_v22 = vadd.f32 %v2553_v51, %v2465_v29 }
 0x385   : > { %v6951_v60 = vpop.f32.mrf.mxu2  ;;  %v2291_v50 = vpop.f32.mrf.mxu0 }
 0x386   : > { %8361 = vst [vmem:[#allocation59_spill] sm:$0xff] %v6951_v60  ;;  %v6953_v1 = vpop.f32.mrf.mxu3  ;;  %v2292_v40 = vadd.f32 %v2291_v50, %v6748_v42  ;;  %v2380_v21 = vpop.f32.mrf.mxu1  ;;  %v2664_v42 = vsel %vm2663_vm2, %v5638_v62, %v6514_v19  ;;  %v8366_v50 = vld [vmem:[#allocation93_spill] sm:$0xff] }
 0x387   : > { %8362 = vst [vmem:[#allocation60_spill] sm:$0xff] %v6953_v1  ;;  %v2366_v1 = vadd.f32 %v2365_v5, %v2277_v10  ;;  %v6963_v60 = vpop.permute.xlu2 %2627  ;;  %v2665_v15 = vrot.slane %v2664_v42, 2  ;;  %v8370_v5 = vld [vmem:[#allocation64_spill] sm:$0xff] }
 0x388   : > { %v2381_v25 = vadd.f32 %v2380_v21, %v2292_v40  ;;  %v2259_v40 = vadd.f32 %v6867_v61, %v8366_v50  ;;  %v8371_v61 = vld [vmem:[#allocation68_spill] sm:$0xff]  ;;  %v8373_v50 = vld [vmem:[#allocation47_spill] sm:$0xff] }
 0x389   : > { %v2455_v0 = vadd.f32 %v2454_v33, %v2366_v1  ;;  %v8372_v1 = vld [vmem:[#allocation62_spill] sm:$0xff] }
 0x38a   : > { %v2640_v33 = vadd.f32 %v8372_v1, %v8371_v61 }
 0x38d   : > { %v2469_v44 = vpop.f32.mrf.mxu2  ;;  %v6957_v14 = vpop.f32.mrf.mxu0 }
 0x38e   : > { %v2470_v55 = vadd.f32 %v2469_v44, %v2381_v25  ;;  %v2558_v45 = vpop.f32.mrf.mxu3  ;;  %8363 = vst [vmem:[#allocation26_spill] sm:$0xff] %v6957_v14  ;;  %v6959_v29 = vpop.f32.mrf.mxu1  ;;  %v2279_v25 = vadd.f32 %v2278_v39, %v6711_v37  ;;  %v2544_v14 = vadd.f32 %v2543_v16, %v2455_v0  ;;  %v6982_v37 = vperm.slane %v2665_v15, 0 }
 0x38f   : > { %8364 = vst [vmem:[#allocation27_spill] sm:$0xff] %v6959_v29  ;;  %v2348_v29 = vadd.f32 %v6869_v56, %v2259_v40  ;;  %v2641_v16 = vadd.f32 %v8372_v1, %v6817_v35  ;;  %v6992_v0 = vperm.slane %v2665_v15, 1  ;;  %v6997_v61 = vpop.permute.xlu2 %3064 }
 0x390   : > { %v6961_v51 = vadd.f32 %v2558_v45, %v2470_v55  ;;  %v8369_v55 = vld [vmem:[#allocation91_spill] sm:$0xff]  ;;  %v2649_v40 = vadd.f32 %v2623_v48, %v2544_v14  ;;  %v2282_v14 = vadd.f32 %v6928_v3, %v6720_v54 }
 0x391   : > { %v2644_v10 = vadd.f32 %v8370_v5, %v8369_v55  ;;  %v2437_v39 = vadd.f32 %v6873_v13, %v2348_v29  ;;  %v2645_v55 = vadd.f32 %v8370_v5, %v6871_v47  ;;  %v8377_v47 = vld [vmem:[#allocation63_spill] sm:$0xff] }
 0x392   : > { %8365 = vst [vmem:[#allocation28_spill] sm:$0xff] %v6961_v51  ;;  %v2667_v51 = vsel %vm2666_vm3, %v5638_v62, %v6514_v19  ;;  %v2368_v19 = vadd.f32 %v2367_v27, %v2279_v25  ;;  %v8374_v62 = vld [vmem:[#allocation97_spill] sm:$0xff]  ;;  %v7021_v54 = vadd.f32 %v6992_v0, %v2649_v40 }
 0x393   : > { %v6988_v56 = vadd.f32 %v8374_v62, %v2644_v10  ;;  %v2526_v5 = vadd.f32 %v6875_v26, %v2437_v39  ;;  %v7018_v26 = vadd.f32 %v6838_v53, %v2641_v16 }
 0x394   : > { %v2457_v13 = vadd.f32 %v6924_v57, %v2368_v19  ;;  %v7013_v57 = vadd.f32 %v6900_v38, %v2645_v55  ;;  %v8379_v19 = vld [vmem:[#allocation92_spill] sm:$0xff] }
 0x395   : > { %v6969_v21 = vpop.f32.mrf.mxu2  ;;  %v2296_v45 = vpop.f32.mrf.mxu0 }
 0x396   : > { %8367 = vst [vmem:[#allocation29_spill] sm:$0xff] %v6969_v21  ;;  %v6972_v44 = vpop.f32.mrf.mxu3  ;;  %v2385_v49 = vpop.f32.mrf.mxu1  ;;  %v2297_v42 = vadd.f32 %v2296_v45, %v6762_v23  ;;  %v2648_v21 = vadd.f32 %v2623_v48, %v8373_v50  ;;  %v8375_v23 = vld [vmem:[#allocation83_spill] sm:$0xff]  ;;  %v8378_v48 = vld [vmem:[#allocation65_spill] sm:$0xff] }
 0x397   : > { %8368 = vst [vmem:[#allocation30_spill] sm:$0xff] %v6972_v44  ;;  %v2668_v44 = vrot.slane %v2667_v51, 3  ;;  %v6995_v45 = vadd.f32 %v8375_v23, %v2640_v33  ;;  %v8376_v51 = vld [vmem:[#allocation70_spill] sm:$0xff]  ;;  %v2652_v15 = vadd.f32 %v8378_v48, %v6756_v28  ;;  %v2546_v28 = vadd.f32 %v6926_v58, %v2457_v13  ;;  %v8381_v13 = vld [vmem:[#allocation12_spill] sm:$0xff] }
 0x398   : > { %v2386_v29 = vadd.f32 %v2385_v49, %v2297_v42  ;;  %v2642_v27 = vadd.f32 %v8377_v47, %v8376_v51  ;;  %v7003_v25 = vadd.f32 %v6982_v37, %v2648_v21  ;;  %v2704_v58 = vmax.f32 %v7018_v26, %v7013_v57 }
 0x399   : > { %v7010_v10 = vperm.slane %v2668_v44, 0  ;;  %v2701_v21 = vmax.f32 %v6995_v45, %v6988_v56  ;;  %v7024_v50 = vperm.slane %v2668_v44, 1 }
 0x39a   : > { %v7028_v55 = vadd.f32 %v8375_v23, %v2642_v27  ;;  %v2650_v27 = vadd.f32 %v6963_v60, %v8381_v13 }
 0x39b   : > { %v7035_v40 = vadd.f32 %v7010_v10, %v2652_v15  ;;  %v2651_v15 = vadd.f32 %v6963_v60, %v2546_v28  ;;  %v8387_v60 = vld [vmem:[#allocation46_spill] sm:$0xff] }
 0x39c   : > { %v2284_v28 = vadd.f32 %v6936_v52, %v8387_v60  ;;  %v8388_v60 = vld [vmem:[#allocation94_spill] sm:$0xff] }
 0x39d   : > { %v2474_v35 = vpop.f32.mrf.mxu2  ;;  %v2298_v33 = vpop.f32.mrf.mxu0  ;;  %v7078_v52 = vadd.f32 %v6992_v0, %v2651_v15  ;;  %v8390_v15 = vld [vmem:[#allocation13_spill] sm:$0xff] }
 0x39e   : > { %v2475_v49 = vadd.f32 %v2474_v35, %v2386_v29  ;;  %v2563_v1 = vpop.f32.mrf.mxu3  ;;  %v2387_v3 = vpop.f32.mrf.mxu1  ;;  %v2299_v39 = vadd.f32 %v2298_v33, %v6767_v24  ;;  %v8380_v29 = vld [vmem:[#allocation66_spill] sm:$0xff]  ;;  %v2371_v35 = vadd.f32 %v6930_v6, %v2282_v14  ;;  %v2702_v24 = vmax.f32 %v2701_v21, %v7003_v25 }
 0x39f   : > { %v2646_v51 = vadd.f32 %v8380_v29, %v8379_v19  ;;  %v2647_v16 = vadd.f32 %v8380_v29, %v2526_v5  ;;  %v7048_v14 = vpop.permute.xlu2 %3079  ;;  %v2705_v21 = vmax.f32 %v2704_v58, %v7021_v54 }
 0x3a0   : > { %v2564_v42 = vadd.f32 %v2563_v1, %v2475_v49  ;;  %v2643_v49 = vadd.f32 %v8377_v47, %v6820_v20  ;;  %v8382_v1 = vld [vmem:[#allocation96_spill] sm:$0xff]  ;;  %v2460_v6 = vadd.f32 %v6932_v2, %v2371_v35  ;;  %v8385_v47 = vld [vmem:[#allocation49_spill] sm:$0xff]  ;;  %v2703_v58 = vmax.f32 %v2702_v24, %v7035_v40 }
 0x3a1   : > { %v2264_v5 = vadd.f32 %v6882_v32, %v8382_v1  ;;  %v7058_v20 = vadd.f32 %v8374_v62, %v2646_v51  ;;  %v8386_v32 = vld [vmem:[#allocation69_spill] sm:$0xff]  ;;  %v7063_v2 = vadd.f32 %v6900_v38, %v2647_v16  ;;  %v7070_v51 = vadd.f32 %v6982_v37, %v2650_v27 }
 0x3a2   : > { %v2653_v44 = vadd.f32 %v8378_v48, %v2564_v42  ;;  %v2388_v48 = vadd.f32 %v2387_v3, %v2299_v39  ;;  %v8384_v42 = vld [vmem:[#allocation74_spill] sm:$0xff]  ;;  %v2654_v29 = vadd.f32 %v8386_v32, %v8385_v47  ;;  %v7073_v1 = vadd.f32 %v6838_v53, %v2643_v49 }
 0x3a3   : > { %v3102_v19 = vadd.f32 %v6997_v61, %v8384_v42  ;;  %v2353_v16 = vadd.f32 %v6884_v43, %v2264_v5  ;;  %v2549_v42 = vadd.f32 %v6934_v8, %v2460_v6  ;;  %v2707_v49 = vmax.f32 %v7028_v55, %v7058_v20 }
 0x3a4   : > { %v7052_v33 = vadd.f32 %v7024_v50, %v2653_v44  ;;  %v7084_v27 = vadd.f32 %v7010_v10, %v2654_v29  ;;  %v2710_v43 = vmax.f32 %v7073_v1, %v7063_v2 }
 0x3a5   : > { %v2476_v35 = vpop.f32.mrf.mxu2  ;;  %v2301_v39 = vpop.f32.mrf.mxu0  ;;  %v2442_v5 = vadd.f32 %v6888_v17, %v2353_v16  ;;  %v8392_v16 = vld [vmem:[#allocation50_spill] sm:$0xff] }
 0x3a6   : > { %8383 = vst [vmem:[#allocation31_spill] sm:$0xff] %v7052_v33  ;;  %v2477_v44 = vadd.f32 %v2476_v35, %v2388_v48  ;;  %v2565_v3 = vpop.f32.mrf.mxu3  ;;  %v2706_v13 = vmax.f32 %v2705_v21, %v7052_v33  ;;  %v2390_v47 = vpop.f32.mrf.mxu1  ;;  %v2302_v35 = vadd.f32 %v2301_v39, %v6776_v41  ;;  %v8389_v21 = vld [vmem:[#allocation73_spill] sm:$0xff]  ;;  %v2373_v41 = vadd.f32 %v6938_v59, %v2284_v28 }
 0x3a7   : > { %v3106_v33 = vadd.f32 %v8389_v21, %v8388_v60  ;;  %v3107_v8 = vadd.f32 %v8389_v21, %v6886_v63 }
 0x3a8   : > { %v2566_v48 = vadd.f32 %v2565_v3, %v2477_v44  ;;  %v2713_v24 = vmax.f32 %v2703_v58, %v2706_v13  ;;  %v8391_v44 = vld [vmem:[#allocation71_spill] sm:$0xff]  ;;  %v3103_v3 = vadd.f32 %v6997_v61, %v6827_v12  ;;  %v2708_v58 = vmax.f32 %v2707_v49, %v7070_v51  ;;  %v3095_v13 = vpop.permute.xlu2 %3094 }
 0x3a9   : > { %v3110_v29 = vadd.f32 %v8391_v44, %v8390_v15  ;;  %v3111_v39 = vadd.f32 %v8391_v44, %v2549_v42  ;;  %v2462_v63 = vadd.f32 %v6940_v11, %v2373_v41  ;;  %v2391_v59 = vadd.f32 %v2390_v47, %v2302_v35 }
 0x3aa   : > { %v2655_v6 = vadd.f32 %v8386_v32, %v2566_v48  ;;  %2714 = vmax.xlane.f32.xlu1 %v2713_v24  ;;  %v2711_v32 = vmax.f32 %v2710_v43, %v7078_v52  ;;  %v7107_v28 = vadd.f32 %v3106_v33, %v8374_v62  ;;  %v3114_v48 = vadd.f32 %v3095_v13, %v8392_v16 }
 0x3ab   : > { %v2709_v12 = vmax.f32 %v2708_v58, %v7084_v27  ;;  %v7112_v61 = vadd.f32 %v3107_v8, %v6900_v38  ;;  %v2531_v42 = vadd.f32 %v6890_v30, %v2442_v5  ;;  %v7117_v35 = vadd.f32 %v3102_v19, %v8375_v23  ;;  %v8393_v19 = vld [vmem:[#allocation95_spill] sm:$0xff] }
 0x3ac   : > { %v7103_v17 = vadd.f32 %v7024_v50, %v2655_v6  ;;  %v7120_v33 = vadd.f32 %v3110_v29, %v6982_v37  ;;  %v7123_v49 = vadd.f32 %v3103_v3, %v6838_v53  ;;  %v7126_v43 = vadd.f32 %v3111_v39, %v6992_v0  ;;  %v8395_v58 = vld [vmem:[#allocation67_spill] sm:$0xff] }
 0x3ad   : > { %v2479_v24 = vpop.f32.mrf.mxu2  ;;  %v2303_v60 = vpop.f32.mrf.mxu0  ;;  %v2551_v8 = vadd.f32 %v6942_v4, %v2462_v63  ;;  %v3134_v6 = vmax.f32 %v7117_v35, %v7107_v28  ;;  %v3108_v15 = vadd.f32 %v7048_v14, %v8393_v19  ;;  %v7135_v44 = vadd.f32 %v3114_v48, %v7010_v10 }
 0x3ae   : > { %v2480_v11 = vadd.f32 %v2479_v24, %v2391_v59  ;;  %v2568_v21 = vpop.f32.mrf.mxu3  ;;  %v2712_v47 = vmax.f32 %v2711_v32, %v7103_v17  ;;  %v2304_v30 = vadd.f32 %v2303_v60, %v6781_v36  ;;  %v2392_v29 = vpop.f32.mrf.mxu1  ;;  %v3137_v3 = vmax.f32 %v7123_v49, %v7112_v61  ;;  %v8394_v36 = vld [vmem:[#allocation76_spill] sm:$0xff]  ;;  %v8396_v59 = vld [vmem:[#allocation45_spill] sm:$0xff] }
 0x3af   : > { %v3109_v39 = vadd.f32 %v7048_v14, %v2531_v42  ;;  %v3104_v63 = vadd.f32 %v8395_v58, %v8394_v36  ;;  %v8397_v32 = vld [vmem:[#allocation77_spill] sm:$0xff]  ;;  %v3105_v24 = vadd.f32 %v8395_v58, %v6830_v7  ;;  %v3135_v48 = vmax.f32 %v3134_v6, %v7120_v33 }
 0x3b0   : > { %v2569_v5 = vadd.f32 %v2568_v21, %v2480_v11  ;;  %v2716_v41 = vmax.f32 %v2709_v12, %v2712_v47  ;;  %v3112_v16 = vadd.f32 %v8397_v32, %v8396_v59  ;;  %v3113_v12 = vadd.f32 %v8397_v32, %v2551_v8  ;;  %v8398_v47 = vld [vmem:[#allocation18_spill] sm:$0xff] }
 0x3b1   : > { %v2393_v60 = vadd.f32 %v2392_v29, %v2304_v30  ;;  %v3138_v14 = vmax.f32 %v3137_v3, %v7126_v43  ;;  %v3136_v21 = vmax.f32 %v3135_v48, %v7135_v44  ;;  %v7159_v7 = vadd.f32 %v3109_v39, %v6900_v38  ;;  %v3845_v48 = vld [vmem:[%s6241_s12 + $0xf8] sm:$0xff] }
 0x3b2   : > { %v3115_v4 = vadd.f32 %v3095_v13, %v2569_v5  ;;  %2717 = vmax.xlane.f32.xlu2 %v2716_v41  ;;  %v7153_v13 = vadd.f32 %v3108_v15, %v8374_v62  ;;  %v8399_v5 = vld [vmem:[#allocation75_spill] sm:$0xff]  ;;  %v7163_v30 = vadd.f32 %v3104_v63, %v8375_v23  ;;  %v7166_v29 = vadd.f32 %v3112_v16, %v6982_v37 }
 0x3b3   : > { %v3116_v41 = vadd.f32 %v8399_v5, %v8398_v47  ;;  %v7169_v62 = vadd.f32 %v3105_v24, %v6838_v53  ;;  %v7172_v15 = vadd.f32 %v3113_v12, %v6992_v0  ;;  %v3843_v24 = vld [vmem:[%s6241_s12 + $0xb8] sm:$0xff]  ;;  %v3842_v12 = vld [vmem:[%s6241_s12 + $0xb0] sm:$0xff] }
 0x3b4   : > { %v7149_v11 = vadd.f32 %v3115_v4, %v7024_v50  ;;  %v3140_v39 = vmax.f32 %v7163_v30, %v7153_v13 }
 0x3b5   : > { %v2481_v42 = vpop.f32.mrf.mxu2  ;;  %v7178_v4 = vadd.f32 %v3116_v41, %v7010_v10  ;;  %v3143_v53 = vmax.f32 %v7169_v62, %v7159_v7  ;;  %v2306_v47 = vpop.f32.mrf.mxu0  ;;  %v5194_v41 = vld [vmem:[%s7199_s20 + $0x18] sm:$0xf0] }
 0x3b6   : > { %v2482_v6 = vadd.f32 %v2481_v42, %v2393_v60  ;;  %v2570_v8 = vpop.f32.mrf.mxu3  ;;  %v3139_v19 = vmax.f32 %v3138_v14, %v7149_v11  ;;  %v3141_v58 = vmax.f32 %v3140_v39, %v7166_v29  ;;  %v3844_v60 = vld [vmem:[%s6241_s12 + $0xf0] sm:$0xff]  ;;  %v5418_v42 = vld [vmem:[%s7199_s20 + $0x14] sm:$0xf0]  ;;  %v5186_v39 = vld [vmem:[%s7199_s20 + $0x8] sm:$0xf0] }
 0x3b7   : > { %v3144_v63 = vmax.f32 %v3143_v53, %v7172_v15  ;;  %v5192_v14 = vld [vmem:[%s7199_s20 + $0x10] sm:$0xf]  ;;  %v2307_v53 = vadd.f32 %v2306_v47, %v6790_v46  ;;  %v8406_v46 = vld [vmem:[#allocation19_spill] sm:$0xff] }
 0x3b8   : > { %v2571_v3 = vadd.f32 %v2570_v8, %v2482_v6  ;;  %v3146_v38 = vmax.f32 %v3136_v21, %v3139_v19  ;;  %v3142_v59 = vmax.f32 %v3141_v58, %v7178_v4  ;;  %v5417_v21 = vld [vmem:[%s7199_s20 + $0x14] sm:$0xf]  ;;  %v5184_v6 = vld [vmem:[%s7199_s20] sm:$0xf]  ;;  %v5416_v8 = vld [vmem:[%s7199_s20 + $0x4] sm:$0xf0]  ;;  %v2395_v58 = vpop.f32.mrf.mxu1 }
 0x3b9   : > { %v7209_v19 = vor.u32 %v5417_v21, %v5194_v41 }
 0x3ba   : > { %v3117_v23 = vadd.f32 %v8399_v5, %v2571_v3  ;;  %3147 = vmax.xlane.f32.xlu0 %v3146_v38  ;;  %v7204_v5 = vor.u32 %v5418_v42, %v5192_v14  ;;  %v7211_v3 = vor.u32 %v5416_v8, %v5184_v6  ;;  %v5415_v38 = vld [vmem:[%s7199_s20 + $0x4] sm:$0xf]  ;;  %v3529_v8 = vmax.f32 %v6842_v31, %v6904_v9  ;;  %v8429_v31 = vld [vmem:[#allocation31_spill] sm:$0xff] }
 0x3bb   : > { %8401 = vst [vmem:[#allocation81_spill] sm:$0xff] %v7209_v19  ;;  %2934 = vmatpush.bf16.xpose.msrb.mxu3 %v7209_v19  ;;  %v8405_v42 = vld [vmem:[#allocation84_spill] sm:$0xff] }
 0x3bc   : > { %v7183_v36 = vadd.f32 %v3117_v23, %v7024_v50  ;;  %8400 = vst [vmem:[#allocation72_spill] sm:$0xff] %v7204_v5  ;;  %2920 = vmatpush.bf16.xpose.msrb.mxu2 %v7204_v5  ;;  %v7216_v23 = vor.u32 %v5415_v38, %v5186_v39  ;;  %2872 = vmatpush.bf16.xpose.msrb.mxu0 %v7211_v3  ;;  %v8411_v39 = vld [vmem:[#allocation85_spill] sm:$0xff] }
 0x3bd   : > { %8402 = vst [vmem:[#allocation86_spill] sm:$0xff] %v7211_v3  ;;  %v3506_v47 = vadd.f32 %v8405_v42, %v8406_v46 }
 0x3be   : > { %v3145_v32 = vmax.f32 %v3144_v63, %v7183_v36  ;;  %8403 = vst [vmem:[#allocation32_spill] sm:$0xff] %v7216_v23  ;;  %2886 = vmatpush.bf16.xpose.msrb.mxu1 %v7216_v23  ;;  %v2484_v63 = vpop.f32.mrf.mxu2 }
 0x3c0   : > { %v3149_v16 = vmax.f32 %v3142_v59, %v3145_v32  ;;  %v2396_v59 = vadd.f32 %v2395_v58, %v2307_v53  ;;  %v7241_v58 = vadd.f32 %v3506_v47, %v7010_v10  ;;  %v2397_v19 = vpop.f32.mrf.mxu1 }
 0x3c2   : > { %3150 = vmax.xlane.f32.xlu2 %v3149_v16  ;;  %v2485_v32 = vadd.f32 %v2484_v63, %v2396_v59  ;;  %v2573_v16 = vpop.f32.mrf.mxu3  ;;  %8412 = vst [vmem:[#allocation82_spill] sm:$0xff] %v7241_v58 }
 0x3c3   : > { %3873 = vperm.xlu1 %5492, %v3843_v24  }
 0x3c4   : > { %v2574_v24 = vadd.f32 %v2573_v16, %v2485_v32 }
 0x3c6   : > { %v3507_v21 = vadd.f32 %v8405_v42, %v2574_v24 }
 0x3c8   : > { %v7236_v38 = vadd.f32 %v3507_v21, %v7024_v50  ;;  %v8414_v21 = vld [vmem:[#allocation15_spill] sm:$0xff] }
 0x3ca   : > { %8409 = vst [vmem:[#allocation80_spill] sm:$0xff] %v7236_v38 }
 0x3cb   : > { %3883 = vperm.xlu1 %5492, %v3845_v48   ;;  %v3477_v48 = vpop.permute.xlu0 %3476 }
 0x3ce   : > { %3868 = vperm.xlu0 %5491, %v3842_v12   ;;  %v3503_v12 = vadd.f32 %v3477_v48, %v6949_v22  ;;  %v8410_v22 = vld [vmem:[#allocation40_spill] sm:$0xff] }
 0x3cf   : > { %v3526_v53 = vmax.f32 %v8411_v39, %v8410_v22 }
 0x3d0   : > { %v7228_v41 = vadd.f32 %v3503_v12, %v6992_v0  ;;  %v3482_v12 = vpop.permute.xlu2 %3481 }
 0x3d1   : > { %v3504_v46 = vadd.f32 %v3482_v12, %v8414_v21 }
 0x3d2   : > { %8407 = vst [vmem:[#allocation33_spill] sm:$0xff] %v7228_v41  ;;  %v3530_v63 = vmax.f32 %v3529_v8, %v7228_v41  ;;  %v8415_v8 = vld [vmem:[#allocation52_spill] sm:$0xff] }
 0x3d3   : > { %v3492_v42 = vpop.permute.xlu0 %3491  ;;  %v8428_v41 = vld [vmem:[#allocation20_spill] sm:$0xff] }
 0x3d4   : > { %v3531_v32 = vmax.f32 %v3530_v63, %v7236_v38  ;;  %v3508_v5 = vadd.f32 %v3492_v42, %v8415_v8  ;;  %v2486_v63 = vpop.f32.mrf.mxu2  ;;  %v8419_v38 = vld [vmem:[#allocation98_spill] sm:$0xff] }
 0x3d6   : > { %v7260_v21 = vadd.f32 %v3508_v5, %v7010_v10 }
 0x3da   : > { %3878 = vperm.xlu2 %5493, %v3844_v60   ;;  %v8404_v60 = vld [vmem:[#allocation14_spill] sm:$0xff] }
 0x3db   : > { %v3502_v14 = vadd.f32 %v3477_v48, %v8404_v60  ;;  %v2308_v48 = vpop.f32.mrf.mxu0  ;;  %v8413_v60 = vld [vmem:[#allocation48_spill] sm:$0xff] }
 0x3dc   : > { %v2309_v47 = vadd.f32 %v2308_v48, %v6795_v34  ;;  %v2575_v48 = vpop.f32.mrf.mxu3 }
 0x3dd   : > { %v7231_v6 = vadd.f32 %v3502_v14, %v6982_v37  ;;  %v2289_v14 = vadd.f32 %v6945_v18, %v8413_v60  ;;  %v8420_v18 = vld [vmem:[#allocation87_spill] sm:$0xff] }
 0x3de   : > { %v3532_v60 = vmax.f32 %v8420_v18, %v8419_v38 }
 0x3df   : > { %8408 = vst [vmem:[#allocation78_spill] sm:$0xff] %v7231_v6  ;;  %v3527_v59 = vmax.f32 %v3526_v53, %v7231_v6  ;;  %v8416_v53 = vld [vmem:[#allocation25_spill] sm:$0xff]  ;;  %v8424_v6 = vld [vmem:[#allocation100_spill] sm:$0xff] }
 0x3e0   : > { %v2378_v23 = vadd.f32 %v8416_v53, %v2289_v14  ;;  %v8431_v53 = vld [vmem:[#allocation58_spill] sm:$0xff] }
 0x3e1   : > { %v3528_v16 = vmax.f32 %v3527_v59, %v7241_v58  ;;  %v7254_v59 = vadd.f32 %v3504_v46, %v6982_v37  ;;  %v8421_v58 = vld [vmem:[#allocation60_spill] sm:$0xff] }
 0x3e3   : > { %v3538_v24 = vmax.f32 %v3528_v16, %v3531_v32  ;;  %8417 = vst [vmem:[#allocation79_spill] sm:$0xff] %v7254_v59  ;;  %v8418_v32 = vld [vmem:[#allocation59_spill] sm:$0xff]  ;;  %v2311_v3 = vpop.f32.mrf.mxu0  ;;  %v7264_v14 = vmax.f32 %v3532_v60, %v7254_v59 }
 0x3e4   : > { %v2467_v16 = vadd.f32 %v8418_v32, %v2378_v23  ;;  %v8425_v23 = vld [vmem:[#allocation89_spill] sm:$0xff]  ;;  %v8427_v32 = vld [vmem:[#allocation26_spill] sm:$0xff]  ;;  %v2312_v59 = vadd.f32 %v2311_v3, %v8428_v41  ;;  %v8434_v41 = vld [vmem:[#allocation27_spill] sm:$0xff] }
 0x3e6   : > { %v2556_v8 = vadd.f32 %v8421_v58, %v2467_v16 }
 0x3e8   : > { %v3505_v60 = vadd.f32 %v3482_v12, %v2556_v8  ;;  %v8432_v12 = vld [vmem:[#allocation61_spill] sm:$0xff]  ;;  %v8433_v8 = vld [vmem:[#allocation22_spill] sm:$0xff] }
 0x3eb   : > { %v2313_v46 = vpop.f32.mrf.mxu0 }
 0x403   : > { %3539 = vmax.xlane.f32.xlu2 %v3538_v24  ;;  %v2398_v24 = vadd.f32 %v2397_v19, %v2309_v47  ;;  %v8426_v47 = vld [vmem:[#allocation17_spill] sm:$0xff] }
 0x404   : > { %v2294_v9 = vadd.f32 %v8427_v32, %v8426_v47 }
 0x405   : > { %v2487_v34 = vadd.f32 %v2486_v63, %v2398_v24 }
 0x407   : > { %v2576_v38 = vadd.f32 %v2575_v48, %v2487_v34  ;;  %v2400_v34 = vpop.f32.mrf.mxu1 }
 0x41d   : > { %v2715_v18 = vpop.xlane.xlu1 %2714 }
 0x41e   : > { %v2719_v63 = vsub.f32 %v6995_v45, %v2715_v18  ;;  %v2720_v58 = vsub.f32 %v7018_v26, %v2715_v18  ;;  %v2723_v16 = vsub.f32 %v6988_v56, %v2715_v18  ;;  %v2724_v24 = vsub.f32 %v7013_v57, %v2715_v18  ;;  %v8430_v56 = vld [vmem:[#allocation57_spill] sm:$0xff] }
 0x41f   : > { %v2727_v19 = vsub.f32 %v7003_v25, %v2715_v18  ;;  %v2728_v47 = vsub.f32 %v7021_v54, %v2715_v18  ;;  %v2731_v48 = vsub.f32 %v7035_v40, %v2715_v18  ;;  %v3509_v45 = vadd.f32 %v3492_v42, %v2576_v38  ;;  %v8435_v38 = vld [vmem:[#allocation24_spill] sm:$0xff]  ;;  %v8436_v42 = vld [vmem:[#allocation23_spill] sm:$0xff] }
 0x420   : > { %v2735_v32 = vmul.f32 1.442695, %v2719_v63  ;;  %v2737_v5 = vmul.f32 1.442695, %v2720_v58  ;;  %v2743_v22 = vmul.f32 1.442695, %v2723_v16  ;;  %v2732_v26 = vsub.f32 %v8429_v31, %v2715_v18  ;;  %v2489_v31 = vpop.f32.mrf.mxu2 }
 0x421   : > { %v2745_v39 = vmul.f32 1.442695, %v2724_v24  ;;  %v3535_v57 = vmax.f32 %v8431_v53, %v8430_v56  ;;  %v2383_v25 = vadd.f32 %v8434_v41, %v2294_v9  ;;  %v2751_v54 = vmul.f32 1.442695, %v2727_v19  ;;  %v8437_v18 = vld [vmem:[#allocation29_spill] sm:$0xff] }
 0x422   : > { %5494 = vpow2.f32 %v2735_v32  ;;  %v7289_v40 = vadd.f32 %v3505_v60, %v6992_v0  ;;  %v2753_v63 = vmul.f32 1.442695, %v2728_v47  ;;  %v2401_v16 = vadd.f32 %v2400_v34, %v2312_v59  ;;  %v8438_v9 = vld [vmem:[#allocation53_spill] sm:$0xff] }
 0x423   : > { %5496 = vpow2.f32 %v2737_v5  ;;  %v2472_v58 = vadd.f32 %v8437_v18, %v2383_v25  ;;  %v2759_v24 = vmul.f32 1.442695, %v2731_v48  ;;  %v7295_v3 = vadd.f32 %v3509_v45, %v7024_v50 }
 0x424   : > { %5498 = vpow2.f32 %v2743_v22  ;;  %v2314_v41 = vadd.f32 %v2313_v46, %v8438_v9  ;;  %v2761_v19 = vmul.f32 1.442695, %v2732_v26 }
 0x425   : > { %v2718_v32 = vpop.xlane.xlu2 %2717  ;;  %5500 = vpow2.f32 %v2745_v39 }
 0x426   : > { %5502 = vpow2.f32 %v2751_v54  ;;  %v2721_v5 = vsub.f32 %v7028_v55, %v2718_v32  ;;  %v2722_v60 = vsub.f32 %v7073_v1, %v2718_v32  ;;  %v2725_v47 = vsub.f32 %v7058_v20, %v2718_v32 }
 0x427   : > { %5504 = vpow2.f32 %v2753_v63  ;;  %v2726_v22 = vsub.f32 %v7063_v2, %v2718_v32  ;;  %v2729_v59 = vsub.f32 %v7070_v51, %v2718_v32  ;;  %v2730_v34 = vsub.f32 %v7078_v52, %v2718_v32  ;;  %v8439_v2 = vld [vmem:[#allocation30_spill] sm:$0xff]  ;;  %v2402_v52 = vpop.f32.mrf.mxu1 }
 0x428   : > { %v7304_v48 = vpop.eup %5494  ;;  %5506 = vpow2.f32 %v2759_v24  ;;  %v2733_v39 = vsub.f32 %v7084_v27, %v2718_v32  ;;  %v2734_v46 = vsub.f32 %v7103_v17, %v2718_v32  ;;  %v2739_v55 = vmul.f32 1.442695, %v2721_v5  ;;  %v2578_v5 = vpop.f32.mrf.mxu3 }
 0x429   : > { %v7308_v45 = vpop.eup %5496  ;;  %5508 = vpow2.f32 %v2761_v19  ;;  %v2741_v20 = vmul.f32 1.442695, %v2722_v60  ;;  %v2747_v1 = vmul.f32 1.442695, %v2725_v47  ;;  %v2749_v26 = vmul.f32 1.442695, %v2726_v22 }
 0x42a   : > { %v7310_v25 = vpop.eup %5498  ;;  %v7313_v51 = vadd.f32 %v8439_v2, %v2472_v58  ;;  %5510 = vpow2.f32 %v2739_v55  ;;  %v2755_v54 = vmul.f32 1.442695, %v2729_v59  ;;  %v7316_v63 = vmax.f32 %v3535_v57, %v7289_v40 }
 0x42b   : > { %v7318_v27 = vpop.eup %5500  ;;  %v2490_v17 = vadd.f32 %v2489_v31, %v2401_v16  ;;  %v2767_v18 = vadd.f32 %v7310_v25, %v7304_v48  ;;  %5512 = vpow2.f32 %v2741_v20  ;;  %v2757_v24 = vmul.f32 1.442695, %v2730_v34 }
 0x42c   : > { %v7322_v9 = vpop.eup %5502  ;;  %v2770_v58 = vadd.f32 %v7318_v27, %v7308_v45  ;;  %5514 = vpow2.f32 %v2747_v1  ;;  %v2763_v32 = vmul.f32 1.442695, %v2733_v39  ;;  %v2403_v60 = vadd.f32 %v2402_v52, %v2314_v41 }
 0x42d   : > { %v7328_v57 = vpop.eup %5504  ;;  %v3148_v31 = vpop.xlane.xlu0 %3147  ;;  %v2768_v16 = vadd.f32 %v7322_v9, %v2767_v18  ;;  %5516 = vpow2.f32 %v2749_v26  ;;  %v2765_v47 = vmul.f32 1.442695, %v2734_v46 }
 0x42e   : > { %v7331_v22 = vpop.eup %5506  ;;  %v2771_v59 = vadd.f32 %v7328_v57, %v2770_v58  ;;  %5518 = vpow2.f32 %v2755_v54  ;;  %v3152_v34 = vsub.f32 %v7117_v35, %v3148_v31  ;;  %v3153_v39 = vsub.f32 %v7123_v49, %v3148_v31  ;;  %v2491_v49 = vpop.f32.mrf.mxu2 }
 0x42f   : > { %v7336_v55 = vpop.eup %5508  ;;  %v2769_v20 = vadd.f32 %v7331_v22, %v2768_v16  ;;  %5520 = vpow2.f32 %v2757_v24  ;;  %v3156_v41 = vsub.f32 %v7107_v28, %v3148_v31  ;;  %v3157_v1 = vsub.f32 %v7112_v61, %v3148_v31 }
 0x430   : > { %v7341_v26 = vpop.eup %5510  ;;  %v2772_v46 = vadd.f32 %v7336_v55, %v2771_v59  ;;  %5522 = vpow2.f32 %v2763_v32  ;;  %v3160_v2 = vsub.f32 %v7120_v33, %v3148_v31  ;;  %v3161_v35 = vsub.f32 %v7126_v43, %v3148_v31 }
 0x431   : > { %v7346_v52 = vpop.eup %5512  ;;  %5524 = vpow2.f32 %v2765_v47  ;;  %v3164_v54 = vsub.f32 %v7135_v44, %v3148_v31  ;;  %v3165_v18 = vsub.f32 %v7149_v11, %v3148_v31  ;;  %v3168_v28 = vmul.f32 1.442695, %v3152_v34 }
 0x432   : > { %v7350_v24 = vpop.eup %5514  ;;  %v2779_v61 = vadd.f32 %v2772_v46, %v2769_v20  ;;  %v3170_v58 = vmul.f32 1.442695, %v3153_v39  ;;  %v3176_v16 = vmul.f32 1.442695, %v3156_v41  ;;  %v3178_v59 = vmul.f32 1.442695, %v3157_v1 }
 0x433   : > { %v7352_v32 = vpop.eup %5516  ;;  %v7354_v33 = vadd.f32 %v2578_v5, %v2490_v17  ;;  %v2773_v43 = vadd.f32 %v7350_v24, %v7341_v26  ;;  %5526 = vpow2.f32 %v3168_v28  ;;  %v3184_v47 = vmul.f32 1.442695, %v3160_v2  ;;  %v8440_v46 = vld [vmem:[#allocation16_spill] sm:$0xff]  ;;  %v2580_v28 = vpop.f32.mrf.mxu3 }
 0x434   : > { %v7358_v19 = vpop.eup %5518  ;;  %v2492_v44 = vadd.f32 %v2491_v49, %v2403_v60  ;;  %2780 = vadd.xlane.f32.xlu1 %v2779_v61  ;;  %v2776_v11 = vadd.f32 %v7352_v32, %v7346_v52  ;;  %5528 = vpow2.f32 %v3170_v58  ;;  %v3186_v31 = vmul.f32 1.442695, %v3161_v35 }
 0x435   : > { %v7362_v34 = vpop.eup %5520  ;;  %v7364_v39 = vpop.xlane.xlu2 %3150  ;;  %v2774_v5 = vadd.f32 %v7358_v19, %v2773_v43  ;;  %5530 = vpow2.f32 %v3176_v16  ;;  %v3192_v20 = vmul.f32 1.442695, %v3164_v54  ;;  %v3194_v41 = vmul.f32 1.442695, %v3165_v18 }
 0x436   : > { %v3874_v17 = vpop.permute.xlu1 %3873  ;;  %v7367_v1 = vpop.eup %5522  ;;  %v2777_v49 = vadd.f32 %v7362_v34, %v2776_v11  ;;  %5532 = vpow2.f32 %v3178_v59  ;;  %v3154_v58 = vsub.f32 %v7163_v30, %v7364_v39  ;;  %v3155_v54 = vsub.f32 %v7169_v62, %v7364_v39 }
 0x437   : > { %v3896_v60 = vadd.f32 %v3874_v17, %v8440_v46  ;;  %v3897_v2 = vadd.f32 %v3874_v17, %v7313_v51  ;;  %v7372_v35 = vpop.eup %5524  ;;  %v2775_v61 = vadd.f32 %v7367_v1, %v2774_v5  ;;  %5534 = vpow2.f32 %v3184_v47 }
 0x438   : > { %8441 = vst [vmem:[#allocation34_spill] sm:$0xff] %v7372_v35  ;;  %v2778_v16 = vadd.f32 %v7372_v35, %v2777_v49  ;;  %5536 = vpow2.f32 %v3186_v31  ;;  %v8443_v43 = vmax.f32 %v7316_v63, %v7295_v3  ;;  %v8444_v30 = vmax.f32 %v7264_v14, %v7260_v21 }
 0x439   : > { %v7380_v18 = vadd.f32 %v3896_v60, %v6982_v37  ;;  %v7383_v51 = vadd.f32 %v3897_v2, %v6992_v0  ;;  %v7386_v59 = vpop.eup %5526  ;;  %5538 = vpow2.f32 %v3192_v20  ;;  %v3158_v62 = vsub.f32 %v7153_v13, %v7364_v39 }
 0x43a   : > { %8442 = vst [vmem:[#allocation35_spill] sm:$0xff] %v7386_v59  ;;  %v3541_v47 = vmax.f32 %v8444_v30, %v8443_v43  ;;  %v3159_v11 = vsub.f32 %v7159_v7, %v7364_v39  ;;  %v7398_v17 = vpop.eup %5528  ;;  %v2581_v5 = vadd.f32 %v2580_v28, %v2492_v44  ;;  %v2782_v31 = vadd.f32 %v2778_v16, %v2775_v61 }
 0x43b   : > { %5540 = vpow2.f32 %v3194_v41  ;;  %v3162_v46 = vsub.f32 %v7166_v29, %v7364_v39  ;;  %v7402_v63 = vpop.eup %5530  ;;  %v8446_v14 = vmax.f32 %v8425_v23, %v8424_v6  ;;  %v8447_v13 = vmax.f32 %v8436_v42, %v8435_v38 }
 0x43c   : > { %8445 = vst [vmem:[#allocation36_spill] sm:$0xff] %v7402_v63  ;;  %v3163_v44 = vsub.f32 %v7172_v15, %v7364_v39  ;;  %v3172_v60 = vmul.f32 1.442695, %v3154_v58  ;;  %v7414_v41 = vpop.eup %5532  ;;  %2783 = vadd.xlane.f32.xlu0 %v2782_v31  ;;  %3542 = vmax.xlane.f32.xlu1 %v3541_v47  ;;  %v3200_v29 = vadd.f32 %v7402_v63, %v7386_v59  ;;  %v3174_v28 = vmul.f32 1.442695, %v3155_v54  ;;  %v8451_v31 = vld [vmem:[#allocation21_spill] sm:$0xff] }
 0x43d   : > { %v3925_v20 = vmax.f32 %v8446_v14, %v7380_v18  ;;  %v3928_v7 = vmax.f32 %v8447_v13, %v7383_v51  ;;  %8448 = vst [vmem:[#allocation37_spill] sm:$0xff] %v7414_v41  ;;  %v3166_v2 = vsub.f32 %v7178_v4, %v7364_v39  ;;  %v3167_v49 = vsub.f32 %v7183_v36, %v7364_v39  ;;  %v7422_v61 = vpop.eup %5534  ;;  %v3879_v16 = vpop.permute.xlu2 %3878  ;;  %v8453_v36 = vld [vmem:[#allocation55_spill] sm:$0xff] }
 0x43e   : > { %8449 = vst [vmem:[#allocation90_spill] sm:$0xff] %v7422_v61  ;;  %v3884_v43 = vpop.permute.xlu1 %3883  ;;  %v3203_v15 = vadd.f32 %v7414_v41, %v7398_v17  ;;  %5542 = vpow2.f32 %v3172_v60  ;;  %v3180_v58 = vmul.f32 1.442695, %v3158_v62  ;;  %v3182_v30 = vmul.f32 1.442695, %v3159_v11  ;;  %v7426_v47 = vpop.eup %5536 }
 0x43f   : > { %8450 = vst [vmem:[#allocation38_spill] sm:$0xff] %v7426_v47  ;;  %v3900_v14 = vadd.f32 %v3884_v43, %v8451_v31  ;;  %v3901_v13 = vadd.f32 %v3884_v43, %v2581_v5  ;;  %v3188_v4 = vmul.f32 1.442695, %v3162_v46  ;;  %v3190_v63 = vmul.f32 1.442695, %v3163_v44  ;;  %v7429_v59 = vpop.eup %5538  ;;  %v8455_v44 = vld [vmem:[#allocation51_spill] sm:$0xff] }
 0x440   : > { %8452 = vst [vmem:[#allocation39_spill] sm:$0xff] %v7429_v59  ;;  %v3898_v39 = vadd.f32 %v3879_v16, %v8453_v36  ;;  %v3899_v54 = vadd.f32 %v3879_v16, %v7354_v33  ;;  %v3201_v35 = vadd.f32 %v7422_v61, %v3200_v29  ;;  %v3204_v41 = vadd.f32 %v7426_v47, %v3203_v15  ;;  %v3869_v5 = vpop.permute.xlu0 %3868  ;;  %v8456_v31 = vld [vmem:[#allocation28_spill] sm:$0xff] }
 0x441   : > { %v7435_v60 = vpop.eup %5540  ;;  %v7438_v62 = vadd.f32 %v3900_v14, %v7010_v10  ;;  %v7441_v11 = vadd.f32 %v3901_v13, %v7024_v50  ;;  %5544 = vpow2.f32 %v3174_v28  ;;  %v3196_v46 = vmul.f32 1.442695, %v3166_v2 }
 0x442   : > { %8454 = vst [vmem:[#allocation41_spill] sm:$0xff] %v7435_v60  ;;  %v3894_v43 = vadd.f32 %v3869_v5, %v8455_v44  ;;  %v3895_v36 = vadd.f32 %v3869_v5, %v8456_v31  ;;  %v3202_v33 = vadd.f32 %v7429_v59, %v3201_v35  ;;  %v3205_v29 = vadd.f32 %v7435_v60, %v3204_v41  ;;  %v8469_v60 = vld [vmem:[#allocation78_spill] sm:$0xff]  ;;  %v8470_v59 = vld [vmem:[#allocation33_spill] sm:$0xff] }
 0x443   : > { %v3926_v16 = vmax.f32 %v3925_v20, %v7438_v62  ;;  %v3929_v15 = vmax.f32 %v3928_v7, %v7441_v11  ;;  %5546 = vpow2.f32 %v3180_v58  ;;  %v3198_v14 = vmul.f32 1.442695, %v3167_v49  ;;  %v8457_v7 = vld [vmem:[#allocation88_spill] sm:$0xff]  ;;  %v8458_v49 = vld [vmem:[#allocation99_spill] sm:$0xff] }
 0x444   : > { %v7449_v47 = vpop.eup %5542  ;;  %v7452_v13 = vadd.f32 %v3894_v43, %v6982_v37  ;;  %v7455_v2 = vadd.f32 %v3895_v36, %v6992_v0  ;;  %v3212_v28 = vadd.f32 %v3205_v29, %v3202_v33  ;;  %5548 = vpow2.f32 %v3182_v30 }
 0x445   : > { %v7458_v35 = vadd.f32 %v3898_v39, %v7010_v10  ;;  %v3933_v41 = vmax.f32 %v3926_v16, %v3929_v15  ;;  %5550 = vpow2.f32 %v3188_v4  ;;  %v7461_v20 = vadd.f32 %v3899_v54, %v7024_v50 }
 0x446   : > { %3213 = vadd.xlane.f32.xlu0 %v3212_v28  ;;  %5552 = vpow2.f32 %v3190_v63  ;;  %v8459_v37 = vmax.f32 %v8457_v7, %v8458_v49  ;;  %v8460_v0 = vmax.f32 %v8433_v8, %v8432_v12 }
 0x447   : > { %v7471_v5 = vpop.eup %5544  ;;  %3934 = vmax.xlane.f32.xlu2 %v3933_v41  ;;  %5554 = vpow2.f32 %v3196_v46  ;;  %v8465_v41 = vld [vmem:[#allocation85_spill] sm:$0xff] }
 0x448   : > { %v3919_v58 = vmax.f32 %v8459_v37, %v7452_v13  ;;  %v3922_v30 = vmax.f32 %v8460_v0, %v7455_v2  ;;  %5556 = vpow2.f32 %v3198_v14 }
 0x449   : > { %v7475_v63 = vpop.eup %5546 }
 0x44a   : > { %v3920_v10 = vmax.f32 %v3919_v58, %v7458_v35  ;;  %v3923_v50 = vmax.f32 %v3922_v30, %v7461_v20  ;;  %v7477_v4 = vpop.eup %5548  ;;  %v3206_v39 = vadd.f32 %v7475_v63, %v7449_v47  ;;  %v8466_v58 = vld [vmem:[#allocation54_spill] sm:$0xff]  ;;  %v8467_v30 = vld [vmem:[#allocation40_spill] sm:$0xff] }
 0x44b   : > { %v7481_v44 = vpop.eup %5550  ;;  %v3209_v43 = vadd.f32 %v7477_v4, %v7471_v5 }
 0x44c   : > { %v3930_v54 = vmax.f32 %v3920_v10, %v3923_v50  ;;  %8461 = vst [vmem:[#allocation42_spill] sm:$0xff] %v7481_v44  ;;  %v7485_v31 = vpop.eup %5552  ;;  %v3207_v46 = vadd.f32 %v7481_v44, %v3206_v39  ;;  %v8468_v50 = vld [vmem:[#allocation56_spill] sm:$0xff]  ;;  %v8471_v44 = vld [vmem:[#allocation82_spill] sm:$0xff] }
 0x44d   : > { %8462 = vst [vmem:[#allocation43_spill] sm:$0xff] %v7485_v31  ;;  %v7488_v36 = vpop.eup %5554  ;;  %v3210_v33 = vadd.f32 %v7485_v31, %v3209_v43 }
 0x44e   : > { %8463 = vst [vmem:[#allocation44_spill] sm:$0xff] %v7488_v36  ;;  %v7491_v29 = vpop.eup %5556  ;;  %v3208_v16 = vadd.f32 %v7488_v36, %v3207_v46  ;;  %3931 = vmax.xlane.f32.xlu0 %v3930_v54 }
 0x44f   : > { %8464 = vst [vmem:[#allocation93_spill] sm:$0xff] %v7491_v29  ;;  %v3211_v15 = vadd.f32 %v7491_v29, %v3210_v33 }
 0x451   : > { %v3215_v14 = vadd.f32 %v3211_v15, %v3208_v16  ;;  %v8472_v16 = vld [vmem:[#allocation80_spill] sm:$0xff] }
 0x453   : > { %3216 = vadd.xlane.f32.xlu1 %v3215_v14 }
 0x476   : > { %v3540_v28 = vpop.xlane.xlu2 %3539 }
 0x477   : > { %v3544_v37 = vsub.f32 %v8465_v41, %v3540_v28  ;;  %v3545_v0 = vsub.f32 %v8466_v58, %v3540_v28  ;;  %v3548_v10 = vsub.f32 %v8467_v30, %v3540_v28  ;;  %v3549_v39 = vsub.f32 %v8468_v50, %v3540_v28 }
 0x478   : > { %v3552_v43 = vsub.f32 %v8469_v60, %v3540_v28  ;;  %v3553_v31 = vsub.f32 %v8470_v59, %v3540_v28  ;;  %v3556_v46 = vsub.f32 %v8471_v44, %v3540_v28  ;;  %v3557_v15 = vsub.f32 %v8472_v16, %v3540_v28 }
 0x479   : > { %v3560_v54 = vmul.f32 1.442695, %v3544_v37  ;;  %v3562_v36 = vmul.f32 1.442695, %v3545_v0  ;;  %v3568_v33 = vmul.f32 1.442695, %v3548_v10 }
 0x47a   : > { %v3570_v14 = vmul.f32 1.442695, %v3549_v39  ;;  %v3576_v41 = vmul.f32 1.442695, %v3552_v43  ;;  %v3578_v58 = vmul.f32 1.442695, %v3553_v31 }
 0x47b   : > { %5558 = vpow2.f32 %v3560_v54  ;;  %v3584_v30 = vmul.f32 1.442695, %v3556_v46  ;;  %v3586_v50 = vmul.f32 1.442695, %v3557_v15 }
 0x47c   : > { %5560 = vpow2.f32 %v3562_v36 }
 0x47d   : > { %5562 = vpow2.f32 %v3568_v33 }
 0x47e   : > { %5564 = vpow2.f32 %v3570_v14 }
 0x47f   : > { %5566 = vpow2.f32 %v3576_v41 }
 0x480   : > { %5568 = vpow2.f32 %v3578_v58 }
 0x481   : > { %v7503_v60 = vpop.eup %5558  ;;  %5570 = vpow2.f32 %v3584_v30 }
 0x482   : > { %8473 = vst [vmem:[#allocation91_spill] sm:$0xff] %v7503_v60  ;;  %v7505_v59 = vpop.eup %5560  ;;  %5572 = vpow2.f32 %v3586_v50 }
 0x483   : > { %8474 = vst [vmem:[#allocation64_spill] sm:$0xff] %v7505_v59  ;;  %v7507_v44 = vpop.eup %5562 }
 0x484   : > { %8475 = vst [vmem:[#allocation68_spill] sm:$0xff] %v7507_v44  ;;  %v7509_v28 = vpop.eup %5564  ;;  %v3592_v36 = vadd.f32 %v7507_v44, %v7503_v60 }
 0x485   : > { %8476 = vst [vmem:[#allocation62_spill] sm:$0xff] %v7509_v28  ;;  %v7513_v31 = vpop.eup %5566  ;;  %v3595_v37 = vadd.f32 %v7509_v28, %v7505_v59  ;;  %v8485_v28 = vld [vmem:[#allocation79_spill] sm:$0xff] }
 0x486   : > { %8477 = vst [vmem:[#allocation47_spill] sm:$0xff] %v7513_v31  ;;  %v7517_v0 = vpop.eup %5568  ;;  %v3593_v10 = vadd.f32 %v7513_v31, %v3592_v36 }
 0x487   : > { %8478 = vst [vmem:[#allocation97_spill] sm:$0xff] %v7517_v0  ;;  %v7520_v39 = vpop.eup %5570  ;;  %v3596_v43 = vadd.f32 %v7517_v0, %v3595_v37  ;;  %v8481_v0 = vld [vmem:[#allocation87_spill] sm:$0xff] }
 0x488   : > { %8479 = vst [vmem:[#allocation83_spill] sm:$0xff] %v7520_v39  ;;  %v7523_v46 = vpop.eup %5572  ;;  %v3594_v54 = vadd.f32 %v7520_v39, %v3593_v10  ;;  %v8482_v39 = vld [vmem:[#allocation98_spill] sm:$0xff] }
 0x489   : > { %8480 = vst [vmem:[#allocation70_spill] sm:$0xff] %v7523_v46  ;;  %v3597_v33 = vadd.f32 %v7523_v46, %v3596_v43 }
 0x48b   : > { %v3604_v16 = vadd.f32 %v3597_v33, %v3594_v54 }
 0x48d   : > { %3605 = vadd.xlane.f32.xlu1 %v3604_v16 }
 0x4a7   : > { %v2781_v15 = vpop.xlane.xlu1 %2780 }
 0x4a8   : > { %5574 = vrcp.f32 %v2781_v15  ;;  %v2794_v41 = vand.u32 2147483647, %v2781_v15  ;;  %v2796_v36 = vand.u32 2147483648, %v2781_v15  ;;  %vm2790_vm4 = vweird.f32 %v2781_v15 }
 0x4aa   : > { %vm7533_vm5 = vcmp.eq.f32.partialorder %v2794_v41, 8.507059e+37 }
 0x4ae   : > { %v5575_v14 = vpop.eup %5574 }
 0x4af   : > { %v2786_v58 = vmul.f32 %v5575_v14, %v2781_v15  ;;  %v7527_v30 = vpop.xlane.xlu0 %2783  ;;  %v3543_v50 = vpop.xlane.xlu1 %3542  ;;  %vm2791_vm6 = vweird.f32 %v5575_v14 }
 0x4b0   : > { %5576 = vrcp.f32 %v7527_v30  ;;  %v3546_v31 = vsub.f32 %v8481_v0, %v3543_v50  ;;  %v3547_v10 = vsub.f32 %v8431_v53, %v3543_v50  ;;  %v3550_v43 = vsub.f32 %v8482_v39, %v3543_v50  ;;  %vm2792_vm7 = vmor %vm2790_vm4, %vm2791_vm6 }
 0x4b1   : > { %v2787_v37 = vsub.f32 1.0, %v2786_v58  ;;  %v3551_v33 = vsub.f32 %v8430_v56, %v3543_v50  ;;  %v2808_v46 = vand.u32 2147483647, %v7527_v30  ;;  %v3554_v44 = vsub.f32 %v8485_v28, %v3543_v50 }
 0x4b2   : > { %v3555_v58 = vsub.f32 %v7289_v40, %v3543_v50  ;;  %v3564_v0 = vmul.f32 1.442695, %v3546_v31  ;;  %v3566_v59 = vmul.f32 1.442695, %v3547_v10  ;;  %v3572_v53 = vmul.f32 1.442695, %v3550_v43 }
 0x4b3   : > { %v2788_v16 = vmul.f32 %v5575_v14, %v2787_v37  ;;  %v2797_v39 = vor.u32 1.1754944e-38, %v2796_v36  ;;  %v3558_v41 = vsub.f32 %v7260_v21, %v3543_v50  ;;  %v3559_v29 = vsub.f32 %v7295_v3, %v3543_v50 }
 0x4b4   : > { %vm2804_vm8 = vweird.f32 %v7527_v30  ;;  %v2810_v56 = vand.u32 2147483648, %v7527_v30  ;;  %5578 = vpow2.f32 %v3564_v0  ;;  %v3574_v28 = vmul.f32 1.442695, %v3551_v33 }
 0x4b5   : > { %v2789_v60 = vadd.f32 %v5575_v14, %v2788_v16  ;;  %5580 = vpow2.f32 %v3566_v59  ;;  %v3580_v37 = vmul.f32 1.442695, %v3554_v44  ;;  %vm7551_vm9 = vcmp.eq.f32.partialorder %v2808_v46, 8.507059e+37 }
 0x4b6   : > { %v5577_v61 = vpop.eup %5576  ;;  %5582 = vpow2.f32 %v3572_v53  ;;  %v3582_v50 = vmul.f32 1.442695, %v3555_v58  ;;  %v2811_v0 = vor.u32 1.1754944e-38, %v2810_v56 }
 0x4b7   : > { %v2793_v40 = vsel %vm2792_vm7, %v5575_v14, %v2789_v60  ;;  %v2800_v31 = vmul.f32 %v5577_v61, %v7527_v30  ;;  %v3588_v60 = vmul.f32 1.442695, %v3558_v41  ;;  %v3590_v14 = vmul.f32 1.442695, %v3559_v29  ;;  %v5420_v41 = vld [vmem:[%s7199_s20 + $0x24] sm:$0xf0] }
 0x4b8   : > { %v7549_v21 = vsel %vm7533_vm5, %v2797_v39, %v2793_v40  ;;  %vm2805_vm10 = vweird.f32 %v5577_v61 }
 0x4b9   : > { %v7555_v15 = vpop.xlane.xlu0 %3213  ;;  %v2801_v36 = vsub.f32 1.0, %v2800_v31  ;;  %v2813_v44 = vmul.f32 %v7304_v48, %v7549_v21  ;;  %v2814_v46 = vmul.f32 %v7308_v45, %v7549_v21  ;;  %v2817_v54 = vmul.f32 %v7310_v25, %v7549_v21  ;;  %vm2806_vm11 = vmor %vm2804_vm8, %vm2805_vm10 }
 0x4ba   : > { %5584 = vrcp.f32 %v7555_v15  ;;  %v3229_v59 = vand.u32 2147483648, %v7555_v15  ;;  %v7564_v43 = vpop.xlane.xlu2 %3934  ;;  %v7568_v33 = vpop.eup %5578  ;;  %v3227_v29 = vand.u32 2147483647, %v7555_v15  ;;  %v2818_v48 = vmul.f32 %v7318_v27, %v7549_v21  ;;  %v5202_v27 = vld [vmem:[%s7199_s20 + $0x28] sm:$0xf0] }
 0x4bb   : > { %5586 = vpow2.f32 %v3574_v28  ;;  %v2802_v10 = vmul.f32 %v5577_v61, %v2801_v36  ;;  %v7571_v16 = vpack.c.bf16 %v2814_v46, %v2813_v44  ;;  %v7575_v58 = vpop.eup %5580  ;;  %vm3223_vm12 = vweird.f32 %v7555_v15 }
 0x4bc   : > { %5588 = vpow2.f32 %v3580_v37  ;;  %v7577_v53 = vor.u32 1.1754944e-38, %v3229_v59  ;;  %v7579_v39 = vpop.eup %5582  ;;  %v7589_v25 = vpack.c.bf16 %v2818_v48, %v2817_v54  ;;  %vm7606_vm13 = vcmp.eq.f32.partialorder %v3227_v29, 8.507059e+37 }
 0x4bd   : > { %5590 = vpow2.f32 %v3582_v50  ;;  %v2803_v45 = vadd.f32 %v5577_v61, %v2802_v10  ;;  %2837 = vst [vmem:[%s7585_s16] sm:$0xff] %v7571_v16  ;;  %v3598_v28 = vadd.f32 %v7579_v39, %v7568_v33  ;;  %v2847_v40 = vunpack.c.l.b16 %v7571_v16 }
 0x4be   : > { %5592 = vpow2.f32 %v3588_v60  ;;  %v2848_v31 = vunpack.c.h.b16 %v7571_v16  ;;  %2839 = vst [vmem:[%s7585_s16 + $0x40] sm:$0xff] %v7589_v25 }
 0x4bf   : > { %5594 = vpow2.f32 %v3590_v14  ;;  %v2807_v30 = vsel %vm2806_vm11, %v5577_v61, %v2803_v45  ;;  %v3942_v61 = vsub.f32 %v8424_v6, %v7564_v43  ;;  %v3943_v14 = vsub.f32 %v8435_v38, %v7564_v43 }
 0x4c0   : > { %v5585_v56 = vpop.eup %5584  ;;  %v7603_v50 = vsel %vm7551_vm9, %v2811_v0, %v2807_v30 }
 0x4c1   : > { %v7599_v37 = vpop.eup %5586  ;;  %v3219_v36 = vmul.f32 %v5585_v56, %v7555_v15  ;;  %v2815_v44 = vmul.f32 %v7341_v26, %v7603_v50  ;;  %v2816_v46 = vmul.f32 %v7346_v52, %v7603_v50  ;;  %v2819_v10 = vmul.f32 %v7350_v24, %v7603_v50 }
 0x4c2   : > { %v7616_v59 = vpop.eup %5588  ;;  %v3601_v3 = vadd.f32 %v7599_v37, %v7575_v58  ;;  %vm3224_vm14 = vweird.f32 %v5585_v56  ;;  %v2820_v29 = vmul.f32 %v7352_v32, %v7603_v50  ;;  %v2895_v52 = vunpack.c.l.b16 %v7589_v25 }
 0x4c3   : > { %8490 = vst [vmem:[#allocation63_spill] sm:$0xff] %v7616_v59  ;;  %v7626_v54 = vpop.eup %5590  ;;  %v3220_v6 = vsub.f32 1.0, %v3219_v36  ;;  %v3599_v38 = vadd.f32 %v7616_v59, %v3598_v28  ;;  %v2830_v48 = vpack.c.bf16 %v2816_v46, %v2815_v44  ;;  %v2896_v24 = vunpack.c.h.b16 %v7589_v25  ;;  %vm7656_vm15 = vmor %vm3223_vm12, %vm3224_vm14  ;;  %v5422_v59 = vld [vmem:[%s7199_s20 + $0x34] sm:$0xf0] }
 0x4c4   : > { %8491 = vst [vmem:[#allocation65_spill] sm:$0xff] %v7626_v54  ;;  %v7631_v16 = vpop.eup %5592  ;;  %v3602_v26 = vadd.f32 %v7626_v54, %v3601_v3  ;;  %v2832_v36 = vpack.c.bf16 %v2820_v29, %v2819_v10  ;;  %v3946_v28 = vsub.f32 %v7380_v18, %v7564_v43  ;;  %v3947_v46 = vsub.f32 %v7383_v51, %v7564_v43  ;;  %v5208_v54 = vld [vmem:[%s7199_s20 + $0x30] sm:$0xf] }
 0x4c5   : > { %8492 = vst [vmem:[#allocation92_spill] sm:$0xff] %v7631_v16  ;;  %v7636_v45 = vpop.eup %5594  ;;  %v3221_v0 = vmul.f32 %v5585_v56, %v3220_v6  ;;  %v3600_v30 = vadd.f32 %v7631_v16, %v3599_v38  ;;  %v2849_v44 = vunpack.c.l.b16 %v2830_v48  ;;  %v2850_v25 = vunpack.c.h.b16 %v2830_v48 }
 0x4c6   : > { %8493 = vst [vmem:[#allocation66_spill] sm:$0xff] %v7636_v45  ;;  %v7641_v32 = vpop.xlane.xlu1 %3216  ;;  %v3603_v3 = vadd.f32 %v7636_v45, %v3602_v26  ;;  %v3950_v18 = vsub.f32 %v7438_v62, %v7564_v43  ;;  %v3951_v10 = vsub.f32 %v7441_v11, %v7564_v43  ;;  %v5419_v62 = vld [vmem:[%s7199_s20 + $0x24] sm:$0xf]  ;;  %v2897_v15 = vunpack.c.l.b16 %v2832_v36 }
 0x4c7   : > { %2838 = vst [vmem:[%s7585_s16 + $0x8] sm:$0xff] %v2830_v48  ;;  %v3222_v6 = vadd.f32 %v5585_v56, %v3221_v0  ;;  %5596 = vrcp.f32 %v7641_v32  ;;  %v3243_v51 = vand.u32 2147483648, %v7641_v32  ;;  %v2851_v26 = vpack.c.b16 %v2849_v44, %v2847_v40  ;;  %v5200_v0 = vld [vmem:[%s7199_s20 + $0x20] sm:$0xf] }
 0x4c8   : > { %2840 = vst [vmem:[%s7585_s16 + $0x48] sm:$0xff] %v2832_v36  ;;  %v3607_v29 = vadd.f32 %v3603_v3, %v3600_v30  ;;  %v2852_v48 = vpack.c.b16 %v2850_v25, %v2848_v31  ;;  %v3241_v45 = vand.u32 2147483647, %v7641_v32  ;;  %v2898_v16 = vunpack.c.h.b16 %v2832_v36  ;;  %v5421_v36 = vld [vmem:[%s7199_s20 + $0x34] sm:$0xf] }
 0x4c9   : > { %v3226_v11 = vsel %vm7656_vm15, %v5585_v56, %v3222_v6  ;;  %v7675_v31 = vor.u32 1.1754944e-38, %v3243_v51  ;;  %2873 = vmatmul.bf16.vlgmr.msrb.gmra.mxu0 %v2851_v26  ;;  %v8496_v30 = vsub.f32 %v8425_v23, %v7564_v43  ;;  %v8497_v3 = vsub.f32 %v8436_v42, %v7564_v43  ;;  %v3932_v51 = vpop.xlane.xlu0 %3931 }
 0x4ca   : > { %v7673_v40 = vsel %vm7606_vm13, %v7577_v53, %v3226_v11  ;;  %3608 = vadd.xlane.f32.xlu0 %v3607_v29  ;;  %2887 = vmatmul.bf16.vlgmr.msrb.gmra.mxu1 %v2852_v48  ;;  %v2899_v25 = vpack.c.b16 %v2897_v15, %v2895_v52  ;;  %v2900_v6 = vpack.c.b16 %v2898_v16, %v2896_v24  ;;  %v3964_v38 = vmul.f32 1.442695, %v3942_v61  ;;  %v5210_v53 = vld [vmem:[%s7199_s20 + $0x38] sm:$0xf0] }
 0x4cb   : > { %v3956_v56 = vmul.f32 1.442695, %v8496_v30  ;;  %v3958_v44 = vmul.f32 1.442695, %v8497_v3  ;;  %v3966_v60 = vmul.f32 1.442695, %v3943_v14  ;;  %vm3237_vm0 = vweird.f32 %v7641_v32 }
 0x4cc   : > { %v3972_v29 = vmul.f32 1.442695, %v3946_v28  ;;  %v3974_v26 = vmul.f32 1.442695, %v3947_v46  ;;  %v3980_v11 = vmul.f32 1.442695, %v3950_v18  ;;  %2921 = vmatmul.bf16.vlgmr.msrb.gmra.mxu2 %v2899_v25  ;;  %2935 = vmatmul.bf16.vlgmr.msrb.gmra.mxu3 %v2900_v6  ;;  %v7686_v43 = vor.u32 %v5420_v41, %v5200_v0 }
 0x4cd   : > { %5598 = vpow2.f32 %v3956_v56  ;;  %v5597_v23 = vpop.eup %5596  ;;  %v3982_v42 = vmul.f32 1.442695, %v3951_v10  ;;  %v7688_v48 = vor.u32 %v5419_v62, %v5202_v27  ;;  %vm7691_vm2 = vcmp.eq.f32.partialorder %v3241_v45, 8.507059e+37  ;;  %v8502_v0 = vld [vmem:[#allocation72_spill] sm:$0xff]  ;;  %v8503_v62 = vld [vmem:[#allocation81_spill] sm:$0xff] }
 0x4ce   : > { %5600 = vpow2.f32 %v3958_v44  ;;  %v3233_v61 = vmul.f32 %v5597_v23, %v7641_v32  ;;  %vm3238_vm1 = vweird.f32 %v5597_v23  ;;  %v7695_v16 = vor.u32 %v5422_v59, %v5208_v54  ;;  %2968 = vmatpush.bf16.xpose.msra.mxu0 %v7686_v43  ;;  %v8500_v54 = vld [vmem:[#allocation86_spill] sm:$0xff] }
 0x4cf   : > { %5602 = vpow2.f32 %v3964_v38  ;;  %2982 = vmatpush.bf16.xpose.msra.mxu1 %v7688_v48  ;;  %v7699_v52 = vor.u32 %v5421_v36, %v5210_v53  ;;  %v3936_v27 = vsub.f32 %v8457_v7, %v3932_v51  ;;  %v3937_v41 = vsub.f32 %v8433_v8, %v3932_v51  ;;  %v8501_v8 = vld [vmem:[#allocation32_spill] sm:$0xff]  ;;  %vm3239_vm3 = vmor %vm3237_vm0, %vm3238_vm1 }
 0x4d0   : > { %5604 = vpow2.f32 %v3966_v60  ;;  %v3234_v24 = vsub.f32 1.0, %v3233_v61  ;;  %3016 = vmatpush.bf16.xpose.msra.mxu2 %v7695_v16  ;;  %v3940_v45 = vsub.f32 %v8458_v49, %v3932_v51  ;;  %v3941_v59 = vsub.f32 %v8432_v12, %v3932_v51 }
 0x4d1   : > { %5606 = vpow2.f32 %v3972_v29  ;;  %3030 = vmatpush.bf16.xpose.msra.mxu3 %v7699_v52  ;;  %v3944_v28 = vsub.f32 %v7452_v13, %v3932_v51  ;;  %v3945_v46 = vsub.f32 %v7455_v2, %v3932_v51  ;;  %v3948_v7 = vsub.f32 %v7458_v35, %v3932_v51 }
 0x4d2   : > { %5608 = vpow2.f32 %v3974_v26  ;;  %v3235_v10 = vmul.f32 %v5597_v23, %v3234_v24  ;;  %v3949_v49 = vsub.f32 %v7461_v20, %v3932_v51  ;;  %v3952_v12 = vmul.f32 1.442695, %v3936_v27 }
 0x4d3   : > { %v7712_v18 = vpop.eup %5598  ;;  %5610 = vpow2.f32 %v3980_v11  ;;  %v3954_v13 = vmul.f32 1.442695, %v3937_v41  ;;  %v3960_v2 = vmul.f32 1.442695, %v3940_v45  ;;  %v3962_v30 = vmul.f32 1.442695, %v3941_v59 }
 0x4d4   : > { %v7717_v15 = vpop.eup %5600  ;;  %5612 = vpow2.f32 %v3982_v42  ;;  %v3236_v56 = vadd.f32 %v5597_v23, %v3235_v10  ;;  %v3968_v3 = vmul.f32 1.442695, %v3944_v28  ;;  %v3970_v44 = vmul.f32 1.442695, %v3945_v46 }
 0x4d5   : > { %v7719_v35 = vpop.eup %5602  ;;  %5614 = vpow2.f32 %v3952_v12  ;;  %v3976_v25 = vmul.f32 1.442695, %v3948_v7  ;;  %v3978_v6 = vmul.f32 1.442695, %v3949_v49  ;;  %v2821_v51 = vmul.f32 %v7322_v9, %v7549_v21  ;;  %v8504_v12 = vld [vmem:[#allocation34_spill] sm:$0xff] }
 0x4d6   : > { %3295 = vmatpush.bf16.xpose.msrb.mxu0 %v8500_v54  ;;  %v7721_v36 = vpop.eup %5604  ;;  %v3990_v20 = vadd.f32 %v7719_v35, %v7712_v18  ;;  %5616 = vpow2.f32 %v3954_v13  ;;  %v3240_v60 = vsel %vm3239_vm3, %v5597_v23, %v3236_v56  ;;  %v2822_v11 = vmul.f32 %v7328_v57, %v7549_v21 }
 0x4d7   : > { %3309 = vmatpush.bf16.xpose.msrb.mxu1 %v8501_v8  ;;  %v7728_v38 = vpop.eup %5606  ;;  %v3993_v53 = vadd.f32 %v7721_v36, %v7717_v15  ;;  %5618 = vpow2.f32 %v3960_v2  ;;  %v7739_v32 = vsel %vm7691_vm2, %v7675_v31, %v3240_v60  ;;  %v2823_v9 = vmul.f32 %v7358_v19, %v7603_v50 }
 0x4d8   : > { %3333 = vmatpush.bf16.xpose.msrb.mxu2 %v8502_v0  ;;  %v7734_v29 = vpop.eup %5608  ;;  %v3991_v26 = vadd.f32 %v7728_v38, %v3990_v20  ;;  %5620 = vpow2.f32 %v3962_v30  ;;  %v2824_v61 = vmul.f32 %v7362_v34, %v7603_v50  ;;  %v2833_v27 = vpack.c.bf16 %v2822_v11, %v2821_v51  ;;  %v8505_v30 = vld [vmem:[#allocation35_spill] sm:$0xff] }
 0x4d9   : > { %3347 = vmatpush.bf16.xpose.msrb.mxu3 %v8503_v62  ;;  %v7744_v23 = vpop.eup %5610  ;;  %v3994_v42 = vadd.f32 %v7734_v29, %v3993_v53  ;;  %5622 = vpow2.f32 %v3968_v3  ;;  %v2825_v57 = vmul.f32 %v7331_v22, %v7549_v21  ;;  %v2826_v19 = vmul.f32 %v7336_v55, %v7549_v21 }
 0x4da   : > { %v7751_v31 = vpop.eup %5612  ;;  %v3992_v14 = vadd.f32 %v7744_v23, %v3991_v26  ;;  %5624 = vpow2.f32 %v3970_v44  ;;  %v2834_v45 = vpack.c.bf16 %v2824_v61, %v2823_v9  ;;  %2841 = vst [vmem:[%s7585_s16 + $0x80] sm:$0xff] %v2833_v27  ;;  %v2943_v59 = vunpack.c.l.b16 %v2833_v27 }
 0x4db   : > { %v7756_v41 = vpop.eup %5614  ;;  %v3995_v24 = vadd.f32 %v7751_v31, %v3994_v42  ;;  %5626 = vpow2.f32 %v3976_v25  ;;  %v2944_v28 = vunpack.c.h.b16 %v2833_v27  ;;  %v2827_v46 = vmul.f32 %v7367_v1, %v7603_v50 }
 0x4dc   : > { %v7761_v34 = vpop.eup %5616  ;;  %5628 = vpow2.f32 %v3978_v6  ;;  %2842 = vst [vmem:[%s7585_s16 + $0x88] sm:$0xff] %v2834_v45  ;;  %v2945_v10 = vunpack.c.l.b16 %v2834_v45  ;;  %v2946_v49 = vunpack.c.h.b16 %v2834_v45  ;;  %v2828_v13 = vmul.f32 %v8504_v12, %v7603_v50  ;;  %v8507_v45 = vld [vmem:[#allocation37_spill] sm:$0xff] }
 0x4dd   : > { %v7766_v7 = vpop.eup %5618  ;;  %v3999_v22 = vadd.f32 %v3995_v24, %v3992_v14  ;;  %v2835_v2 = vpack.c.bf16 %v2826_v19, %v2825_v57  ;;  %v3246_v56 = vmul.f32 %v8505_v30, %v7673_v40  ;;  %v3247_v1 = vmul.f32 %v7398_v17, %v7673_v40  ;;  %v8509_v30 = vld [vmem:[#allocation38_spill] sm:$0xff] }
 0x4de   : > { %v7771_v55 = vpop.eup %5620  ;;  %v3984_v21 = vadd.f32 %v7766_v7, %v7756_v41  ;;  %v2947_v50 = vpack.c.b16 %v2945_v10, %v2943_v59  ;;  %v2948_v20 = vpack.c.b16 %v2946_v49, %v2944_v28  ;;  %v2836_v25 = vpack.c.bf16 %v2828_v13, %v2827_v46 }
 0x4df   : > { %v7779_v3 = vpop.eup %5622  ;;  %4000 = vadd.xlane.f32.xlu1 %v3999_v22  ;;  %v3987_v44 = vadd.f32 %v7771_v55, %v7761_v34  ;;  %2843 = vst [vmem:[%s7585_s16 + $0xc0] sm:$0xff] %v2835_v2  ;;  %v2991_v53 = vunpack.c.l.b16 %v2835_v2  ;;  %v2992_v51 = vunpack.c.h.b16 %v2835_v2  ;;  %v3248_v17 = vmul.f32 %v7449_v47, %v7739_v32  ;;  %v8506_v47 = vld [vmem:[#allocation36_spill] sm:$0xff] }
 0x4e0   : > { %v7783_v6 = vpop.eup %5624  ;;  %v3985_v60 = vadd.f32 %v7779_v3, %v3984_v21  ;;  %2969 = vmatmul.bf16.vlgmr.msra.gmra.mxu0 %v2947_v50  ;;  %2983 = vmatmul.bf16.vlgmr.msra.gmra.mxu1 %v2948_v20  ;;  %2844 = vst [vmem:[%s7585_s16 + $0xc8] sm:$0xff] %v2836_v25  ;;  %v2993_v42 = vunpack.c.l.b16 %v2836_v25  ;;  %v2994_v9 = vunpack.c.h.b16 %v2836_v25  ;;  %v3249_v61 = vmul.f32 %v7471_v5, %v7739_v32  ;;  %v8508_v21 = vld [vmem:[#allocation90_spill] sm:$0xff]  ;;  %v8512_v20 = vld [vmem:[#allocation39_spill] sm:$0xff] }
 0x4e1   : > { %v7789_v26 = vpop.eup %5626  ;;  %v3988_v11 = vadd.f32 %v7783_v6, %v3987_v44  ;;  %v3262_v57 = vpack.c.bf16 %v3247_v1, %v3246_v56  ;;  %v3250_v24 = vmul.f32 %v8506_v47, %v7673_v40  ;;  %v3251_v19 = vmul.f32 %v8507_v45, %v7673_v40  ;;  %3371 = vmatpush.bf16.xpose.msra.mxu0 %v7686_v43  ;;  %v8511_v1 = vld [vmem:[#allocation43_spill] sm:$0xff] }
 0x4e2   : > { %v7795_v14 = vpop.eup %5628  ;;  %v3986_v27 = vadd.f32 %v7789_v26, %v3985_v60  ;;  %v2995_v28 = vpack.c.b16 %v2993_v42, %v2991_v53  ;;  %v2996_v46 = vpack.c.b16 %v2994_v9, %v2992_v51  ;;  %v3263_v22 = vpack.c.bf16 %v3249_v61, %v3248_v17  ;;  %3385 = vmatpush.bf16.xpose.msra.mxu1 %v7688_v48  ;;  %v8513_v60 = vld [vmem:[#allocation41_spill] sm:$0xff]  ;;  %v8514_v51 = vld [vmem:[#allocation44_spill] sm:$0xff] }
 0x4e3   : > { %v3989_v59 = vadd.f32 %v7795_v14, %v3988_v11  ;;  %3270 = vst [vmem:[%s7585_s16 + $0x10] sm:$0xff] %v3262_v57  ;;  %v3252_v5 = vmul.f32 %v7475_v63, %v7739_v32  ;;  %v3253_v10 = vmul.f32 %v7477_v4, %v7739_v32  ;;  %v3264_v12 = vpack.c.bf16 %v3251_v19, %v3250_v24  ;;  %v8510_v4 = vld [vmem:[#allocation42_spill] sm:$0xff]  ;;  %v8515_v42 = vld [vmem:[#allocation93_spill] sm:$0xff] }
 0x4e4   : > { %3017 = vmatmul.bf16.vlgmr.msra.gmra.mxu2 %v2995_v28  ;;  %3031 = vmatmul.bf16.vlgmr.msra.gmra.mxu3 %v2996_v46  ;;  %3271 = vst [vmem:[%s7585_s16 + $0x18] sm:$0xff] %v3263_v22  ;;  %v3254_v2 = vmul.f32 %v8508_v21, %v7673_v40  ;;  %v3255_v63 = vmul.f32 %v8509_v30, %v7673_v40  ;;  %v3282_v61 = vunpack.c.l.b16 %v3263_v22  ;;  %v3280_v45 = vunpack.c.l.b16 %v3262_v57 }
 0x4e5   : > { %v3996_v49 = vadd.f32 %v3989_v59, %v3986_v27  ;;  %v3265_v13 = vpack.c.bf16 %v3253_v10, %v3252_v5  ;;  %3409 = vmatpush.bf16.xpose.msra.mxu2 %v7695_v16  ;;  %3423 = vmatpush.bf16.xpose.msra.mxu3 %v7699_v52  ;;  %3272 = vst [vmem:[%s7585_s16 + $0x50] sm:$0xff] %v3264_v12  ;;  %v3283_v27 = vunpack.c.h.b16 %v3263_v22  ;;  %v3281_v19 = vunpack.c.h.b16 %v3262_v57 }
 0x4e6   : > { %v3256_v56 = vmul.f32 %v8510_v4, %v7739_v32  ;;  %v3257_v44 = vmul.f32 %v8511_v1, %v7739_v32  ;;  %v3266_v50 = vpack.c.bf16 %v3255_v63, %v3254_v2  ;;  %v3258_v25 = vmul.f32 %v8512_v20, %v7673_v40 }
 0x4e7   : > { %3997 = vadd.xlane.f32.xlu2 %v3996_v49  ;;  %3273 = vst [vmem:[%s7585_s16 + $0x58] sm:$0xff] %v3265_v13  ;;  %v3259_v53 = vmul.f32 %v8513_v60, %v7673_v40  ;;  %v3260_v17 = vmul.f32 %v8514_v51, %v7739_v32  ;;  %v3261_v9 = vmul.f32 %v8515_v42, %v7739_v32  ;;  %v3320_v40 = vunpack.c.l.b16 %v3265_v13 }
 0x4e8   : > { %v3267_v11 = vpack.c.bf16 %v3257_v44, %v3256_v56  ;;  %3274 = vst [vmem:[%s7585_s16 + $0x90] sm:$0xff] %v3266_v50  ;;  %v3284_v59 = vpack.c.b16 %v3282_v61, %v3280_v45  ;;  %v3285_v28 = vpack.c.b16 %v3283_v27, %v3281_v19  ;;  %v3321_v46 = vunpack.c.h.b16 %v3265_v13  ;;  %v8516_v27 = vld [vmem:[#allocation91_spill] sm:$0xff]  ;;  %v8518_v19 = vld [vmem:[#allocation68_spill] sm:$0xff] }
 0x4e9   : > { %v3268_v47 = vpack.c.bf16 %v3259_v53, %v3258_v25  ;;  %v3269_v24 = vpack.c.bf16 %v3261_v9, %v3260_v17  ;;  %v3318_v5 = vunpack.c.l.b16 %v3264_v12  ;;  %v3319_v10 = vunpack.c.h.b16 %v3264_v12 }
 0x4ea   : > { %3275 = vst [vmem:[%s7585_s16 + $0x98] sm:$0xff] %v3267_v11  ;;  %v3358_v57 = vunpack.c.l.b16 %v3267_v11  ;;  %v3359_v49 = vunpack.c.h.b16 %v3267_v11  ;;  %v3356_v21 = vunpack.c.l.b16 %v3266_v50  ;;  %v3357_v13 = vunpack.c.h.b16 %v3266_v50 }
 0x4eb   : > { %3276 = vst [vmem:[%s7585_s16 + $0xd0] sm:$0xff] %v3268_v47  ;;  %v3322_v32 = vpack.c.b16 %v3320_v40, %v3318_v5  ;;  %v3323_v22 = vpack.c.b16 %v3321_v46, %v3319_v10  ;;  %v3396_v63 = vunpack.c.l.b16 %v3269_v24  ;;  %v3397_v12 = vunpack.c.h.b16 %v3269_v24  ;;  %v8520_v46 = vld [vmem:[#allocation47_spill] sm:$0xff]  ;;  %v8521_v10 = vld [vmem:[#allocation97_spill] sm:$0xff] }
 0x4ec   : > { %3277 = vst [vmem:[%s7585_s16 + $0xd8] sm:$0xff] %v3269_v24  ;;  %v3360_v2 = vpack.c.b16 %v3358_v57, %v3356_v21  ;;  %v3361_v30 = vpack.c.b16 %v3359_v49, %v3357_v13  ;;  %v3394_v4 = vunpack.c.l.b16 %v3268_v47  ;;  %v3395_v56 = vunpack.c.h.b16 %v3268_v47  ;;  %v8517_v24 = vld [vmem:[#allocation64_spill] sm:$0xff]  ;;  %v8523_v49 = vld [vmem:[#allocation70_spill] sm:$0xff] }
 0x4ed   : > { %vm3037_vm12 = vcmask 130048  }
 0x4ee   : > { %v3398_v44 = vpack.c.b16 %v3396_v63, %v3394_v4  ;;  %v3399_v20 = vpack.c.b16 %v3397_v12, %v3395_v56 }
 0x4f0   : > { %3296 = vmatmul.bf16.vlgmr.msrb.gmra.mxu0 %v3284_v59  ;;  %3310 = vmatmul.bf16.vlgmr.msrb.gmra.mxu1 %v3285_v28  ;;  %v8519_v28 = vld [vmem:[#allocation62_spill] sm:$0xff] }
 0x4f1   : > { %3687 = vmatpush.bf16.xpose.msrb.mxu0 %v8500_v54  ;;  %3701 = vmatpush.bf16.xpose.msrb.mxu1 %v8501_v8 }
 0x4f4   : > { %3334 = vmatmul.bf16.vlgmr.msrb.gmra.mxu2 %v3322_v32  ;;  %3348 = vmatmul.bf16.vlgmr.msrb.gmra.mxu3 %v3323_v22  ;;  %v8522_v22 = vld [vmem:[#allocation83_spill] sm:$0xff] }
 0x4f5   : > { %3725 = vmatpush.bf16.xpose.msrb.mxu2 %v8502_v0  ;;  %3739 = vmatpush.bf16.xpose.msrb.mxu3 %v8503_v62 }
 0x500   : > { %3372 = vmatmul.bf16.vlgmr.msra.gmra.mxu0 %v3360_v2  ;;  %3386 = vmatmul.bf16.vlgmr.msra.gmra.mxu1 %v3361_v30  ;;  %v3606_v1 = vpop.xlane.xlu1 %3605 }
 0x501   : > { %3763 = vmatpush.bf16.xpose.msra.mxu0 %v7686_v43  ;;  %3777 = vmatpush.bf16.xpose.msra.mxu1 %v7688_v48  ;;  %5630 = vrcp.f32 %v3606_v1  ;;  %v3621_v53 = vand.u32 2147483648, %v3606_v1  ;;  %v3619_v17 = vand.u32 2147483647, %v3606_v1  ;;  %vm3615_vm5 = vweird.f32 %v3606_v1 }
 0x503   : > { %v3622_v42 = vor.u32 1.1754944e-38, %v3621_v53  ;;  %vm3620_vm7 = vcmp.eq.f32.partialorder %v3619_v17, 8.507059e+37 }
 0x504   : > { %3410 = vmatmul.bf16.vlgmr.msra.gmra.mxu2 %v3398_v44  ;;  %3424 = vmatmul.bf16.vlgmr.msra.gmra.mxu3 %v3399_v20 }
 0x505   : > { %3801 = vmatpush.bf16.xpose.msra.mxu2 %v7695_v16  ;;  %3815 = vmatpush.bf16.xpose.msra.mxu3 %v7699_v52 }
 0x507   : > { %v5631_v50 = vpop.eup %5630 }
 0x508   : > { %v3611_v25 = vmul.f32 %v5631_v50, %v3606_v1  ;;  %vm3616_vm4 = vweird.f32 %v5631_v50 }
 0x509   : > { %vm3617_vm6 = vmor %vm3615_vm5, %vm3616_vm4 }
 0x50a   : > { %v3612_v60 = vsub.f32 1.0, %v3611_v25 }
 0x50c   : > { %v3613_v51 = vmul.f32 %v5631_v50, %v3612_v60 }
 0x50e   : > { %v3614_v11 = vadd.f32 %v5631_v50, %v3613_v51 }
 0x510   : > { %v3618_v9 = vsel %vm3617_vm6, %v5631_v50, %v3614_v11 }
 0x511   : > { %v3623_v61 = vsel %vm3620_vm7, %v3622_v42, %v3618_v9 }
 0x512   : > { %v3638_v47 = vmul.f32 %v8516_v27, %v3623_v61  ;;  %v3639_v45 = vmul.f32 %v8517_v24, %v3623_v61  ;;  %v3642_v59 = vmul.f32 %v8518_v19, %v3623_v61  ;;  %v3643_v40 = vmul.f32 %v8519_v28, %v3623_v61  ;;  %v8524_v19 = vld [vmem:[#allocation63_spill] sm:$0xff] }
 0x513   : > { %v3646_v5 = vmul.f32 %v8520_v46, %v3623_v61  ;;  %v3647_v32 = vmul.f32 %v8521_v10, %v3623_v61  ;;  %v3650_v57 = vmul.f32 %v8522_v22, %v3623_v61  ;;  %v3651_v21 = vmul.f32 %v8523_v49, %v3623_v61  ;;  %v8525_v46 = vld [vmem:[#allocation65_spill] sm:$0xff] }
 0x514   : > { %v3654_v13 = vpack.c.bf16 %v3639_v45, %v3638_v47  ;;  %v3656_v2 = vpack.c.bf16 %v3643_v40, %v3642_v59 }
 0x515   : > { %v7851_v30 = vpack.c.bf16 %v3647_v32, %v3646_v5  ;;  %v7853_v63 = vpack.c.bf16 %v3651_v21, %v3650_v57  ;;  %v8526_v5 = vld [vmem:[#allocation92_spill] sm:$0xff] }
 0x516   : > { %3662 = vst [vmem:[%s7585_s16 + $0x20] sm:$0xff] %v3654_v13  ;;  %v3672_v22 = vunpack.c.l.b16 %v3654_v13  ;;  %v3673_v49 = vunpack.c.h.b16 %v3654_v13 }
 0x517   : > { %3664 = vst [vmem:[%s7585_s16 + $0x60] sm:$0xff] %v3656_v2 }
 0x518   : > { %3666 = vst [vmem:[%s7585_s16 + $0xa0] sm:$0xff] %v7851_v30 }
 0x519   : > { %3668 = vst [vmem:[%s7585_s16 + $0xe0] sm:$0xff] %v7853_v63 }
 0x53d   : > { %v3609_v12 = vpop.xlane.xlu0 %3608 }
 0x53e   : > { %5632 = vrcp.f32 %v3609_v12  ;;  %v3635_v44 = vand.u32 2147483648, %v3609_v12  ;;  %v3633_v50 = vand.u32 2147483647, %v3609_v12  ;;  %vm3629_vm9 = vweird.f32 %v3609_v12 }
 0x540   : > { %v3636_v51 = vor.u32 1.1754944e-38, %v3635_v44  ;;  %vm3634_vm11 = vcmp.eq.f32.partialorder %v3633_v50, 8.507059e+37  ;;  %v3711_v44 = vunpack.c.h.b16 %v3656_v2 }
 0x544   : > { %v5633_v4 = vpop.eup %5632 }
 0x545   : > { %v3625_v56 = vmul.f32 %v5633_v4, %v3609_v12  ;;  %vm3630_vm8 = vweird.f32 %v5633_v4  ;;  %v3710_v12 = vunpack.c.l.b16 %v3656_v2 }
 0x546   : > { %v2874_v25 = vpop.f32.mrf.mxu0  ;;  %vm3631_vm10 = vmor %vm3629_vm9, %vm3630_vm8 }
 0x547   : > { %v3626_v1 = vsub.f32 1.0, %v3625_v56  ;;  %v2888_v60 = vpop.f32.mrf.mxu1 }
 0x548   : > { %v2889_v2 = vadd.f32 %v2888_v60, %v2874_v25 }
 0x549   : > { %v3627_v20 = vmul.f32 %v5633_v4, %v3626_v1 }
 0x54b   : > { %v3628_v53 = vadd.f32 %v5633_v4, %v3627_v20 }
 0x54d   : > { %v3632_v17 = vsel %vm3631_vm10, %v5633_v4, %v3628_v53 }
 0x54e   : > { %v3637_v11 = vsel %vm3634_vm11, %v3636_v51, %v3632_v17 }
 0x54f   : > { %v3640_v42 = vmul.f32 %v7568_v33, %v3637_v11  ;;  %v3641_v9 = vmul.f32 %v7575_v58, %v3637_v11  ;;  %v3644_v61 = vmul.f32 %v7579_v39, %v3637_v11  ;;  %v3645_v27 = vmul.f32 %v7599_v37, %v3637_v11  ;;  %v2922_v28 = vpop.f32.mrf.mxu2  ;;  %v2936_v40 = vpop.f32.mrf.mxu3  ;;  %v8527_v58 = vld [vmem:[#allocation66_spill] sm:$0xff] }
 0x550   : > { %v3648_v59 = vmul.f32 %v8524_v19, %v3637_v11  ;;  %v3649_v33 = vmul.f32 %v8525_v46, %v3637_v11  ;;  %v3652_v10 = vmul.f32 %v8526_v5, %v3637_v11  ;;  %v3653_v32 = vmul.f32 %v8527_v58, %v3637_v11  ;;  %v7872_v39 = vpop.f32.mrf.mxu0  ;;  %v7874_v37 = vpop.f32.mrf.mxu1 }
 0x551   : > { %v3655_v24 = vpack.c.bf16 %v3641_v9, %v3640_v42  ;;  %v3657_v45 = vpack.c.bf16 %v3645_v27, %v3644_v61  ;;  %v2937_v42 = vadd.f32 %v2936_v40, %v2922_v28  ;;  %v3787_v28 = vunpack.c.h.b16 %v7853_v63 }
 0x552   : > { %v7865_v47 = vpop.xlane.xlu1 %4000  ;;  %v3659_v53 = vpack.c.bf16 %v3649_v33, %v3648_v59  ;;  %v7878_v51 = vpack.c.bf16 %v3653_v32, %v3652_v10  ;;  %v3748_v59 = vunpack.c.l.b16 %v7851_v30  ;;  %v3038_v40 = vsel %vm3037_vm12, %v2889_v2, 0.0 }
 0x553   : > { %5634 = vrcp.f32 %v7865_v47  ;;  %3663 = vst [vmem:[%s7585_s16 + $0x28] sm:$0xff] %v3655_v24  ;;  %v3674_v57 = vunpack.c.l.b16 %v3655_v24  ;;  %v3675_v21 = vunpack.c.h.b16 %v3655_v24  ;;  %v3712_v4 = vunpack.c.l.b16 %v3657_v45 }
 0x554   : > { %3665 = vst [vmem:[%s7585_s16 + $0x68] sm:$0xff] %v3657_v45  ;;  %v3713_v20 = vunpack.c.h.b16 %v3657_v45  ;;  %v4025_v27 = vand.u32 2147483647, %v7865_v47  ;;  %v3039_v24 = vsel %vm3037_vm12, %v2937_v42, 0.0  ;;  %vm4021_vm14 = vweird.f32 %v7865_v47 }
 0x555   : > { %v3676_v56 = vpack.c.b16 %v3674_v57, %v3672_v22  ;;  %v3677_v1 = vpack.c.b16 %v3675_v21, %v3673_v49  ;;  %v3714_v50 = vpack.c.b16 %v3712_v4, %v3710_v12  ;;  %3667 = vst [vmem:[%s7585_s16 + $0xa8] sm:$0xff] %v3659_v53  ;;  %v3750_v46 = vunpack.c.l.b16 %v3659_v53 }
 0x556   : > { %v3715_v17 = vpack.c.b16 %v3713_v20, %v3711_v44  ;;  %3669 = vst [vmem:[%s7585_s16 + $0xe8] sm:$0xff] %v7878_v51  ;;  %v3751_v33 = vunpack.c.h.b16 %v3659_v53  ;;  %vm4026_vm15 = vcmp.eq.f32.partialorder %v4025_v27, 8.507059e+37  ;;  %v3040_v58 = vadd.f32 %v3039_v24, %v3038_v40 }
 0x557   : > { %3688 = vmatmul.bf16.vlgmr.msrb.gmra.mxu0 %v3676_v56  ;;  %3702 = vmatmul.bf16.vlgmr.msrb.gmra.mxu1 %v3677_v1  ;;  %v2924_v45 = vpop.f32.mrf.mxu2  ;;  %v2938_v19 = vpop.f32.mrf.mxu3  ;;  %v3788_v22 = vunpack.c.l.b16 %v7878_v51  ;;  %v3789_v57 = vunpack.c.h.b16 %v7878_v51  ;;  %v3752_v56 = vpack.c.b16 %v3750_v46, %v3748_v59 }
 0x558   : > { %3726 = vmatmul.bf16.vlgmr.msrb.gmra.mxu2 %v3714_v50  ;;  %4079 = vmatpush.bf16.xpose.msrb.mxu0 %v8500_v54  ;;  %v4027_v54 = vand.u32 2147483648, %v7865_v47 }
 0x559   : > { %v5635_v11 = vpop.eup %5634  ;;  %3740 = vmatmul.bf16.vlgmr.msrb.gmra.mxu3 %v3715_v17  ;;  %4117 = vmatpush.bf16.xpose.msrb.mxu2 %v8502_v0  ;;  %v3749_v0 = vunpack.c.h.b16 %v7851_v30  ;;  %v2939_v30 = vadd.f32 %v2938_v19, %v2924_v45  ;;  %v3791_v24 = vpack.c.b16 %v3789_v57, %v3787_v28  ;;  %v2891_v19 = vadd.f32 %v7874_v37, %v7872_v39 }
 0x55a   : > { %v4017_v13 = vmul.f32 %v5635_v11, %v7865_v47  ;;  %v7883_v9 = vpop.xlane.xlu2 %3997  ;;  %4131 = vmatpush.bf16.xpose.msrb.mxu3 %v8503_v62  ;;  %4093 = vmatpush.bf16.xpose.msrb.mxu1 %v8501_v8  ;;  %vm4022_vm13 = vweird.f32 %v5635_v11  ;;  %v3786_v8 = vunpack.c.l.b16 %v7853_v63  ;;  %v4028_v10 = vor.u32 1.1754944e-38, %v4027_v54 }
 0x55b   : > { %5636 = vrcp.f32 %v7883_v9  ;;  %vm4023_vm0 = vmor %vm4021_vm14, %vm4022_vm13  ;;  %vm4007_vm1 = vweird.f32 %v7883_v9  ;;  %v4011_v49 = vand.u32 2147483647, %v7883_v9  ;;  %v4013_v21 = vand.u32 2147483648, %v7883_v9 }
 0x55c   : > { %v4018_v61 = vsub.f32 1.0, %v4017_v13  ;;  %v3753_v1 = vpack.c.b16 %v3751_v33, %v3749_v0 }
 0x55d   : > { %v2970_v60 = vpop.f32.mrf.mxu0  ;;  %v2984_v62 = vpop.f32.mrf.mxu1  ;;  %vm4012_vm4 = vcmp.eq.f32.partialorder %v4011_v49, 8.507059e+37 }
 0x55e   : > { %v4019_v25 = vmul.f32 %v5635_v11, %v4018_v61  ;;  %v2985_v4 = vadd.f32 %v2984_v62, %v2970_v60  ;;  %v3046_v60 = vsel %vm3037_vm12, %v2939_v30, 0.0 }
 0x560   : > { %v4020_v5 = vadd.f32 %v5635_v11, %v4019_v25 }
 0x561   : > { %v5637_v32 = vpop.eup %5636 }
 0x562   : > { %v4024_v63 = vsel %vm4023_vm0, %v5635_v11, %v4020_v5  ;;  %v4003_v47 = vmul.f32 %v5637_v32, %v7883_v9  ;;  %vm4008_vm2 = vweird.f32 %v5637_v32 }
 0x563   : > { %v4029_v12 = vsel %vm4026_vm15, %v4028_v10, %v4024_v63  ;;  %vm4009_vm3 = vmor %vm4007_vm1, %vm4008_vm2 }
 0x564   : > { %v4004_v44 = vsub.f32 1.0, %v4003_v47  ;;  %v4032_v20 = vmul.f32 %v7712_v18, %v4029_v12  ;;  %v4033_v50 = vmul.f32 %v7717_v15, %v4029_v12  ;;  %v4036_v53 = vmul.f32 %v7719_v35, %v4029_v12 }
 0x565   : > { %v4037_v51 = vmul.f32 %v7721_v36, %v4029_v12  ;;  %v4040_v17 = vmul.f32 %v7728_v38, %v4029_v12  ;;  %v4041_v11 = vmul.f32 %v7734_v29, %v4029_v12  ;;  %v4044_v42 = vmul.f32 %v7744_v23, %v4029_v12  ;;  %v2972_v2 = vpop.f32.mrf.mxu0  ;;  %v2986_v61 = vpop.f32.mrf.mxu1 }
 0x566   : > { %v4005_v13 = vmul.f32 %v5637_v32, %v4004_v44  ;;  %v7913_v27 = vpack.c.bf16 %v4033_v50, %v4032_v20  ;;  %v4045_v18 = vmul.f32 %v7751_v31, %v4029_v12  ;;  %v3041_v15 = vsel %vm3037_vm12, %v2985_v4, 0.0 }
 0x567   : > { %v3790_v35 = vpack.c.b16 %v3788_v22, %v3786_v8  ;;  %v7917_v36 = vpack.c.bf16 %v4037_v51, %v4036_v53  ;;  %v7919_v38 = vpack.c.bf16 %v4041_v11, %v4040_v17  ;;  %v3018_v54 = vpop.f32.mrf.mxu2  ;;  %v3032_v23 = vpop.f32.mrf.mxu3  ;;  %3764 = vmatmul.bf16.vlgmr.msra.gmra.mxu0 %v3752_v56  ;;  %3778 = vmatmul.bf16.vlgmr.msra.gmra.mxu1 %v3753_v1  ;;  %v4014_v31 = vor.u32 1.1754944e-38, %v4013_v21 }
 0x568   : > { %v4006_v29 = vadd.f32 %v5637_v32, %v4005_v13  ;;  %4055 = vst [vmem:[%s7585_s16 + $0x38] sm:$0xff] %v7913_v27  ;;  %v7923_v45 = vpack.c.bf16 %v4045_v18, %v4044_v42  ;;  %v3033_v59 = vadd.f32 %v3032_v23, %v3018_v54  ;;  %4155 = vmatpush.bf16.xpose.msra.mxu0 %v7686_v43  ;;  %v4066_v49 = vunpack.c.l.b16 %v7913_v27 }
 0x569   : > { %3802 = vmatmul.bf16.vlgmr.msra.gmra.mxu2 %v3790_v35  ;;  %4057 = vst [vmem:[%s7585_s16 + $0x78] sm:$0xff] %v7917_v36  ;;  %v3042_v25 = vadd.f32 %v3041_v15, %v3040_v58  ;;  %3816 = vmatmul.bf16.vlgmr.msra.gmra.mxu3 %v3791_v24  ;;  %v2987_v39 = vadd.f32 %v2986_v61, %v2972_v2  ;;  %v4067_v21 = vunpack.c.h.b16 %v7913_v27  ;;  %v4104_v4 = vunpack.c.l.b16 %v7917_v36 }
 0x56a   : > { %v4010_v0 = vsel %vm4009_vm3, %v5637_v32, %v4006_v29  ;;  %4193 = vmatpush.bf16.xpose.msra.mxu2 %v7695_v16  ;;  %4059 = vst [vmem:[%s7585_s16 + $0xb8] sm:$0xff] %v7919_v38  ;;  %v3043_v43 = vsel %vm3037_vm12, %v3033_v59, 0.0  ;;  %4207 = vmatpush.bf16.xpose.msra.mxu3 %v7699_v52  ;;  %v4105_v50 = vunpack.c.h.b16 %v7917_v36  ;;  %v4142_v36 = vunpack.c.l.b16 %v7919_v38 }
 0x56b   : > { %v4015_v9 = vsel %vm4012_vm4, %v4014_v31, %v4010_v0  ;;  %4169 = vmatpush.bf16.xpose.msra.mxu1 %v7688_v48  ;;  %4061 = vst [vmem:[%s7585_s16 + $0xf8] sm:$0xff] %v7923_v45  ;;  %v3044_v16 = vadd.f32 %v3043_v43, %v3042_v25  ;;  %v4143_v23 = vunpack.c.h.b16 %v7919_v38  ;;  %v4181_v25 = vunpack.c.h.b16 %v7923_v45 }
 0x56c   : > { %v4030_v37 = vmul.f32 %v7756_v41, %v4015_v9  ;;  %v4031_v62 = vmul.f32 %v7761_v34, %v4015_v9  ;;  %v4034_v8 = vmul.f32 %v7766_v7, %v4015_v9  ;;  %v4035_v28 = vmul.f32 %v7771_v55, %v4015_v9 }
 0x56d   : > { %v4038_v40 = vmul.f32 %v7779_v3, %v4015_v9  ;;  %v4039_v46 = vmul.f32 %v7783_v6, %v4015_v9  ;;  %v4042_v52 = vmul.f32 %v7789_v26, %v4015_v9  ;;  %3052 = vst.msk [vmem:[%s7942_s7] sm:$0xff] %vm3037_vm12, %v3044_v16  ;;  %v3297_v48 = vpop.f32.mrf.mxu0  ;;  %v3311_v33 = vpop.f32.mrf.mxu1  ;;  %v4043_v41 = vmul.f32 %v7795_v14, %v4015_v9 }
 0x56e   : > { %v4046_v5 = vpack.c.bf16 %v4031_v62, %v4030_v37  ;;  %v3045_v34 = vsel %vm3037_vm12, %v2891_v19, 0.0  ;;  %v3048_v7 = vsel %vm3037_vm12, %v2987_v39, 0.0  ;;  %v4048_v55 = vpack.c.bf16 %v4035_v28, %v4034_v8 }
 0x56f   : > { %v4050_v3 = vpack.c.bf16 %v4039_v46, %v4038_v40  ;;  %v3047_v10 = vadd.f32 %v3046_v60, %v3045_v34  ;;  %v3020_v6 = vpop.f32.mrf.mxu2  ;;  %v3034_v58 = vpop.f32.mrf.mxu3  ;;  %v4052_v26 = vpack.c.bf16 %v4043_v41, %v4042_v52  ;;  %v3312_v35 = vadd.f32 %v3311_v33, %v3297_v48 }
 0x570   : > { %4054 = vst [vmem:[%s7585_s16 + $0x30] sm:$0xff] %v4046_v5  ;;  %v3035_v32 = vadd.f32 %v3034_v58, %v3020_v6  ;;  %v4064_v22 = vunpack.c.l.b16 %v4046_v5  ;;  %v4065_v57 = vunpack.c.h.b16 %v4046_v5  ;;  %v4102_v63 = vunpack.c.l.b16 %v4048_v55 }
 0x571   : > { %4056 = vst [vmem:[%s7585_s16 + $0x70] sm:$0xff] %v4048_v55  ;;  %v3049_v30 = vadd.f32 %v3048_v7, %v3047_v10  ;;  %v4103_v12 = vunpack.c.h.b16 %v4048_v55  ;;  %v4140_v18 = vunpack.c.l.b16 %v4050_v3  ;;  %v4141_v15 = vunpack.c.h.b16 %v4050_v3 }
 0x572   : > { %4058 = vst [vmem:[%s7585_s16 + $0xb0] sm:$0xff] %v4050_v3  ;;  %v3050_v14 = vsel %vm3037_vm12, %v3035_v32, 0.0  ;;  %v4068_v44 = vpack.c.b16 %v4066_v49, %v4064_v22  ;;  %v4069_v20 = vpack.c.b16 %v4067_v21, %v4065_v57  ;;  %v4106_v53 = vpack.c.b16 %v4104_v4, %v4102_v63 }
 0x573   : > { %4060 = vst [vmem:[%s7585_s16 + $0xf0] sm:$0xff] %v4052_v26  ;;  %v3051_v47 = vadd.f32 %v3050_v14, %v3049_v30  ;;  %v4107_v11 = vpack.c.b16 %v4105_v50, %v4103_v12  ;;  %v4178_v54 = vunpack.c.l.b16 %v4052_v26  ;;  %v4179_v24 = vunpack.c.h.b16 %v4052_v26 }
 0x574   : > { %v4180_v19 = vunpack.c.l.b16 %v7923_v45  ;;  %v4144_v59 = vpack.c.b16 %v4142_v36, %v4140_v18  ;;  %v4145_v0 = vpack.c.b16 %v4143_v23, %v4141_v15  ;;  %v3430_v9 = vsel %vm3037_vm12, %v3312_v35, 0.0 }
 0x575   : > { %3053 = vst.msk [vmem:[%s7942_s7 + $0x8] sm:$0xff] %vm3037_vm12, %v3051_v47  ;;  %v3299_v56 = vpop.f32.mrf.mxu0  ;;  %v3313_v1 = vpop.f32.mrf.mxu1  ;;  %v4183_v8 = vpack.c.b16 %v4181_v25, %v4179_v24 }
 0x576   : > { %v4182_v16 = vpack.c.b16 %v4180_v19, %v4178_v54  ;;  %v3314_v45 = vadd.f32 %v3313_v1, %v3299_v56 }
 0x577   : > { %v3335_v51 = vpop.f32.mrf.mxu2  ;;  %v3349_v17 = vpop.f32.mrf.mxu3  ;;  %4080 = vmatmul.bf16.vlgmr.msrb.gmra.mxu0 %v4068_v44  ;;  %4094 = vmatmul.bf16.vlgmr.msrb.gmra.mxu1 %v4069_v20 }
 0x578   : > { %v3350_v27 = vadd.f32 %v3349_v17, %v3335_v51  ;;  %v3437_v41 = vsel %vm3037_vm12, %v3314_v45, 0.0 }
 0x579   : > { %4118 = vmatmul.bf16.vlgmr.msrb.gmra.mxu2 %v4106_v53  ;;  %4132 = vmatmul.bf16.vlgmr.msrb.gmra.mxu3 %v4107_v11 }
 0x57a   : > { %v3431_v31 = vsel %vm3037_vm12, %v3350_v27, 0.0 }
 0x57b   : > { %v3432_v37 = vadd.f32 %v3431_v31, %v3430_v9 }
 0x57d   : > { %v3373_v42 = vpop.f32.mrf.mxu0  ;;  %v3387_v13 = vpop.f32.mrf.mxu1 }
 0x57e   : > { %v3388_v29 = vadd.f32 %v3387_v13, %v3373_v42 }
 0x57f   : > { %v3337_v2 = vpop.f32.mrf.mxu2  ;;  %v3351_v61 = vpop.f32.mrf.mxu3 }
 0x580   : > { %v3433_v60 = vsel %vm3037_vm12, %v3388_v29, 0.0  ;;  %v3352_v28 = vadd.f32 %v3351_v61, %v3337_v2 }
 0x581   : > { %v3434_v46 = vadd.f32 %v3433_v60, %v3432_v37 }
 0x582   : > { %v3438_v5 = vsel %vm3037_vm12, %v3352_v28, 0.0 }
 0x583   : > { %v3439_v7 = vadd.f32 %v3438_v5, %v3437_v41 }
 0x585   : > { %v3375_v43 = vpop.f32.mrf.mxu0  ;;  %v3389_v39 = vpop.f32.mrf.mxu1 }
 0x586   : > { %v3390_v48 = vadd.f32 %v3389_v39, %v3375_v43 }
 0x587   : > { %v3411_v62 = vpop.f32.mrf.mxu2  ;;  %v3425_v38 = vpop.f32.mrf.mxu3  ;;  %4156 = vmatmul.bf16.vlgmr.msra.gmra.mxu0 %v4144_v59  ;;  %4170 = vmatmul.bf16.vlgmr.msra.gmra.mxu1 %v4145_v0 }
 0x588   : > { %v3426_v40 = vadd.f32 %v3425_v38, %v3411_v62  ;;  %v3440_v34 = vsel %vm3037_vm12, %v3390_v48, 0.0 }
 0x589   : > { %4194 = vmatmul.bf16.vlgmr.msra.gmra.mxu2 %v4182_v16  ;;  %4208 = vmatmul.bf16.vlgmr.msra.gmra.mxu3 %v4183_v8  ;;  %v3441_v6 = vadd.f32 %v3440_v34, %v3439_v7 }
 0x58a   : > { %v3435_v52 = vsel %vm3037_vm12, %v3426_v40, 0.0 }
 0x58b   : > { %v3436_v33 = vadd.f32 %v3435_v52, %v3434_v46 }
 0x58d   : > { %3444 = vst.msk [vmem:[%s7942_s7 + $0x10] sm:$0xff] %vm3037_vm12, %v3436_v33 }
 0x58f   : > { %v3413_v55 = vpop.f32.mrf.mxu2  ;;  %v3427_v3 = vpop.f32.mrf.mxu3 }
 0x590   : > { %v3428_v10 = vadd.f32 %v3427_v3, %v3413_v55 }
 0x592   : > { %v3442_v58 = vsel %vm3037_vm12, %v3428_v10, 0.0 }
 0x593   : > { %v3443_v26 = vadd.f32 %v3442_v58, %v3441_v6 }
 0x595   : > { %3445 = vst.msk [vmem:[%s7942_s7 + $0x18] sm:$0xff] %vm3037_vm12, %v3443_v26 }
 0x596   : > { %5726 = shalt.err (!%p5723_p12)
}
 0x597   : > { %s5777_s30 = smov 128   ;;  %s5778_s16 = smov 8  }
 0x598   : > { %5433 = dma.vmem_to_hbm [thread:$0]  (%p5881_p7), %s4249_s14, 4096, %s4251_s15, %s4231_s19, %s5777_s30, %s5777_s30, %s5778_s16  }
 0x5d4   : > { %v3689_v32 = vpop.f32.mrf.mxu0  ;;  %v3703_v30 = vpop.f32.mrf.mxu1 }
 0x5d5   : > { %v3704_v56 = vadd.f32 %v3703_v30, %v3689_v32 }
 0x5d7   : > { %v3822_v20 = vsel %vm3037_vm12, %v3704_v56, 0.0 }
 0x5db   : > { %v3727_v22 = vpop.f32.mrf.mxu2 }
 0x5dc   : > { %v3741_v57 = vpop.f32.mrf.mxu3  ;;  %v3691_v14 = vpop.f32.mrf.mxu0 }
 0x5dd   : > { %v3705_v63 = vpop.f32.mrf.mxu1  ;;  %v3742_v12 = vadd.f32 %v3741_v57, %v3727_v22 }
 0x5de   : > { %v3706_v27 = vadd.f32 %v3705_v63, %v3691_v14 }
 0x5df   : > { %v3823_v44 = vsel %vm3037_vm12, %v3742_v12, 0.0 }
 0x5e0   : > { %v3824_v51 = vadd.f32 %v3823_v44, %v3822_v20  ;;  %v3829_v54 = vsel %vm3037_vm12, %v3706_v27, 0.0 }
 0x5e3   : > { %v3729_v47 = vpop.f32.mrf.mxu2 }
 0x5e4   : > { %v3743_v49 = vpop.f32.mrf.mxu3  ;;  %v3765_v21 = vpop.f32.mrf.mxu0 }
 0x5e5   : > { %v3779_v4 = vpop.f32.mrf.mxu1  ;;  %v3744_v42 = vadd.f32 %v3743_v49, %v3729_v47 }
 0x5e6   : > { %v3780_v1 = vadd.f32 %v3779_v4, %v3765_v21 }
 0x5e7   : > { %v3830_v29 = vsel %vm3037_vm12, %v3744_v42, 0.0 }
 0x5e8   : > { %v3825_v50 = vsel %vm3037_vm12, %v3780_v1, 0.0  ;;  %v3831_v24 = vadd.f32 %v3830_v29, %v3829_v54 }
 0x5e9   : > { %v3826_v61 = vadd.f32 %v3825_v50, %v3824_v51 }
 0x5ec   : > { %v3803_v53 = vpop.f32.mrf.mxu2  ;;  %v3817_v17 = vpop.f32.mrf.mxu3 }
 0x5ed   : > { %v3767_v11 = vpop.f32.mrf.mxu0  ;;  %v3818_v13 = vadd.f32 %v3817_v17, %v3803_v53  ;;  %v3781_v2 = vpop.f32.mrf.mxu1 }
 0x5ee   : > { %v3782_v15 = vadd.f32 %v3781_v2, %v3767_v11 }
 0x5ef   : > { %v3827_v18 = vsel %vm3037_vm12, %v3818_v13, 0.0 }
 0x5f0   : > { %v3828_v35 = vadd.f32 %v3827_v18, %v3826_v61  ;;  %v3832_v36 = vsel %vm3037_vm12, %v3782_v15, 0.0 }
 0x5f1   : > { %v3833_v25 = vadd.f32 %v3832_v36, %v3831_v24 }
 0x5f2   : > { %3836 = vst.msk [vmem:[%s7942_s7 + $0x20] sm:$0xff] %vm3037_vm12, %v3828_v35 }
 0x5f4   : > { %v3805_v23 = vpop.f32.mrf.mxu2  ;;  %v3819_v31 = vpop.f32.mrf.mxu3 }
 0x5f5   : > { %v4081_v19 = vpop.f32.mrf.mxu0  ;;  %v3820_v59 = vadd.f32 %v3819_v31, %v3805_v23  ;;  %v4095_v0 = vpop.f32.mrf.mxu1 }
 0x5f6   : > { %v4096_v46 = vadd.f32 %v4095_v0, %v4081_v19 }
 0x5f7   : > { %v3834_v9 = vsel %vm3037_vm12, %v3820_v59, 0.0 }
 0x5f8   : > { %v3835_v60 = vadd.f32 %v3834_v9, %v3833_v25  ;;  %v4214_v48 = vsel %vm3037_vm12, %v4096_v46, 0.0 }
 0x5fa   : > { %3837 = vst.msk [vmem:[%s7942_s7 + $0x28] sm:$0xff] %vm3037_vm12, %v3835_v60 }
 0x5fc   : > { %v4119_v43 = vpop.f32.mrf.mxu2  ;;  %v4133_v39 = vpop.f32.mrf.mxu3 }
 0x5fd   : > { %v4083_v16 = vpop.f32.mrf.mxu0  ;;  %v4097_v37 = vpop.f32.mrf.mxu1  ;;  %v4134_v28 = vadd.f32 %v4133_v39, %v4119_v43 }
 0x5fe   : > { %v4098_v58 = vadd.f32 %v4097_v37, %v4083_v16 }
 0x5ff   : > { %v4215_v52 = vsel %vm3037_vm12, %v4134_v28, 0.0 }
 0x600   : > { %v4216_v41 = vadd.f32 %v4215_v52, %v4214_v48  ;;  %v4221_v57 = vsel %vm3037_vm12, %v4098_v58, 0.0 }
 0x604   : > { %v4121_v62 = vpop.f32.mrf.mxu2  ;;  %v4135_v38 = vpop.f32.mrf.mxu3 }
 0x605   : > { %v4157_v8 = vpop.f32.mrf.mxu0  ;;  %v4171_v40 = vpop.f32.mrf.mxu1  ;;  %v4136_v55 = vadd.f32 %v4135_v38, %v4121_v62 }
 0x606   : > { %v4172_v45 = vadd.f32 %v4171_v40, %v4157_v8 }
 0x607   : > { %v4222_v22 = vsel %vm3037_vm12, %v4136_v55, 0.0 }
 0x608   : > { %v4217_v33 = vsel %vm3037_vm12, %v4172_v45, 0.0  ;;  %v4223_v47 = vadd.f32 %v4222_v22, %v4221_v57 }
 0x609   : > { %v4218_v6 = vadd.f32 %v4217_v33, %v4216_v41 }
 0x60c   : > { %v4195_v5 = vpop.f32.mrf.mxu2  ;;  %v4209_v34 = vpop.f32.mrf.mxu3 }
 0x60d   : > { %v4159_v7 = vpop.f32.mrf.mxu0  ;;  %v4210_v3 = vadd.f32 %v4209_v34, %v4195_v5  ;;  %v4173_v10 = vpop.f32.mrf.mxu1 }
 0x60e   : > { %v4174_v32 = vadd.f32 %v4173_v10, %v4159_v7 }
 0x60f   : > { %v4219_v26 = vsel %vm3037_vm12, %v4210_v3, 0.0 }
 0x610   : > { %v4220_v30 = vadd.f32 %v4219_v26, %v4218_v6  ;;  %v4224_v14 = vsel %vm3037_vm12, %v4174_v32, 0.0 }
 0x611   : > { %v4225_v12 = vadd.f32 %v4224_v14, %v4223_v47 }
 0x612   : > { %4228 = vst.msk [vmem:[%s7942_s7 + $0x30] sm:$0xff] %vm3037_vm12, %v4220_v30 }
 0x614   : > { %v4197_v63 = vpop.f32.mrf.mxu2  ;;  %v4211_v49 = vpop.f32.mrf.mxu3 }
 0x615   : > { %v4212_v21 = vadd.f32 %v4211_v49, %v4197_v63 }
 0x617   : > { %v4226_v4 = vsel %vm3037_vm12, %v4212_v21, 0.0 }
 0x618   : > { %v4227_v56 = vadd.f32 %v4226_v4, %v4225_v12 }
 0x61a   : > { %4229 = vst.msk [vmem:[%s7942_s7 + $0x38] sm:$0xff] %vm3037_vm12, %v4227_v56 }
 0x61b PF: > { %s4268_s17 = sand.u32 1, %s5757_s21   ;;  %p8528_p7 = scmp.ge.s32.totalorder %s5769_s24, 2 }
 0x61c   : > { %s4269_s8 = scalar_lea.sflag [#allocation4], %s4268_s17 }
 0x61d   : > { %p5444_p13 = pnand %p8528_p7, %p5849_p6 }
 0x61f   : > { %p5445_p0 = pneg %p5444_p13 }
 0x621   : > { %5752 = dma.done.wait (%p5445_p0), %s4269_s8, 4096  }
 0x622   : > { %5754 = vsyncadd (%p5445_p0), %s4269_s8, 4294963200  ;;  %s8529_s27 = sld [smem:[#allocation11_spill]]  ;;  %p21_p3 = scmp.ge.s32.totalorder %s5867_s11, 4  }
 0x623   : > { %s8530_s21 = smov %s5761_s22  ;;  %s8531_s22 = smov %s5765_s23 }
 0x624   : > { %s8533_s24 = smov %s5867_s11  ;;  %23 = sbr.rel (!%p21_p3) target bundleno = 8 (0x8), region = 110 }
 0x628   : > { %s8532_s23 = smov %s8529_s27 }
 0x629   :  { %4283 = vsyncpa [#allocation3], 1 }
 0x62a   :  { %4285 = vsyncpa [#allocation3 + $0x1], 1 }
 0x62b   :  { %4286 = vsyncpa [#allocation6], 1 }
 0x62c   :  { %4287 = vsyncpa [#allocation4], 1 }
 0x62d   :  { %4289 = vsyncpa [#allocation4 + $0x1], 1 }

</bundles_post_ra>
